<compile_context>
chip_gen: v7x
topology: tpu7x:2x2x1
jax: 0.10.0
libtpu: 0.0.40
codegen_flags: <defaults>
</compile_context>

<pallas_src>
import jax
import jax.numpy as jnp
import numpy as np
from jax.experimental import pallas as pl
from jax.experimental.pallas import tpu as pltpu


# -----------------------------------------------------------------------------
# Pallas kernel: one grid step processes Bw windows, batched over windows.
# -----------------------------------------------------------------------------
def _window_attn_kernel(x_ref, wq_ref, wk_ref, wv_ref, bq_ref, bk_ref, bv_ref,
                        bm_ref, wproj_ref, bproj_ref, o_ref):
    H, C, Dh = wq_ref.shape                      # head-major per-head weight slabs
    _, nW, N, _ = bm_ref.shape                   # combined bias+mask (H, nW, N, N)
    BwN = x_ref.shape[0]
    Bw = BwN // N

    xb = x_ref[...].astype(jnp.bfloat16)         # (Bw*N, C) — bf16 operands, f32 accumulation

    acc = jnp.zeros((BwN, C), jnp.float32)
    for h in range(H):                           # small, bounded static loop (num_heads)
        # Per-head projections: M = Bw*N (large), K = C. Scale already folded into Wq/bq.
        qh = jnp.dot(xb, wq_ref[h], preferred_element_type=jnp.float32) + bq_ref[h]
        kh = jnp.dot(xb, wk_ref[h], preferred_element_type=jnp.float32) + bk_ref[h]
        vh = jnp.dot(xb, wv_ref[h], preferred_element_type=jnp.float32) + bv_ref[h]

        # Leading-dim split only (N is a multiple of 8 in the test config — no relayout).
        q3 = qh.reshape(Bw, N, Dh).astype(jnp.bfloat16)
        k3 = kh.reshape(Bw, N, Dh).astype(jnp.bfloat16)
        v3 = vh.reshape(Bw, N, Dh).astype(jnp.bfloat16)

        # Window-batched score matmul: one dot_general with batch dim Bw.
        s = jnp.einsum('bnd,bmd->bnm', q3, k3,
                       preferred_element_type=jnp.float32)            # (Bw, N, N)

        # Relative-position bias + shift mask (combined offline). Bw % nW == 0, so the mask
        # for every window in the block is a static broadcast over Bw//nW groups.
        s = (s.reshape(Bw // nW, nW, N, N) + bm_ref[h][None]).reshape(Bw, N, N)

        # Numerically stable softmax with deferred normalization.
        s = s - jnp.max(s, axis=-1, keepdims=True)
        p = jnp.exp(s)
        denom = jnp.sum(p, axis=-1, keepdims=True)                    # (Bw, N, 1)

        # TODO(synk): attn_drop / proj_drop are identity here (p=0.0 in the reference module).
        ctx = jnp.einsum('bnm,bmd->bnd', p.astype(jnp.bfloat16), v3,
                         preferred_element_type=jnp.float32)          # (Bw, N, Dh)
        # Scale the small (N, Dh) context instead of the (N, N) probabilities; EUP reciprocal.
        ctx = ctx * pl.reciprocal(denom, approx=True)

        # Output projection folded into the head loop (implicit head concat).
        acc = acc + jnp.dot(ctx.reshape(BwN, Dh).astype(jnp.bfloat16), wproj_ref[h],
                            preferred_element_type=jnp.float32)       # (Bw*N, C)

    # Single lane-contiguous store of the whole block.
    o_ref[...] = (acc + bproj_ref[...]).astype(o_ref.dtype)


# -----------------------------------------------------------------------------
# Generation-aware sizing helpers.
# -----------------------------------------------------------------------------
def _hw_params():
    vmem_bytes = 64 << 20            # conservative default (v7x physical VMEM per TC)
    min_steps = 1
    try:
        vmem_bytes = int(pltpu.get_tpu_info().vmem_capacity_bytes)
    except Exception:
        pass
    try:
        kind = (jax.devices()[0].device_kind or "").lower()
        if "v7" in kind:
            min_steps = 2            # 2 TensorCores/chip: keep the grid shardable
    except Exception:
        pass
    return vmem_bytes, min_steps


def _resident_bytes(C, H, N, nW, Dh):
    weights = 4 * C * C * 2                      # Wq/Wk/Wv/Wproj in bf16
    biases = (3 * H * Dh + C) * 4
    bias_mask = H * nW * N * N * 4
    return weights + biases + bias_mask


def _per_step_bytes(bw, N, C, Dh):
    blocks = 2 * 2 * bw * N * C * 4              # double-buffered x / out blocks (f32)
    interm = bw * N * (C + 4 * Dh + 2 * N) * 4   # acc, q/k/v/ctx, scores/probs (f32)
    return blocks + int(1.5 * interm)            # + bf16 copies / headroom


def _choose_block_windows(B_, N, nW, C, Dh, budget_bytes, min_steps):
    """Largest Bw that divides B_, is a multiple of nW (static mask broadcast), respects the
    (8, 128) block constraint when the grid has >1 step, fits the streaming budget, and — on
    2-TC parts only — keeps the grid shardable across cores."""
    cands = [bw for bw in range(nW, B_ + 1, nW)
             if B_ % bw == 0 and (B_ // bw == 1 or (bw * N) % 8 == 0)]
    if not cands:
        return B_
    fit = [bw for bw in cands if _per_step_bytes(bw, N, C, Dh) <= budget_bytes]
    pref = [bw for bw in fit if B_ // bw >= min_steps]
    if pref:
        return max(pref)
    if fit:
        return max(fit)
    return min(cands)


# -----------------------------------------------------------------------------
# Wrapper: offline layout / dtype prep + pallas_call.
# -----------------------------------------------------------------------------
def window_attention_pallas(x, wqkv, bqkv, rel_bias, mask, wproj, bproj,
                            num_heads, scale, block_windows=None):
    B_, N, C = x.shape
    H = num_heads
    Dh = C // H

    if mask is None:
        mask = jnp.zeros((1, N, N), dtype=jnp.float32)
    nW = mask.shape[0]

    # ---- Offline weight prep (free, done once in the JAX wrapper) ----------
    def _per_head(w):                            # (C, C) -> head-major (H, C, Dh)
        return jnp.transpose(w.reshape(C, H, Dh), (1, 0, 2))

    bqkv_flat = jnp.reshape(bqkv, (-1,))
    wq = _per_head(wqkv[:, 0:C] * scale).astype(jnp.bfloat16)      # qk scale folded in
    wk = _per_head(wqkv[:, C:2 * C]).astype(jnp.bfloat16)
    wv = _per_head(wqkv[:, 2 * C:3 * C]).astype(jnp.bfloat16)
    bq = (bqkv_flat[0:C] * scale).reshape(H, 1, Dh).astype(jnp.float32)
    bk = bqkv_flat[C:2 * C].reshape(H, 1, Dh).astype(jnp.float32)
    bv = bqkv_flat[2 * C:3 * C].reshape(H, 1, Dh).astype(jnp.float32)
    wproj_h = wproj.reshape(H, Dh, C).astype(jnp.bfloat16)         # head-major input rows
    bproj2 = jnp.reshape(bproj, (1, C)).astype(jnp.float32)

    # Relative-position bias and shift mask combined once: (H, nW, N, N), resident in VMEM.
    bias_mask = (rel_bias[:, None, :, :] + mask[None, :, :, :]).astype(jnp.float32)

    # ---- Generation-aware block sizing --------------------------------------
    vmem_bytes, min_steps = _hw_params()
    resident = _resident_bytes(C, H, N, nW, Dh)
    budget = max(8 << 20, int(vmem_bytes * 0.45) - 2 * resident)
    bw = block_windows or _choose_block_windows(B_, N, nW, C, Dh, budget, min_steps)
    assert B_ % bw == 0 and bw % nW == 0
    grid = B_ // bw

    # VMEM limit tracks the estimate (never clamped below it); capped for the 64 MiB part.
    # TODO(synk): resident (constant index_map) inputs are still double-buffered by the default
    # pipeline; pl.Buffered(1) on them would halve that footprint on v7x.
    est = _per_step_bytes(bw, N, C, Dh) + 2 * resident
    cap = min(int(vmem_bytes * 7 // 8), 100 << 20)
    vmem_limit = max(min(max(int(1.25 * est), 16 << 20), cap), int(1.1 * est))

    # Flat layout: the kernel sees (Bw*N, C) blocks and writes each block with one store.
    x_flat = x.reshape(B_ * N, C)

    out_flat = pl.pallas_call(
        _window_attn_kernel,
        out_shape=jax.ShapeDtypeStruct((B_ * N, C), x.dtype),
        grid_spec=pltpu.PrefetchScalarGridSpec(
            num_scalar_prefetch=0,
            grid=(grid,),
            in_specs=[
                pl.BlockSpec((bw * N, C), lambda i: (i, 0)),           # x block (streamed)
                pl.BlockSpec((H, C, Dh), lambda i: (0, 0, 0)),         # Wq  (resident, bf16)
                pl.BlockSpec((H, C, Dh), lambda i: (0, 0, 0)),         # Wk  (resident, bf16)
                pl.BlockSpec((H, C, Dh), lambda i: (0, 0, 0)),         # Wv  (resident, bf16)
                pl.BlockSpec((H, 1, Dh), lambda i: (0, 0, 0)),         # bq (scaled)
                pl.BlockSpec((H, 1, Dh), lambda i: (0, 0, 0)),         # bk
                pl.BlockSpec((H, 1, Dh), lambda i: (0, 0, 0)),         # bv
                pl.BlockSpec((H, nW, N, N), lambda i: (0, 0, 0, 0)),   # bias+mask (resident)
                pl.BlockSpec((H, Dh, C), lambda i: (0, 0, 0)),         # Wproj (resident, bf16)
                pl.BlockSpec((1, C), lambda i: (0, 0)),                # proj bias
            ],
            out_specs=pl.BlockSpec((bw * N, C), lambda i: (i, 0)),
        ),
        compiler_params=pltpu.CompilerParams(
            dimension_semantics=("parallel",),
            vmem_limit_bytes=vmem_limit,
        ),
    )(x_flat, wq, wk, wv, bq, bk, bv, bias_mask, wproj_h, bproj2)

    return out_flat.reshape(B_, N, C)


# -----------------------------------------------------------------------------
# Glue: relative position index (same construction as the PyTorch __init__).
# -----------------------------------------------------------------------------
def make_relative_position_index(window_size):
    Wh, Ww = window_size
    coords_h = np.arange(Wh)
    coords_w = np.arange(Ww)
    coords = np.stack(np.meshgrid(coords_h, coords_w, indexing="ij"))     # (2, Wh, Ww)
    coords_flatten = coords.reshape(2, -1)                                # (2, N)
    relative_coords = coords_flatten[:, :, None] - coords_flatten[:, None, :]
    relative_coords = relative_coords.transpose(1, 2, 0).copy()           # (N, N, 2)
    relative_coords[:, :, 0] += Wh - 1
    relative_coords[:, :, 1] += Ww - 1
    relative_coords[:, :, 0] *= 2 * Ww - 1
    return relative_coords.sum(-1)                                        # (N, N)


# -----------------------------------------------------------------------------
# Pure-JAX reference (mirrors the PyTorch forward) used for a correctness check.
# -----------------------------------------------------------------------------
def window_attention_ref(x, wqkv, bqkv, rel_bias, mask, wproj, bproj, num_heads, scale):
    B_, N, C = x.shape
    Dh = C // num_heads
    qkv = x @ wqkv + bqkv[0]                                              # (B_, N, 3C)
    qkv = qkv.reshape(B_, N, 3, num_heads, Dh).transpose(2, 0, 3, 1, 4)
    q, k, v = qkv[0], qkv[1], qkv[2]
    attn = (q * scale) @ jnp.swapaxes(k, -2, -1)                          # (B_, H, N, N)
    attn = attn + rel_bias[None]
    nW = mask.shape[0]
    attn = attn.reshape(B_ // nW, nW, num_heads, N, N) + mask[None, :, None]
    attn = attn.reshape(B_, num_heads, N, N)
    attn = jax.nn.softmax(attn, axis=-1)
    out = (attn @ v).transpose(0, 2, 1, 3).reshape(B_, N, C)
    return out @ wproj + bproj[0]


if __name__ == "__main__":
    # Small config: dim=32, window 4x4 (N=16), 4 heads, batch=2, 4 windows -> B_=8.
    dim = 32
    window_size = (4, 4)
    num_heads = 4
    head_dim = dim // num_heads
    scale = head_dim ** (-0.5)
    N = window_size[0] * window_size[1]
    B = 2
    nW = 4
    B_ = B * nW

    key = jax.random.PRNGKey(0)
    kx, ktab, kwqkv, kbqkv, kwproj, kbproj, kmask = jax.random.split(key, 7)

    x = jax.random.normal(kx, (B_, N, dim), dtype=jnp.float32)

    # Parameters (deterministic, synthetic init — shapes follow nn.Module __init__).
    table = 0.02 * jax.random.normal(
        ktab, ((2 * window_size[0] - 1) * (2 * window_size[1] - 1), num_heads),
        dtype=jnp.float32)
    wqkv = 0.05 * jax.random.normal(kwqkv, (dim, 3 * dim), dtype=jnp.float32)
    bqkv = 0.05 * jax.random.normal(kbqkv, (1, 3 * dim), dtype=jnp.float32)
    wproj = 0.05 * jax.random.normal(kwproj, (dim, dim), dtype=jnp.float32)
    bproj = 0.05 * jax.random.normal(kbproj, (1, dim), dtype=jnp.float32)

    # Relative position bias: gather from the table (glue, done once in JAX).
    rpi = make_relative_position_index(window_size)                       # (N, N)
    rel_bias = jnp.asarray(table)[rpi.reshape(-1)].reshape(N, N, num_heads)
    rel_bias = jnp.transpose(rel_bias, (2, 0, 1)).astype(jnp.float32)     # (H, N, N)

    # Shifted-window style additive mask: 0 where allowed, -100 where masked.
    mask_bits = jax.random.bernoulli(kmask, 0.7, (nW, N, N))
    mask = jnp.where(mask_bits, 0.0, -100.0).astype(jnp.float32)

    out = window_attention_pallas(x, wqkv, bqkv, rel_bias, mask, wproj, bproj,
                                  num_heads, scale)
    out = jax.block_until_ready(out)

    ref = window_attention_ref(x, wqkv, bqkv, rel_bias, mask, wproj, bproj,
                               num_heads, scale)
    # bf16 matmul operands (f32 accumulation) + approx reciprocal -> ~1e-2 tolerance.
    np.testing.assert_allclose(np.asarray(out), np.asarray(ref), rtol=1e-2, atol=1e-2)

    print("KERNEL_OK")
</pallas_src>

<mosaic_0001>
module attributes {stable_mosaic.version = 11 : i64} {
  func.func @_window_attn_kernel(%arg0: i32, %arg1: memref<128x32xf32, #tpu.memory_space<vmem>>, %arg2: memref<4x32x8xbf16, #tpu.memory_space<vmem>>, %arg3: memref<4x32x8xbf16, #tpu.memory_space<vmem>>, %arg4: memref<4x32x8xbf16, #tpu.memory_space<vmem>>, %arg5: memref<4x1x8xf32, #tpu.memory_space<vmem>>, %arg6: memref<4x1x8xf32, #tpu.memory_space<vmem>>, %arg7: memref<4x1x8xf32, #tpu.memory_space<vmem>>, %arg8: memref<4x4x16x16xf32, #tpu.memory_space<vmem>>, %arg9: memref<4x8x32xbf16, #tpu.memory_space<vmem>>, %arg10: memref<1x32xf32, #tpu.memory_space<vmem>>, %arg11: memref<128x32xf32, #tpu.memory_space<vmem>>) attributes {dimension_semantics = [#tpu.dimension_semantics<parallel>], iteration_bounds = array<i64: 1>, scalar_prefetch = 0 : i64, scratch_operands = 0 : i64, tpu.core_type = #tpu.core_type<tc>, window_params = [{transform_indices = @transform_0, window_bounds = array<i64: 128, 32>}, {pipeline_mode = #tpu.pipeline_mode<synchronous>, transform_indices = @transform_1, window_bounds = array<i64: 4, 32, 8>}, {pipeline_mode = #tpu.pipeline_mode<synchronous>, transform_indices = @transform_2, window_bounds = array<i64: 4, 32, 8>}, {pipeline_mode = #tpu.pipeline_mode<synchronous>, transform_indices = @transform_3, window_bounds = array<i64: 4, 32, 8>}, {pipeline_mode = #tpu.pipeline_mode<synchronous>, transform_indices = @transform_4, window_bounds = array<i64: 4, 1, 8>}, {pipeline_mode = #tpu.pipeline_mode<synchronous>, transform_indices = @transform_5, window_bounds = array<i64: 4, 1, 8>}, {pipeline_mode = #tpu.pipeline_mode<synchronous>, transform_indices = @transform_6, window_bounds = array<i64: 4, 1, 8>}, {pipeline_mode = #tpu.pipeline_mode<synchronous>, transform_indices = @transform_7, window_bounds = array<i64: 4, 4, 16, 16>}, {pipeline_mode = #tpu.pipeline_mode<synchronous>, transform_indices = @transform_8, window_bounds = array<i64: 4, 8, 32>}, {pipeline_mode = #tpu.pipeline_mode<synchronous>, transform_indices = @transform_9, window_bounds = array<i64: 1, 32>}, {transform_indices = @transform_10, window_bounds = array<i64: 128, 32>}]} {
    %c0 = arith.constant 0 : index
    %c0_0 = arith.constant 0 : index
    %0 = vector.load %arg1[%c0, %c0_0] : memref<128x32xf32, #tpu.memory_space<vmem>>, vector<128x32xf32>
    %1 = arith.truncf %0 : vector<128x32xf32> to vector<128x32xbf16>
    %cst = arith.constant 0.000000e+00 : f32
    %2 = vector.broadcast %cst : f32 to vector<128x32xf32>
    %c0_1 = arith.constant 0 : index
    %c0_2 = arith.constant 0 : index
    %c0_3 = arith.constant 0 : index
    %3 = vector.load %arg2[%c0_1, %c0_2, %c0_3] : memref<4x32x8xbf16, #tpu.memory_space<vmem>>, vector<1x32x8xbf16>
    %4 = vector.shape_cast %3 : vector<1x32x8xbf16> to vector<32x8xbf16>
    %cst_4 = arith.constant dense<0.000000e+00> : vector<128x8xf32>
    %5 = tpu.matmul %1, %4, %cst_4 {dimension_numbers = #tpu.dot_dimension_numbers<[1], [0], [0], [1], [0, 0, 1, 1], [], []>} : vector<128x32xbf16>, vector<32x8xbf16>, vector<128x8xf32> -> vector<128x8xf32>
    %c0_5 = arith.constant 0 : index
    %c0_6 = arith.constant 0 : index
    %c0_7 = arith.constant 0 : index
    %6 = vector.load %arg5[%c0_5, %c0_6, %c0_7] : memref<4x1x8xf32, #tpu.memory_space<vmem>>, vector<1x1x8xf32>
    %7 = vector.shape_cast %6 : vector<1x1x8xf32> to vector<1x8xf32>
    %8 = vector.broadcast %7 : vector<1x8xf32> to vector<128x8xf32>
    %9 = arith.addf %5, %8 : vector<128x8xf32>
    %c0_8 = arith.constant 0 : index
    %c0_9 = arith.constant 0 : index
    %c0_10 = arith.constant 0 : index
    %10 = vector.load %arg3[%c0_8, %c0_9, %c0_10] : memref<4x32x8xbf16, #tpu.memory_space<vmem>>, vector<1x32x8xbf16>
    %11 = vector.shape_cast %10 : vector<1x32x8xbf16> to vector<32x8xbf16>
    %cst_11 = arith.constant dense<0.000000e+00> : vector<128x8xf32>
    %12 = tpu.matmul %1, %11, %cst_11 {dimension_numbers = #tpu.dot_dimension_numbers<[1], [0], [0], [1], [0, 0, 1, 1], [], []>} : vector<128x32xbf16>, vector<32x8xbf16>, vector<128x8xf32> -> vector<128x8xf32>
    %c0_12 = arith.constant 0 : index
    %c0_13 = arith.constant 0 : index
    %c0_14 = arith.constant 0 : index
    %13 = vector.load %arg6[%c0_12, %c0_13, %c0_14] : memref<4x1x8xf32, #tpu.memory_space<vmem>>, vector<1x1x8xf32>
    %14 = vector.shape_cast %13 : vector<1x1x8xf32> to vector<1x8xf32>
    %15 = vector.broadcast %14 : vector<1x8xf32> to vector<128x8xf32>
    %16 = arith.addf %12, %15 : vector<128x8xf32>
    %c0_15 = arith.constant 0 : index
    %c0_16 = arith.constant 0 : index
    %c0_17 = arith.constant 0 : index
    %17 = vector.load %arg4[%c0_15, %c0_16, %c0_17] : memref<4x32x8xbf16, #tpu.memory_space<vmem>>, vector<1x32x8xbf16>
    %18 = vector.shape_cast %17 : vector<1x32x8xbf16> to vector<32x8xbf16>
    %cst_18 = arith.constant dense<0.000000e+00> : vector<128x8xf32>
    %19 = tpu.matmul %1, %18, %cst_18 {dimension_numbers = #tpu.dot_dimension_numbers<[1], [0], [0], [1], [0, 0, 1, 1], [], []>} : vector<128x32xbf16>, vector<32x8xbf16>, vector<128x8xf32> -> vector<128x8xf32>
    %c0_19 = arith.constant 0 : index
    %c0_20 = arith.constant 0 : index
    %c0_21 = arith.constant 0 : index
    %20 = vector.load %arg7[%c0_19, %c0_20, %c0_21] : memref<4x1x8xf32, #tpu.memory_space<vmem>>, vector<1x1x8xf32>
    %21 = vector.shape_cast %20 : vector<1x1x8xf32> to vector<1x8xf32>
    %22 = vector.broadcast %21 : vector<1x8xf32> to vector<128x8xf32>
    %23 = arith.addf %19, %22 : vector<128x8xf32>
    %24 = vector.shape_cast %9 : vector<128x8xf32> to vector<8x16x8xf32>
    %25 = arith.truncf %24 : vector<8x16x8xf32> to vector<8x16x8xbf16>
    %26 = vector.shape_cast %16 : vector<128x8xf32> to vector<8x16x8xf32>
    %27 = arith.truncf %26 : vector<8x16x8xf32> to vector<8x16x8xbf16>
    %28 = vector.shape_cast %23 : vector<128x8xf32> to vector<8x16x8xf32>
    %29 = arith.truncf %28 : vector<8x16x8xf32> to vector<8x16x8xbf16>
    "tpu.trace_start"() <{level = 10 : i32, message = "bnd,bmd->bnm"}> : () -> ()
    %cst_22 = arith.constant dense<0.000000e+00> : vector<8x16x16xf32>
    %30 = tpu.matmul %25, %27, %cst_22 {dimension_numbers = #tpu.dot_dimension_numbers<[2], [2], [1], [1], [0, 0, 0, 1, 1, 1], [0], [0]>} : vector<8x16x8xbf16>, vector<8x16x8xbf16>, vector<8x16x16xf32> -> vector<8x16x16xf32>
    "tpu.trace_stop"() : () -> ()
    %31 = vector.shape_cast %30 : vector<8x16x16xf32> to vector<2x4x16x16xf32>
    %c0_23 = arith.constant 0 : index
    %c0_24 = arith.constant 0 : index
    %c0_25 = arith.constant 0 : index
    %c0_26 = arith.constant 0 : index
    %32 = vector.load %arg8[%c0_23, %c0_24, %c0_25, %c0_26] : memref<4x4x16x16xf32, #tpu.memory_space<vmem>>, vector<1x4x16x16xf32>
    %33 = vector.shape_cast %32 : vector<1x4x16x16xf32> to vector<4x16x16xf32>
    %34 = vector.shape_cast %33 : vector<4x16x16xf32> to vector<1x4x16x16xf32>
    %35 = vector.broadcast %34 : vector<1x4x16x16xf32> to vector<2x4x16x16xf32>
    %36 = arith.addf %31, %35 : vector<2x4x16x16xf32>
    %37 = vector.shape_cast %36 : vector<2x4x16x16xf32> to vector<8x16x16xf32>
    %cst_27 = arith.constant dense<0xFF800000> : vector<8x16xf32>
    %38 = vector.multi_reduction <maximumf>, %37, %cst_27 [2] : vector<8x16x16xf32> to vector<8x16xf32>
    %39 = vector.shape_cast %38 : vector<8x16xf32> to vector<8x16x1xf32>
    %40 = vector.broadcast %39 : vector<8x16x1xf32> to vector<8x16x16xf32>
    %41 = arith.subf %37, %40 : vector<8x16x16xf32>
    %42 = math.exp %41 : vector<8x16x16xf32>
    %cst_28 = arith.constant dense<0.000000e+00> : vector<8x16xf32>
    %43 = vector.multi_reduction <add>, %42, %cst_28 [2] : vector<8x16x16xf32> to vector<8x16xf32>
    %44 = vector.shape_cast %43 : vector<8x16xf32> to vector<8x16x1xf32>
    %45 = arith.truncf %42 : vector<8x16x16xf32> to vector<8x16x16xbf16>
    "tpu.trace_start"() <{level = 10 : i32, message = "bnm,bmd->bnd"}> : () -> ()
    %cst_29 = arith.constant dense<0.000000e+00> : vector<8x16x8xf32>
    %46 = tpu.matmul %45, %29, %cst_29 {dimension_numbers = #tpu.dot_dimension_numbers<[2], [1], [1], [2], [0, 0, 0, 1, 1, 2], [0], [0]>} : vector<8x16x16xbf16>, vector<8x16x8xbf16>, vector<8x16x8xf32> -> vector<8x16x8xf32>
    "tpu.trace_stop"() : () -> ()
    %47 = tpu.reciprocal %44 {approx = true} : vector<8x16x1xf32> -> vector<8x16x1xf32>
    %48 = vector.broadcast %47 : vector<8x16x1xf32> to vector<8x16x8xf32>
    %49 = arith.mulf %46, %48 : vector<8x16x8xf32>
    %50 = vector.shape_cast %49 : vector<8x16x8xf32> to vector<128x8xf32>
    %51 = arith.truncf %50 : vector<128x8xf32> to vector<128x8xbf16>
    %c0_30 = arith.constant 0 : index
    %c0_31 = arith.constant 0 : index
    %c0_32 = arith.constant 0 : index
    %52 = vector.load %arg9[%c0_30, %c0_31, %c0_32] : memref<4x8x32xbf16, #tpu.memory_space<vmem>>, vector<1x8x32xbf16>
    %53 = vector.shape_cast %52 : vector<1x8x32xbf16> to vector<8x32xbf16>
    %cst_33 = arith.constant dense<0.000000e+00> : vector<128x32xf32>
    %54 = tpu.matmul %51, %53, %cst_33 {dimension_numbers = #tpu.dot_dimension_numbers<[1], [0], [0], [1], [0, 0, 1, 1], [], []>} : vector<128x8xbf16>, vector<8x32xbf16>, vector<128x32xf32> -> vector<128x32xf32>
    %55 = arith.addf %2, %54 : vector<128x32xf32>
    %c1 = arith.constant 1 : index
    %c0_34 = arith.constant 0 : index
    %c0_35 = arith.constant 0 : index
    %56 = vector.load %arg2[%c1, %c0_34, %c0_35] : memref<4x32x8xbf16, #tpu.memory_space<vmem>>, vector<1x32x8xbf16>
    %57 = vector.shape_cast %56 : vector<1x32x8xbf16> to vector<32x8xbf16>
    %cst_36 = arith.constant dense<0.000000e+00> : vector<128x8xf32>
    %58 = tpu.matmul %1, %57, %cst_36 {dimension_numbers = #tpu.dot_dimension_numbers<[1], [0], [0], [1], [0, 0, 1, 1], [], []>} : vector<128x32xbf16>, vector<32x8xbf16>, vector<128x8xf32> -> vector<128x8xf32>
    %c1_37 = arith.constant 1 : index
    %c0_38 = arith.constant 0 : index
    %c0_39 = arith.constant 0 : index
    %59 = vector.load %arg5[%c1_37, %c0_38, %c0_39] : memref<4x1x8xf32, #tpu.memory_space<vmem>>, vector<1x1x8xf32>
    %60 = vector.shape_cast %59 : vector<1x1x8xf32> to vector<1x8xf32>
    %61 = vector.broadcast %60 : vector<1x8xf32> to vector<128x8xf32>
    %62 = arith.addf %58, %61 : vector<128x8xf32>
    %c1_40 = arith.constant 1 : index
    %c0_41 = arith.constant 0 : index
    %c0_42 = arith.constant 0 : index
    %63 = vector.load %arg3[%c1_40, %c0_41, %c0_42] : memref<4x32x8xbf16, #tpu.memory_space<vmem>>, vector<1x32x8xbf16>
    %64 = vector.shape_cast %63 : vector<1x32x8xbf16> to vector<32x8xbf16>
    %cst_43 = arith.constant dense<0.000000e+00> : vector<128x8xf32>
    %65 = tpu.matmul %1, %64, %cst_43 {dimension_numbers = #tpu.dot_dimension_numbers<[1], [0], [0], [1], [0, 0, 1, 1], [], []>} : vector<128x32xbf16>, vector<32x8xbf16>, vector<128x8xf32> -> vector<128x8xf32>
    %c1_44 = arith.constant 1 : index
    %c0_45 = arith.constant 0 : index
    %c0_46 = arith.constant 0 : index
    %66 = vector.load %arg6[%c1_44, %c0_45, %c0_46] : memref<4x1x8xf32, #tpu.memory_space<vmem>>, vector<1x1x8xf32>
    %67 = vector.shape_cast %66 : vector<1x1x8xf32> to vector<1x8xf32>
    %68 = vector.broadcast %67 : vector<1x8xf32> to vector<128x8xf32>
    %69 = arith.addf %65, %68 : vector<128x8xf32>
    %c1_47 = arith.constant 1 : index
    %c0_48 = arith.constant 0 : index
    %c0_49 = arith.constant 0 : index
    %70 = vector.load %arg4[%c1_47, %c0_48, %c0_49] : memref<4x32x8xbf16, #tpu.memory_space<vmem>>, vector<1x32x8xbf16>
    %71 = vector.shape_cast %70 : vector<1x32x8xbf16> to vector<32x8xbf16>
    %cst_50 = arith.constant dense<0.000000e+00> : vector<128x8xf32>
    %72 = tpu.matmul %1, %71, %cst_50 {dimension_numbers = #tpu.dot_dimension_numbers<[1], [0], [0], [1], [0, 0, 1, 1], [], []>} : vector<128x32xbf16>, vector<32x8xbf16>, vector<128x8xf32> -> vector<128x8xf32>
    %c1_51 = arith.constant 1 : index
    %c0_52 = arith.constant 0 : index
    %c0_53 = arith.constant 0 : index
    %73 = vector.load %arg7[%c1_51, %c0_52, %c0_53] : memref<4x1x8xf32, #tpu.memory_space<vmem>>, vector<1x1x8xf32>
    %74 = vector.shape_cast %73 : vector<1x1x8xf32> to vector<1x8xf32>
    %75 = vector.broadcast %74 : vector<1x8xf32> to vector<128x8xf32>
    %76 = arith.addf %72, %75 : vector<128x8xf32>
    %77 = vector.shape_cast %62 : vector<128x8xf32> to vector<8x16x8xf32>
    %78 = arith.truncf %77 : vector<8x16x8xf32> to vector<8x16x8xbf16>
    %79 = vector.shape_cast %69 : vector<128x8xf32> to vector<8x16x8xf32>
    %80 = arith.truncf %79 : vector<8x16x8xf32> to vector<8x16x8xbf16>
    %81 = vector.shape_cast %76 : vector<128x8xf32> to vector<8x16x8xf32>
    %82 = arith.truncf %81 : vector<8x16x8xf32> to vector<8x16x8xbf16>
    "tpu.trace_start"() <{level = 10 : i32, message = "bnd,bmd->bnm"}> : () -> ()
    %cst_54 = arith.constant dense<0.000000e+00> : vector<8x16x16xf32>
    %83 = tpu.matmul %78, %80, %cst_54 {dimension_numbers = #tpu.dot_dimension_numbers<[2], [2], [1], [1], [0, 0, 0, 1, 1, 1], [0], [0]>} : vector<8x16x8xbf16>, vector<8x16x8xbf16>, vector<8x16x16xf32> -> vector<8x16x16xf32>
    "tpu.trace_stop"() : () -> ()
    %84 = vector.shape_cast %83 : vector<8x16x16xf32> to vector<2x4x16x16xf32>
    %c1_55 = arith.constant 1 : index
    %c0_56 = arith.constant 0 : index
    %c0_57 = arith.constant 0 : index
    %c0_58 = arith.constant 0 : index
    %85 = vector.load %arg8[%c1_55, %c0_56, %c0_57, %c0_58] : memref<4x4x16x16xf32, #tpu.memory_space<vmem>>, vector<1x4x16x16xf32>
    %86 = vector.shape_cast %85 : vector<1x4x16x16xf32> to vector<4x16x16xf32>
    %87 = vector.shape_cast %86 : vector<4x16x16xf32> to vector<1x4x16x16xf32>
    %88 = vector.broadcast %87 : vector<1x4x16x16xf32> to vector<2x4x16x16xf32>
    %89 = arith.addf %84, %88 : vector<2x4x16x16xf32>
    %90 = vector.shape_cast %89 : vector<2x4x16x16xf32> to vector<8x16x16xf32>
    %cst_59 = arith.constant dense<0xFF800000> : vector<8x16xf32>
    %91 = vector.multi_reduction <maximumf>, %90, %cst_59 [2] : vector<8x16x16xf32> to vector<8x16xf32>
    %92 = vector.shape_cast %91 : vector<8x16xf32> to vector<8x16x1xf32>
    %93 = vector.broadcast %92 : vector<8x16x1xf32> to vector<8x16x16xf32>
    %94 = arith.subf %90, %93 : vector<8x16x16xf32>
    %95 = math.exp %94 : vector<8x16x16xf32>
    %cst_60 = arith.constant dense<0.000000e+00> : vector<8x16xf32>
    %96 = vector.multi_reduction <add>, %95, %cst_60 [2] : vector<8x16x16xf32> to vector<8x16xf32>
    %97 = vector.shape_cast %96 : vector<8x16xf32> to vector<8x16x1xf32>
    %98 = arith.truncf %95 : vector<8x16x16xf32> to vector<8x16x16xbf16>
    "tpu.trace_start"() <{level = 10 : i32, message = "bnm,bmd->bnd"}> : () -> ()
    %cst_61 = arith.constant dense<0.000000e+00> : vector<8x16x8xf32>
    %99 = tpu.matmul %98, %82, %cst_61 {dimension_numbers = #tpu.dot_dimension_numbers<[2], [1], [1], [2], [0, 0, 0, 1, 1, 2], [0], [0]>} : vector<8x16x16xbf16>, vector<8x16x8xbf16>, vector<8x16x8xf32> -> vector<8x16x8xf32>
    "tpu.trace_stop"() : () -> ()
    %100 = tpu.reciprocal %97 {approx = true} : vector<8x16x1xf32> -> vector<8x16x1xf32>
    %101 = vector.broadcast %100 : vector<8x16x1xf32> to vector<8x16x8xf32>
    %102 = arith.mulf %99, %101 : vector<8x16x8xf32>
    %103 = vector.shape_cast %102 : vector<8x16x8xf32> to vector<128x8xf32>
    %104 = arith.truncf %103 : vector<128x8xf32> to vector<128x8xbf16>
    %c1_62 = arith.constant 1 : index
    %c0_63 = arith.constant 0 : index
    %c0_64 = arith.constant 0 : index
    %105 = vector.load %arg9[%c1_62, %c0_63, %c0_64] : memref<4x8x32xbf16, #tpu.memory_space<vmem>>, vector<1x8x32xbf16>
    %106 = vector.shape_cast %105 : vector<1x8x32xbf16> to vector<8x32xbf16>
    %cst_65 = arith.constant dense<0.000000e+00> : vector<128x32xf32>
    %107 = tpu.matmul %104, %106, %cst_65 {dimension_numbers = #tpu.dot_dimension_numbers<[1], [0], [0], [1], [0, 0, 1, 1], [], []>} : vector<128x8xbf16>, vector<8x32xbf16>, vector<128x32xf32> -> vector<128x32xf32>
    %108 = arith.addf %55, %107 : vector<128x32xf32>
    %c2 = arith.constant 2 : index
    %c0_66 = arith.constant 0 : index
    %c0_67 = arith.constant 0 : index
    %109 = vector.load %arg2[%c2, %c0_66, %c0_67] : memref<4x32x8xbf16, #tpu.memory_space<vmem>>, vector<1x32x8xbf16>
    %110 = vector.shape_cast %109 : vector<1x32x8xbf16> to vector<32x8xbf16>
    %cst_68 = arith.constant dense<0.000000e+00> : vector<128x8xf32>
    %111 = tpu.matmul %1, %110, %cst_68 {dimension_numbers = #tpu.dot_dimension_numbers<[1], [0], [0], [1], [0, 0, 1, 1], [], []>} : vector<128x32xbf16>, vector<32x8xbf16>, vector<128x8xf32> -> vector<128x8xf32>
    %c2_69 = arith.constant 2 : index
    %c0_70 = arith.constant 0 : index
    %c0_71 = arith.constant 0 : index
    %112 = vector.load %arg5[%c2_69, %c0_70, %c0_71] : memref<4x1x8xf32, #tpu.memory_space<vmem>>, vector<1x1x8xf32>
    %113 = vector.shape_cast %112 : vector<1x1x8xf32> to vector<1x8xf32>
    %114 = vector.broadcast %113 : vector<1x8xf32> to vector<128x8xf32>
    %115 = arith.addf %111, %114 : vector<128x8xf32>
    %c2_72 = arith.constant 2 : index
    %c0_73 = arith.constant 0 : index
    %c0_74 = arith.constant 0 : index
    %116 = vector.load %arg3[%c2_72, %c0_73, %c0_74] : memref<4x32x8xbf16, #tpu.memory_space<vmem>>, vector<1x32x8xbf16>
    %117 = vector.shape_cast %116 : vector<1x32x8xbf16> to vector<32x8xbf16>
    %cst_75 = arith.constant dense<0.000000e+00> : vector<128x8xf32>
    %118 = tpu.matmul %1, %117, %cst_75 {dimension_numbers = #tpu.dot_dimension_numbers<[1], [0], [0], [1], [0, 0, 1, 1], [], []>} : vector<128x32xbf16>, vector<32x8xbf16>, vector<128x8xf32> -> vector<128x8xf32>
    %c2_76 = arith.constant 2 : index
    %c0_77 = arith.constant 0 : index
    %c0_78 = arith.constant 0 : index
    %119 = vector.load %arg6[%c2_76, %c0_77, %c0_78] : memref<4x1x8xf32, #tpu.memory_space<vmem>>, vector<1x1x8xf32>
    %120 = vector.shape_cast %119 : vector<1x1x8xf32> to vector<1x8xf32>
    %121 = vector.broadcast %120 : vector<1x8xf32> to vector<128x8xf32>
    %122 = arith.addf %118, %121 : vector<128x8xf32>
    %c2_79 = arith.constant 2 : index
    %c0_80 = arith.constant 0 : index
    %c0_81 = arith.constant 0 : index
    %123 = vector.load %arg4[%c2_79, %c0_80, %c0_81] : memref<4x32x8xbf16, #tpu.memory_space<vmem>>, vector<1x32x8xbf16>
    %124 = vector.shape_cast %123 : vector<1x32x8xbf16> to vector<32x8xbf16>
    %cst_82 = arith.constant dense<0.000000e+00> : vector<128x8xf32>
    %125 = tpu.matmul %1, %124, %cst_82 {dimension_numbers = #tpu.dot_dimension_numbers<[1], [0], [0], [1], [0, 0, 1, 1], [], []>} : vector<128x32xbf16>, vector<32x8xbf16>, vector<128x8xf32> -> vector<128x8xf32>
    %c2_83 = arith.constant 2 : index
    %c0_84 = arith.constant 0 : index
    %c0_85 = arith.constant 0 : index
    %126 = vector.load %arg7[%c2_83, %c0_84, %c0_85] : memref<4x1x8xf32, #tpu.memory_space<vmem>>, vector<1x1x8xf32>
    %127 = vector.shape_cast %126 : vector<1x1x8xf32> to vector<1x8xf32>
    %128 = vector.broadcast %127 : vector<1x8xf32> to vector<128x8xf32>
    %129 = arith.addf %125, %128 : vector<128x8xf32>
    %130 = vector.shape_cast %115 : vector<128x8xf32> to vector<8x16x8xf32>
    %131 = arith.truncf %130 : vector<8x16x8xf32> to vector<8x16x8xbf16>
    %132 = vector.shape_cast %122 : vector<128x8xf32> to vector<8x16x8xf32>
    %133 = arith.truncf %132 : vector<8x16x8xf32> to vector<8x16x8xbf16>
    %134 = vector.shape_cast %129 : vector<128x8xf32> to vector<8x16x8xf32>
    %135 = arith.truncf %134 : vector<8x16x8xf32> to vector<8x16x8xbf16>
    "tpu.trace_start"() <{level = 10 : i32, message = "bnd,bmd->bnm"}> : () -> ()
    %cst_86 = arith.constant dense<0.000000e+00> : vector<8x16x16xf32>
    %136 = tpu.matmul %131, %133, %cst_86 {dimension_numbers = #tpu.dot_dimension_numbers<[2], [2], [1], [1], [0, 0, 0, 1, 1, 1], [0], [0]>} : vector<8x16x8xbf16>, vector<8x16x8xbf16>, vector<8x16x16xf32> -> vector<8x16x16xf32>
    "tpu.trace_stop"() : () -> ()
    %137 = vector.shape_cast %136 : vector<8x16x16xf32> to vector<2x4x16x16xf32>
    %c2_87 = arith.constant 2 : index
    %c0_88 = arith.constant 0 : index
    %c0_89 = arith.constant 0 : index
    %c0_90 = arith.constant 0 : index
    %138 = vector.load %arg8[%c2_87, %c0_88, %c0_89, %c0_90] : memref<4x4x16x16xf32, #tpu.memory_space<vmem>>, vector<1x4x16x16xf32>
    %139 = vector.shape_cast %138 : vector<1x4x16x16xf32> to vector<4x16x16xf32>
    %140 = vector.shape_cast %139 : vector<4x16x16xf32> to vector<1x4x16x16xf32>
    %141 = vector.broadcast %140 : vector<1x4x16x16xf32> to vector<2x4x16x16xf32>
    %142 = arith.addf %137, %141 : vector<2x4x16x16xf32>
    %143 = vector.shape_cast %142 : vector<2x4x16x16xf32> to vector<8x16x16xf32>
    %cst_91 = arith.constant dense<0xFF800000> : vector<8x16xf32>
    %144 = vector.multi_reduction <maximumf>, %143, %cst_91 [2] : vector<8x16x16xf32> to vector<8x16xf32>
    %145 = vector.shape_cast %144 : vector<8x16xf32> to vector<8x16x1xf32>
    %146 = vector.broadcast %145 : vector<8x16x1xf32> to vector<8x16x16xf32>
    %147 = arith.subf %143, %146 : vector<8x16x16xf32>
    %148 = math.exp %147 : vector<8x16x16xf32>
    %cst_92 = arith.constant dense<0.000000e+00> : vector<8x16xf32>
    %149 = vector.multi_reduction <add>, %148, %cst_92 [2] : vector<8x16x16xf32> to vector<8x16xf32>
    %150 = vector.shape_cast %149 : vector<8x16xf32> to vector<8x16x1xf32>
    %151 = arith.truncf %148 : vector<8x16x16xf32> to vector<8x16x16xbf16>
    "tpu.trace_start"() <{level = 10 : i32, message = "bnm,bmd->bnd"}> : () -> ()
    %cst_93 = arith.constant dense<0.000000e+00> : vector<8x16x8xf32>
    %152 = tpu.matmul %151, %135, %cst_93 {dimension_numbers = #tpu.dot_dimension_numbers<[2], [1], [1], [2], [0, 0, 0, 1, 1, 2], [0], [0]>} : vector<8x16x16xbf16>, vector<8x16x8xbf16>, vector<8x16x8xf32> -> vector<8x16x8xf32>
    "tpu.trace_stop"() : () -> ()
    %153 = tpu.reciprocal %150 {approx = true} : vector<8x16x1xf32> -> vector<8x16x1xf32>
    %154 = vector.broadcast %153 : vector<8x16x1xf32> to vector<8x16x8xf32>
    %155 = arith.mulf %152, %154 : vector<8x16x8xf32>
    %156 = vector.shape_cast %155 : vector<8x16x8xf32> to vector<128x8xf32>
    %157 = arith.truncf %156 : vector<128x8xf32> to vector<128x8xbf16>
    %c2_94 = arith.constant 2 : index
    %c0_95 = arith.constant 0 : index
    %c0_96 = arith.constant 0 : index
    %158 = vector.load %arg9[%c2_94, %c0_95, %c0_96] : memref<4x8x32xbf16, #tpu.memory_space<vmem>>, vector<1x8x32xbf16>
    %159 = vector.shape_cast %158 : vector<1x8x32xbf16> to vector<8x32xbf16>
    %cst_97 = arith.constant dense<0.000000e+00> : vector<128x32xf32>
    %160 = tpu.matmul %157, %159, %cst_97 {dimension_numbers = #tpu.dot_dimension_numbers<[1], [0], [0], [1], [0, 0, 1, 1], [], []>} : vector<128x8xbf16>, vector<8x32xbf16>, vector<128x32xf32> -> vector<128x32xf32>
    %161 = arith.addf %108, %160 : vector<128x32xf32>
    %c3 = arith.constant 3 : index
    %c0_98 = arith.constant 0 : index
    %c0_99 = arith.constant 0 : index
    %162 = vector.load %arg2[%c3, %c0_98, %c0_99] : memref<4x32x8xbf16, #tpu.memory_space<vmem>>, vector<1x32x8xbf16>
    %163 = vector.shape_cast %162 : vector<1x32x8xbf16> to vector<32x8xbf16>
    %cst_100 = arith.constant dense<0.000000e+00> : vector<128x8xf32>
    %164 = tpu.matmul %1, %163, %cst_100 {dimension_numbers = #tpu.dot_dimension_numbers<[1], [0], [0], [1], [0, 0, 1, 1], [], []>} : vector<128x32xbf16>, vector<32x8xbf16>, vector<128x8xf32> -> vector<128x8xf32>
    %c3_101 = arith.constant 3 : index
    %c0_102 = arith.constant 0 : index
    %c0_103 = arith.constant 0 : index
    %165 = vector.load %arg5[%c3_101, %c0_102, %c0_103] : memref<4x1x8xf32, #tpu.memory_space<vmem>>, vector<1x1x8xf32>
    %166 = vector.shape_cast %165 : vector<1x1x8xf32> to vector<1x8xf32>
    %167 = vector.broadcast %166 : vector<1x8xf32> to vector<128x8xf32>
    %168 = arith.addf %164, %167 : vector<128x8xf32>
    %c3_104 = arith.constant 3 : index
    %c0_105 = arith.constant 0 : index
    %c0_106 = arith.constant 0 : index
    %169 = vector.load %arg3[%c3_104, %c0_105, %c0_106] : memref<4x32x8xbf16, #tpu.memory_space<vmem>>, vector<1x32x8xbf16>
    %170 = vector.shape_cast %169 : vector<1x32x8xbf16> to vector<32x8xbf16>
    %cst_107 = arith.constant dense<0.000000e+00> : vector<128x8xf32>
    %171 = tpu.matmul %1, %170, %cst_107 {dimension_numbers = #tpu.dot_dimension_numbers<[1], [0], [0], [1], [0, 0, 1, 1], [], []>} : vector<128x32xbf16>, vector<32x8xbf16>, vector<128x8xf32> -> vector<128x8xf32>
    %c3_108 = arith.constant 3 : index
    %c0_109 = arith.constant 0 : index
    %c0_110 = arith.constant 0 : index
    %172 = vector.load %arg6[%c3_108, %c0_109, %c0_110] : memref<4x1x8xf32, #tpu.memory_space<vmem>>, vector<1x1x8xf32>
    %173 = vector.shape_cast %172 : vector<1x1x8xf32> to vector<1x8xf32>
    %174 = vector.broadcast %173 : vector<1x8xf32> to vector<128x8xf32>
    %175 = arith.addf %171, %174 : vector<128x8xf32>
    %c3_111 = arith.constant 3 : index
    %c0_112 = arith.constant 0 : index
    %c0_113 = arith.constant 0 : index
    %176 = vector.load %arg4[%c3_111, %c0_112, %c0_113] : memref<4x32x8xbf16, #tpu.memory_space<vmem>>, vector<1x32x8xbf16>
    %177 = vector.shape_cast %176 : vector<1x32x8xbf16> to vector<32x8xbf16>
    %cst_114 = arith.constant dense<0.000000e+00> : vector<128x8xf32>
    %178 = tpu.matmul %1, %177, %cst_114 {dimension_numbers = #tpu.dot_dimension_numbers<[1], [0], [0], [1], [0, 0, 1, 1], [], []>} : vector<128x32xbf16>, vector<32x8xbf16>, vector<128x8xf32> -> vector<128x8xf32>
    %c3_115 = arith.constant 3 : index
    %c0_116 = arith.constant 0 : index
    %c0_117 = arith.constant 0 : index
    %179 = vector.load %arg7[%c3_115, %c0_116, %c0_117] : memref<4x1x8xf32, #tpu.memory_space<vmem>>, vector<1x1x8xf32>
    %180 = vector.shape_cast %179 : vector<1x1x8xf32> to vector<1x8xf32>
    %181 = vector.broadcast %180 : vector<1x8xf32> to vector<128x8xf32>
    %182 = arith.addf %178, %181 : vector<128x8xf32>
    %183 = vector.shape_cast %168 : vector<128x8xf32> to vector<8x16x8xf32>
    %184 = arith.truncf %183 : vector<8x16x8xf32> to vector<8x16x8xbf16>
    %185 = vector.shape_cast %175 : vector<128x8xf32> to vector<8x16x8xf32>
    %186 = arith.truncf %185 : vector<8x16x8xf32> to vector<8x16x8xbf16>
    %187 = vector.shape_cast %182 : vector<128x8xf32> to vector<8x16x8xf32>
    %188 = arith.truncf %187 : vector<8x16x8xf32> to vector<8x16x8xbf16>
    "tpu.trace_start"() <{level = 10 : i32, message = "bnd,bmd->bnm"}> : () -> ()
    %cst_118 = arith.constant dense<0.000000e+00> : vector<8x16x16xf32>
    %189 = tpu.matmul %184, %186, %cst_118 {dimension_numbers = #tpu.dot_dimension_numbers<[2], [2], [1], [1], [0, 0, 0, 1, 1, 1], [0], [0]>} : vector<8x16x8xbf16>, vector<8x16x8xbf16>, vector<8x16x16xf32> -> vector<8x16x16xf32>
    "tpu.trace_stop"() : () -> ()
    %190 = vector.shape_cast %189 : vector<8x16x16xf32> to vector<2x4x16x16xf32>
    %c3_119 = arith.constant 3 : index
    %c0_120 = arith.constant 0 : index
    %c0_121 = arith.constant 0 : index
    %c0_122 = arith.constant 0 : index
    %191 = vector.load %arg8[%c3_119, %c0_120, %c0_121, %c0_122] : memref<4x4x16x16xf32, #tpu.memory_space<vmem>>, vector<1x4x16x16xf32>
    %192 = vector.shape_cast %191 : vector<1x4x16x16xf32> to vector<4x16x16xf32>
    %193 = vector.shape_cast %192 : vector<4x16x16xf32> to vector<1x4x16x16xf32>
    %194 = vector.broadcast %193 : vector<1x4x16x16xf32> to vector<2x4x16x16xf32>
    %195 = arith.addf %190, %194 : vector<2x4x16x16xf32>
    %196 = vector.shape_cast %195 : vector<2x4x16x16xf32> to vector<8x16x16xf32>
    %cst_123 = arith.constant dense<0xFF800000> : vector<8x16xf32>
    %197 = vector.multi_reduction <maximumf>, %196, %cst_123 [2] : vector<8x16x16xf32> to vector<8x16xf32>
    %198 = vector.shape_cast %197 : vector<8x16xf32> to vector<8x16x1xf32>
    %199 = vector.broadcast %198 : vector<8x16x1xf32> to vector<8x16x16xf32>
    %200 = arith.subf %196, %199 : vector<8x16x16xf32>
    %201 = math.exp %200 : vector<8x16x16xf32>
    %cst_124 = arith.constant dense<0.000000e+00> : vector<8x16xf32>
    %202 = vector.multi_reduction <add>, %201, %cst_124 [2] : vector<8x16x16xf32> to vector<8x16xf32>
    %203 = vector.shape_cast %202 : vector<8x16xf32> to vector<8x16x1xf32>
    %204 = arith.truncf %201 : vector<8x16x16xf32> to vector<8x16x16xbf16>
    "tpu.trace_start"() <{level = 10 : i32, message = "bnm,bmd->bnd"}> : () -> ()
    %cst_125 = arith.constant dense<0.000000e+00> : vector<8x16x8xf32>
    %205 = tpu.matmul %204, %188, %cst_125 {dimension_numbers = #tpu.dot_dimension_numbers<[2], [1], [1], [2], [0, 0, 0, 1, 1, 2], [0], [0]>} : vector<8x16x16xbf16>, vector<8x16x8xbf16>, vector<8x16x8xf32> -> vector<8x16x8xf32>
    "tpu.trace_stop"() : () -> ()
    %206 = tpu.reciprocal %203 {approx = true} : vector<8x16x1xf32> -> vector<8x16x1xf32>
    %207 = vector.broadcast %206 : vector<8x16x1xf32> to vector<8x16x8xf32>
    %208 = arith.mulf %205, %207 : vector<8x16x8xf32>
    %209 = vector.shape_cast %208 : vector<8x16x8xf32> to vector<128x8xf32>
    %210 = arith.truncf %209 : vector<128x8xf32> to vector<128x8xbf16>
    %c3_126 = arith.constant 3 : index
    %c0_127 = arith.constant 0 : index
    %c0_128 = arith.constant 0 : index
    %211 = vector.load %arg9[%c3_126, %c0_127, %c0_128] : memref<4x8x32xbf16, #tpu.memory_space<vmem>>, vector<1x8x32xbf16>
    %212 = vector.shape_cast %211 : vector<1x8x32xbf16> to vector<8x32xbf16>
    %cst_129 = arith.constant dense<0.000000e+00> : vector<128x32xf32>
    %213 = tpu.matmul %210, %212, %cst_129 {dimension_numbers = #tpu.dot_dimension_numbers<[1], [0], [0], [1], [0, 0, 1, 1], [], []>} : vector<128x8xbf16>, vector<8x32xbf16>, vector<128x32xf32> -> vector<128x32xf32>
    %214 = arith.addf %161, %213 : vector<128x32xf32>
    %c0_130 = arith.constant 0 : index
    %c0_131 = arith.constant 0 : index
    %215 = vector.load %arg10[%c0_130, %c0_131] : memref<1x32xf32, #tpu.memory_space<vmem>>, vector<1x32xf32>
    %216 = vector.broadcast %215 : vector<1x32xf32> to vector<128x32xf32>
    %217 = arith.addf %214, %216 : vector<128x32xf32>
    %c0_132 = arith.constant 0 : index
    %c0_133 = arith.constant 0 : index
    %218 = vector.load %arg11[%c0_132, %c0_133] : memref<128x32xf32, #tpu.memory_space<vmem>>, vector<128x32xf32>
    tpu.vector_store %arg11[%c0_132, %c0_133], %217 {strides = array<i32>} : memref<128x32xf32, #tpu.memory_space<vmem>>, vector<128x32xf32>,
    return
  }
  func.func @transform_0(%arg0: i32) -> (i32, i32) {
    %c0_i32 = arith.constant 0 : i32
    %c0_i32_0 = arith.constant 0 : i32
    return %arg0, %c0_i32 : i32, i32
  }
  func.func @transform_1(%arg0: i32) -> (i32, i32, i32) {
    %c0_i32 = arith.constant 0 : i32
    %c0_i32_0 = arith.constant 0 : i32
    %c0_i32_1 = arith.constant 0 : i32
    %c0_i32_2 = arith.constant 0 : i32
    return %c0_i32, %c0_i32_0, %c0_i32_1 : i32, i32, i32
  }
  func.func @transform_2(%arg0: i32) -> (i32, i32, i32) {
    %c0_i32 = arith.constant 0 : i32
    %c0_i32_0 = arith.constant 0 : i32
    %c0_i32_1 = arith.constant 0 : i32
    %c0_i32_2 = arith.constant 0 : i32
    return %c0_i32, %c0_i32_0, %c0_i32_1 : i32, i32, i32
  }
  func.func @transform_3(%arg0: i32) -> (i32, i32, i32) {
    %c0_i32 = arith.constant 0 : i32
    %c0_i32_0 = arith.constant 0 : i32
    %c0_i32_1 = arith.constant 0 : i32
    %c0_i32_2 = arith.constant 0 : i32
    return %c0_i32, %c0_i32_0, %c0_i32_1 : i32, i32, i32
  }
  func.func @transform_4(%arg0: i32) -> (i32, i32, i32) {
    %c0_i32 = arith.constant 0 : i32
    %c0_i32_0 = arith.constant 0 : i32
    %c0_i32_1 = arith.constant 0 : i32
    %c0_i32_2 = arith.constant 0 : i32
    return %c0_i32, %c0_i32_0, %c0_i32_1 : i32, i32, i32
  }
  func.func @transform_5(%arg0: i32) -> (i32, i32, i32) {
    %c0_i32 = arith.constant 0 : i32
    %c0_i32_0 = arith.constant 0 : i32
    %c0_i32_1 = arith.constant 0 : i32
    %c0_i32_2 = arith.constant 0 : i32
    return %c0_i32, %c0_i32_0, %c0_i32_1 : i32, i32, i32
  }
  func.func @transform_6(%arg0: i32) -> (i32, i32, i32) {
    %c0_i32 = arith.constant 0 : i32
    %c0_i32_0 = arith.constant 0 : i32
    %c0_i32_1 = arith.constant 0 : i32
    %c0_i32_2 = arith.constant 0 : i32
    return %c0_i32, %c0_i32_0, %c0_i32_1 : i32, i32, i32
  }
  func.func @transform_7(%arg0: i32) -> (i32, i32, i32, i32) {
    %c0_i32 = arith.constant 0 : i32
    %c0_i32_0 = arith.constant 0 : i32
    %c0_i32_1 = arith.constant 0 : i32
    %c0_i32_2 = arith.constant 0 : i32
    %c0_i32_3 = arith.constant 0 : i32
    return %c0_i32, %c0_i32_0, %c0_i32_1, %c0_i32_2 : i32, i32, i32, i32
  }
  func.func @transform_8(%arg0: i32) -> (i32, i32, i32) {
    %c0_i32 = arith.constant 0 : i32
    %c0_i32_0 = arith.constant 0 : i32
    %c0_i32_1 = arith.constant 0 : i32
    %c0_i32_2 = arith.constant 0 : i32
    return %c0_i32, %c0_i32_0, %c0_i32_1 : i32, i32, i32
  }
  func.func @transform_9(%arg0: i32) -> (i32, i32) {
    %c0_i32 = arith.constant 0 : i32
    %c0_i32_0 = arith.constant 0 : i32
    %c0_i32_1 = arith.constant 0 : i32
    return %c0_i32, %c0_i32_0 : i32, i32
  }
  func.func @transform_10(%arg0: i32) -> (i32, i32) {
    %c0_i32 = arith.constant 0 : i32
    %c0_i32_0 = arith.constant 0 : i32
    return %arg0, %c0_i32 : i32, i32
  }
}

</mosaic_0001>

<bundles_post_ra>
// kernel: tpu_custom_call.1
= control target key start
LH: loop header
LB: loop body
LE: loop exit
PB: predicated region body
PF: predicated region fallthrough
CT: control target
= control target key end

     0   :  { %vm83_vm0 = vcmask 261120   ;;  %v9729_v30 = vmov 0.0   ;;  %vm7619_vm1 = vmmov 0   ;;  %vm469_vm2 = vcmask 64512   ;;  %s9718_s1 = inlined_call_operand.vmem [shape: bf16[4,32,8], index: 1, kind: input, shape index: {}]   ;;  %s9719_s0 = inlined_call_operand.vmem [shape: f32[128,32], index: 0, kind: input, shape index: {}]   ;;  %s9720_s2 = inlined_call_operand.vmem [shape: bf16[4,32,8], index: 2, kind: input, shape index: {}]   ;;  %s9721_s3 = inlined_call_operand.vmem [shape: bf16[4,32,8], index: 3, kind: input, shape index: {}]   ;;  %s9722_s4 = inlined_call_operand.vmem [shape: f32[4,1,8], index: 4, kind: input, shape index: {}]   ;;  %s9723_s5 = inlined_call_operand.vmem [shape: f32[4,1,8], index: 5, kind: input, shape index: {}]   ;;  %s9724_s6 = inlined_call_operand.vmem [shape: f32[4,1,8], index: 6, kind: input, shape index: {}]   ;;  %s9725_s7 = inlined_call_operand.vmem [shape: f32[4,4,16,16], index: 7, kind: input, shape index: {}]   ;;  %s9726_s8 = inlined_call_operand.vmem [shape: bf16[4,8,32], index: 8, kind: input, shape index: {}]   ;;  %s9727_s9 = inlined_call_operand.vmem [shape: f32[1,32], index: 9, kind: input, shape index: {}]   ;;  %s9728_s10 = inlined_call_operand.vmem [shape: f32[128,32], index: 10, kind: output, shape index: {}]  }
   0x1   :  { %v7338_v0 = vld [vmem:[%s9718_s1] sm:$0xff]   ;;  %v7339_v1 = vld [vmem:[%s9718_s1 + $0x8] sm:$0xff]   ;;  %v46_v5 = vld [vmem:[%s9719_s0 + $0x50] sm:$0xff]  ;;  %vm870_vm3 = vcmask 130048   ;;  %vm2777_vm4 = vcmask 1043456  }
   0x2   :  { %7280 = vmatprep.subr.bf16.mxu1 %v7338_v0  ;;  %v44_v2 = vld [vmem:[%s9719_s0 + $0x40] sm:$0xff]  ;;  %v45_v3 = vld [vmem:[%s9719_s0 + $0x48] sm:$0xff]  ;;  %6584 = vmatprep.subr.bf16.mxu0 %v7338_v0  ;;  %v47_v6 = vld [vmem:[%s9719_s0 + $0x58] sm:$0xff] }
   0x3   :  { %7282 = vmatpush3.bf16.msra.mxu1 %v7338_v0  ;;  %v7687_v4 = vpack.c.bf16 %v45_v3, %v44_v2  ;;  %6585 = vmatpush3.bf16.msra.mxu0 %v7338_v0  ;;  %v48_v7 = vld [vmem:[%s9719_s0 + $0x60] sm:$0xff]  ;;  %v49_v8 = vld [vmem:[%s9719_s0 + $0x68] sm:$0xff]  ;;  %v7706_v10 = vpack.c.bf16 %v47_v6, %v46_v5  ;;  %v38_v14 = vld [vmem:[%s9719_s0 + $0x10] sm:$0xff] }
   0x4   :  { %7281 = vmatprep.subr.bf16.mxu1 %v7339_v1  ;;  %6586 = vmatprep.subr.bf16.mxu0 %v7339_v1  ;;  %v7340_v9 = vld [vmem:[%s9720_s2] sm:$0xff]   ;;  %v7711_v12 = vpack.c.bf16 %v49_v8, %v48_v7  ;;  %v37_v13 = vld [vmem:[%s9719_s0 + $0x8] sm:$0xff]  ;;  %v39_v15 = vld [vmem:[%s9719_s0 + $0x18] sm:$0xff] }
   0x5   :  { %6596 = vmatprep.mubr.msk.bf16.mxu1 %vm83_vm0, %v7687_v4  ;;  %v36_v11 = vld [vmem:[%s9719_s0] sm:$0xff]  ;;  %v7341_v16 = vld [vmem:[%s9720_s2 + $0x8] sm:$0xff]   ;;  %v50_v20 = vld [vmem:[%s9719_s0 + $0x70] sm:$0xff]  ;;  %v7741_v22 = vpack.c.bf16 %v39_v15, %v38_v14 }
   0x6   :  { %v7725_v17 = vpack.c.bf16 %v37_v13, %v36_v11  ;;  %v40_v18 = vld [vmem:[%s9719_s0 + $0x20] sm:$0xff]  ;;  %v41_v19 = vld [vmem:[%s9719_s0 + $0x28] sm:$0xff]  ;;  %v51_v21 = vld [vmem:[%s9719_s0 + $0x78] sm:$0xff] }
   0x7   :  { %7283 = vmatpush3.bf16.msra.mxu1 %v7339_v1  ;;  %6587 = vmatpush3.bf16.msra.mxu0 %v7339_v1  ;;  %v7747_v23 = vpack.c.bf16 %v41_v19, %v40_v18  ;;  %v42_v24 = vld [vmem:[%s9719_s0 + $0x30] sm:$0xff]  ;;  %v43_v25 = vld [vmem:[%s9719_s0 + $0x38] sm:$0xff]  ;;  %v7759_v26 = vpack.c.bf16 %v51_v21, %v50_v20  ;;  %v7342_v28 = vld [vmem:[%s9721_s3] sm:$0xff]  }
   0x8   :  { %6604 = vmatprep.subr.bf16.mxu1 %v7340_v9  ;;  %6588 = vmatprep.mubr.msk.bf16.mxu0 %vm83_vm0, %v7725_v17  ;;  %v7763_v27 = vpack.c.bf16 %v43_v25, %v42_v24  ;;  %v7343_v29 = vld [vmem:[%s9721_s3 + $0x8] sm:$0xff]   ;;  %v5999_v31 = vld [vmem:[%s9722_s4] ss:$0 sm:$0xff] }
   0x9   :  { %6624 = vmatprep.subr.bf16.mxu0 %v7342_v28 }
   0xa   :  { %6597 = vmatmul.mubr.msk.bf16.vlgmr.msra.gmra.mrb[0].mxu1 %vm83_vm0, %v7706_v10  ;;  %6589 = vmatmul.mubr.msk.bf16.vlgmr.msra.gmra.mrb[0].mxu0 %vm83_vm0, %v7741_v22 }
   0xb   :  { %6600 = vmatprep.mubr.msk.bf16.mxu1 %vm83_vm0, %v7711_v12  ;;  %6605 = vmatpush3.bf16.msra.mxu1 %v7340_v9  ;;  %v6010_v9 = vld [vmem:[%s9723_s5] ss:$0 sm:$0xff] }
   0xc   :  { %6606 = vmatprep.subr.bf16.mxu1 %v7341_v16  ;;  %6592 = vmatprep.mubr.msk.bf16.mxu0 %vm83_vm0, %v7747_v23 }
   0xd   :  { %6625 = vmatpush3.bf16.msra.mxu0 %v7342_v28 }
   0xe   :  { %6626 = vmatprep.subr.bf16.mxu0 %v7343_v29 }
   0xf   :  { %6607 = vmatpush3.bf16.msra.mxu1 %v7341_v16 }
  0x10   :  { %6644 = vmatprep.subr.bf16.mxu1 %v9729_v30 }
  0x11   :  { %6627 = vmatpush3.bf16.msra.mxu0 %v7343_v29 }
  0x12   :  { %6601 = vmatmul.mubr.msk.bf16.gmra.mrb[4].mxu1 %vm83_vm0, %v7759_v26  ;;  %6593 = vmatmul.mubr.msk.bf16.gmra.mrb[4].mxu0 %vm83_vm0, %v7763_v27 }
  0x13   :  { %6608 = vmatprep.mubr.msk.bf16.mxu1 %vm83_vm0, %v7725_v17  ;;  %6628 = vmatprep.mubr.msk.bf16.mxu0 %vm83_vm0, %v7725_v17 }
  0x14   :  { %6668 = vmatprep.subr.bf16.mxu0 %v9729_v30 }
  0x1a   :  { %6609 = vmatmul.mubr.msk.bf16.vlgmr.msra.gmra.mrb[8].mxu1 %vm83_vm0, %v7741_v22  ;;  %6629 = vmatmul.mubr.msk.bf16.vlgmr.msra.gmra.mrb[8].mxu0 %vm83_vm0, %v7741_v22 }
  0x1b   :  { %6612 = vmatprep.mubr.msk.bf16.mxu1 %vm83_vm0, %v7747_v23  ;;  %6632 = vmatprep.mubr.msk.bf16.mxu0 %vm83_vm0, %v7747_v23 }
  0x22   :  { %6613 = vmatmul.mubr.msk.bf16.gmra.mrb[12].mxu1 %vm83_vm0, %v7763_v27  ;;  %6633 = vmatmul.mubr.msk.bf16.gmra.mrb[12].mxu0 %vm83_vm0, %v7763_v27 }
  0x23   :  { %6616 = vmatprep.mubr.msk.bf16.mxu1 %vm83_vm0, %v7687_v4  ;;  %6636 = vmatprep.mubr.msk.bf16.mxu0 %vm83_vm0, %v7687_v4 }
  0x2a   :  { %6617 = vmatmul.mubr.msk.bf16.gmra.mrb[16].mxu1 %vm83_vm0, %v7706_v10  ;;  %6637 = vmatmul.mubr.msk.bf16.gmra.mrb[16].mxu0 %vm83_vm0, %v7706_v10 }
  0x2b   :  { %6620 = vmatprep.mubr.msk.bf16.mxu1 %vm83_vm0, %v7711_v12  ;;  %6640 = vmatprep.mubr.msk.bf16.mxu0 %vm83_vm0, %v7711_v12 }
  0x32   :  { %6621 = vmatmul.mubr.msk.bf16.gmra.mrb[20].mxu1 %vm83_vm0, %v7759_v26  ;;  %6641 = vmatmul.mubr.msk.bf16.gmra.mrb[20].mxu0 %vm83_vm0, %v7759_v26 }
  0x33   :  { %6646 = vmatprep.mubr.msk.bf16.mxu1 %vm7619_vm1, %v9729_v30  ;;  %6670 = vmatprep.mubr.msk.bf16.mxu0 %vm7619_vm1, %v9729_v30 }
  0xdd   :  { %v6598_v32 = vpop.f32.mrb[0].mxu1  ;;  %v6590_v35 = vpop.f32.mrb[0].mxu0 }
  0xde   :  { %v174_v33 = vpop.f32.mrb[1].mxu1  ;;  %v7814_v36 = vadd.f32 %v6598_v32, %v5999_v31  ;;  %v7818_v39 = vadd.f32 %v6590_v35, %v5999_v31  ;;  %v142_v40 = vpop.f32.mrb[1].mxu0 }
  0xdf   :  { %v6599_v34 = vpop.f32.mrb[2].mxu1  ;;  %v7820_v41 = vadd.f32 %v5999_v31, %v174_v33  ;;  %v143_v43 = vadd.f32 %v5999_v31, %v142_v40  ;;  %v6591_v44 = vpop.f32.mrb[2].mxu0 }
  0xe0   :  { %v7816_v37 = vadd.f32 %v6599_v34, %v5999_v31  ;;  %v177_v38 = vpop.f32.mrb[3].mxu1  ;;  %v7826_v46 = vadd.f32 %v6591_v44, %v5999_v31  ;;  %v145_v47 = vpop.f32.mrb[3].mxu0 }
  0xe1   :  { %v7822_v42 = vadd.f32 %v5999_v31, %v177_v38  ;;  %v146_v49 = vadd.f32 %v5999_v31, %v145_v47 }
  0xe2   :  { %v450_v45 = vpack.c.bf16 %v7816_v37, %v7814_v36  ;;  %v446_v50 = vpack.c.bf16 %v7826_v46, %v7818_v39  ;;  %v6021_v36 = vld [vmem:[%s9724_s6] ss:$0 sm:$0xff] }
  0xe3   :  { %v449_v48 = vpack.c.bf16 %v7822_v42, %v7820_v41  ;;  %v445_v52 = vpack.c.bf16 %v146_v49, %v143_v43 }
  0xe5   :  { %v6602_v51 = vpop.f32.mrb[4].mxu1  ;;  %v6594_v55 = vpop.f32.mrb[4].mxu0 }
  0xe6   :  { %v190_v53 = vpop.f32.mrb[5].mxu1  ;;  %v7832_v56 = vadd.f32 %v6602_v51, %v5999_v31  ;;  %v7836_v59 = vadd.f32 %v6594_v55, %v5999_v31  ;;  %v158_v60 = vpop.f32.mrb[5].mxu0 }
  0xe7   :  { %v6603_v54 = vpop.f32.mrb[6].mxu1  ;;  %v7838_v61 = vadd.f32 %v5999_v31, %v190_v53  ;;  %v7842_v63 = vadd.f32 %v5999_v31, %v158_v60  ;;  %v6595_v0 = vpop.f32.mrb[6].mxu0 }
  0xe8   :  { %v7834_v57 = vadd.f32 %v6603_v54, %v5999_v31  ;;  %v193_v58 = vpop.f32.mrb[7].mxu1  ;;  %v7846_v2 = vadd.f32 %v6595_v0, %v5999_v31  ;;  %v161_v3 = vpop.f32.mrb[7].mxu0 }
  0xe9   :  { %v7840_v62 = vadd.f32 %v5999_v31, %v193_v58  ;;  %v162_v6 = vadd.f32 %v5999_v31, %v161_v3 }
  0xea   :  { %v452_v1 = vpack.c.bf16 %v7834_v57, %v7832_v56  ;;  %v448_v7 = vpack.c.bf16 %v7846_v2, %v7836_v59 }
  0xeb   :  { %v451_v5 = vpack.c.bf16 %v7840_v62, %v7838_v61  ;;  %v447_v11 = vpack.c.bf16 %v162_v6, %v7842_v63 }
  0xed   :  { %v6610_v8 = vpop.f32.mrb[8].mxu1 }
  0xee   :  { %v262_v13 = vpop.f32.mrb[9].mxu1  ;;  %v271_v15 = vadd.f32 %v6610_v8, %v6010_v9 }
  0xef   :  { %v6611_v14 = vpop.f32.mrb[10].mxu1  ;;  %v263_v19 = vadd.f32 %v6010_v9, %v262_v13 }
  0xf0   :  { %v274_v16 = vadd.f32 %v6611_v14, %v6010_v9  ;;  %v265_v18 = vpop.f32.mrb[11].mxu1 }
  0xf1   :  { %v266_v20 = vadd.f32 %v6010_v9, %v265_v18 }
  0xf2   :  { %v454_v21 = vpack.c.bf16 %v274_v16, %v271_v15 }
  0xf3   :  { %v453_v24 = vpack.c.bf16 %v266_v20, %v263_v19 }
  0xf4   :  { %v521_v47 = vsel %vm469_vm2, %v454_v21, 0 }
  0xf5   :  { %v474_v25 = vsel %vm469_vm2, %v453_v24, 0  ;;  %v6614_v28 = vpop.f32.mrb[12].mxu1 }
  0xf6   :  { %6645 = vmatpush3.bf16.xpose.msra.mxu1 %v474_v25  ;;  %v287_v29 = vadd.f32 %v6614_v28, %v6010_v9  ;;  %v278_v31 = vpop.f32.mrb[13].mxu1 }
  0xf7   :  { %v279_v32 = vadd.f32 %v6010_v9, %v278_v31  ;;  %v6615_v33 = vpop.f32.mrb[14].mxu1  ;;  %6650 = vmatprep.subr.bf16.mxu1 %v9729_v30 }
  0xf8   :  { %v290_v34 = vadd.f32 %v6615_v33, %v6010_v9  ;;  %v281_v35 = vpop.f32.mrb[15].mxu1 }
  0xf9   :  { %v282_v38 = vadd.f32 %v6010_v9, %v281_v35 }
  0xfa   :  { %v456_v40 = vpack.c.bf16 %v290_v34, %v287_v29 }
  0xfb   :  { %v455_v43 = vpack.c.bf16 %v282_v38, %v279_v32 }
  0xfc   :  { %v615_v19 = vsel %vm469_vm2, %v456_v40, 0 }
  0xfd   :  { %v6618_v44 = vpop.f32.mrb[16].mxu1  ;;  %6647 = vmatmul.mubr.msk.bf16.vlgmr.msra.gmra.mrb[24].mxu1 %vm469_vm2, %v445_v52  ;;  %v568_v52 = vsel %vm469_vm2, %v455_v43, 0 }
  0xfe   :  { %v303_v49 = vadd.f32 %v6618_v44, %v6010_v9  ;;  %v294_v51 = vpop.f32.mrb[17].mxu1  ;;  %6651 = vmatpush3.bf16.xpose.msra.mxu1 %v521_v47  ;;  %6652 = vmatprep.mubr.msk.bf16.mxu1 %vm7619_vm1, %v9729_v30 }
  0xff   :  { %v295_v53 = vadd.f32 %v6010_v9, %v294_v51  ;;  %v6619_v54 = vpop.f32.mrb[18].mxu1  ;;  %6656 = vmatprep.subr.bf16.mxu1 %v9729_v30 }
 0x100   :  { %v306_v55 = vadd.f32 %v6619_v54, %v6010_v9  ;;  %v297_v58 = vpop.f32.mrb[19].mxu1 }
 0x101   :  { %v298_v60 = vadd.f32 %v6010_v9, %v297_v58 }
 0x102   :  { %v458_v63 = vpack.c.bf16 %v306_v55, %v303_v49 }
 0x103   :  { %v457_v0 = vpack.c.bf16 %v298_v60, %v295_v53 }
 0x104   :  { %v709_v41 = vsel %vm469_vm2, %v458_v63, 0 }
 0x105   :  { %v6622_v3 = vpop.f32.mrb[20].mxu1  ;;  %6653 = vmatmul.mubr.msk.bf16.vlgmr.msra.gmra.mrb[28].mxu1 %vm469_vm2, %v446_v50  ;;  %v662_v6 = vsel %vm469_vm2, %v457_v0, 0 }
 0x106   :  { %v319_v8 = vadd.f32 %v6622_v3, %v6010_v9  ;;  %v310_v13 = vpop.f32.mrb[21].mxu1  ;;  %6657 = vmatpush3.bf16.xpose.msra.mxu1 %v568_v52  ;;  %6669 = vmatpush3.bf16.xpose.msra.mxu0 %v662_v6  ;;  %v846_v6 = vld [vmem:[%s9725_s7] sm:$0xff] }
 0x107   :  { %v311_v14 = vadd.f32 %v6010_v9, %v310_v13  ;;  %v6623_v15 = vpop.f32.mrb[22].mxu1  ;;  %6658 = vmatprep.mubr.msk.bf16.mxu1 %vm7619_vm1, %v9729_v30  ;;  %6662 = vmatprep.subr.bf16.mxu1 %v9729_v30  ;;  %v7961_v13 = vld [vmem:[%s9725_s7 + $0x8] sm:$0xff] }
 0x108   :  { %v322_v16 = vadd.f32 %v6623_v15, %v6010_v9  ;;  %v313_v18 = vpop.f32.mrb[23].mxu1  ;;  %6680 = vmatprep.subr.bf16.mxu0 %v9729_v30 }
 0x109   :  { %v314_v39 = vadd.f32 %v6010_v9, %v313_v18 }
 0x10a   :  { %v460_v46 = vpack.c.bf16 %v322_v16, %v319_v8 }
 0x10b   :  { %v459_v50 = vpack.c.bf16 %v314_v39, %v311_v14 }
 0x10c   :  { %v803_v42 = vsel %vm469_vm2, %v460_v46, 0 }
 0x10d   :  { %6659 = vmatmul.mubr.msk.bf16.vlgmr.msra.gmra.mrb[32].mxu1 %vm469_vm2, %v447_v11  ;;  %6671 = vmatmul.mubr.msk.bf16.vlgmr.msra.gmra.mrb[24].mxu0 %vm469_vm2, %v449_v48  ;;  %v756_v20 = vsel %vm469_vm2, %v459_v50, 0  ;;  %v6630_v48 = vpop.f32.mrb[8].mxu0  ;;  %v848_v50 = vld [vmem:[%s9725_s7 + $0x10] sm:$0xff] }
 0x10e   :  { %6663 = vmatpush3.bf16.xpose.msra.mxu1 %v615_v19  ;;  %6681 = vmatpush3.bf16.xpose.msra.mxu0 %v756_v20  ;;  %v391_v37 = vadd.f32 %v6630_v48, %v6021_v36 }
 0x10f   :  { %6664 = vmatprep.mubr.msk.bf16.mxu1 %vm7619_vm1, %v9729_v30  ;;  %6682 = vmatprep.mubr.msk.bf16.mxu0 %vm7619_vm1, %v9729_v30 }
 0x110   :  { %6674 = vmatprep.subr.bf16.mxu1 %v9729_v30  ;;  %6692 = vmatprep.subr.bf16.mxu0 %v9729_v30 }
 0x115   :  { %6665 = vmatmul.mubr.msk.bf16.vlgmr.msra.gmra.mrb[36].mxu1 %vm469_vm2, %v448_v7  ;;  %6683 = vmatmul.mubr.msk.bf16.vlgmr.msra.gmra.mrb[28].mxu0 %vm469_vm2, %v451_v5 }
 0x116   :  { %6675 = vmatpush3.bf16.xpose.msra.mxu1 %v709_v41  ;;  %6676 = vmatprep.mubr.msk.bf16.mxu1 %vm7619_vm1, %v9729_v30  ;;  %v849_v41 = vld [vmem:[%s9725_s7 + $0x18] sm:$0xff] }
 0x117   :  { %6686 = vmatprep.subr.bf16.mxu1 %v9729_v30  ;;  %6694 = vmatprep.mubr.msk.bf16.mxu0 %vm7619_vm1, %v9729_v30 }
 0x11d   :  { %6677 = vmatmul.mubr.msk.bf16.vlgmr.msra.gmra.mrb[40].mxu1 %vm469_vm2, %v450_v45  ;;  %v382_v45 = vpop.f32.mrb[9].mxu0 }
 0x11e   :  { %6687 = vmatpush3.bf16.xpose.msra.mxu1 %v803_v42  ;;  %6688 = vmatprep.mubr.msk.bf16.mxu1 %vm7619_vm1, %v9729_v30  ;;  %v383_v59 = vadd.f32 %v6021_v36, %v382_v45  ;;  %v6631_v61 = vpop.f32.mrb[10].mxu0 }
 0x11f   :  { %6698 = vmatprep.subr.bf16.mxu1 %v9729_v30  ;;  %v394_v62 = vadd.f32 %v6631_v61, %v6021_v36  ;;  %v385_v2 = vpop.f32.mrb[11].mxu0 }
 0x120   :  { %v386_v5 = vadd.f32 %v6021_v36, %v385_v2  ;;  %v6634_v7 = vpop.f32.mrb[12].mxu0 }
 0x121   :  { %v462_v9 = vpack.c.bf16 %v394_v62, %v391_v37  ;;  %v7917_v56 = vadd.f32 %v6634_v7, %v6021_v36  ;;  %v398_v57 = vpop.f32.mrb[13].mxu0 }
 0x122   :  { %v7919_v11 = vadd.f32 %v6021_v36, %v398_v57  ;;  %v6635_v21 = vpop.f32.mrb[14].mxu0 }
 0x123   :  { %v7921_v24 = vadd.f32 %v6635_v21, %v6021_v36  ;;  %v401_v25 = vpop.f32.mrb[15].mxu0 }
 0x124   :  { %v7923_v28 = vadd.f32 %v6021_v36, %v401_v25  ;;  %v6638_v29 = vpop.f32.mrb[16].mxu0  ;;  %v852_v25 = vld [vmem:[%s9725_s7 + $0x30] sm:$0xff] }
 0x125   :  { %6689 = vmatmul.mubr.msk.bf16.vlgmr.msra.gmra.mrb[44].mxu1 %vm469_vm2, %v452_v1  ;;  %v461_v1 = vpack.c.bf16 %v386_v5, %v383_v59  ;;  %v464_v31 = vpack.c.bf16 %v7921_v24, %v7917_v56  ;;  %v7928_v32 = vadd.f32 %v6638_v29, %v6021_v36  ;;  %v414_v33 = vpop.f32.mrb[17].mxu0  ;;  %v850_v29 = vld [vmem:[%s9725_s7 + $0x20] sm:$0xff] }
 0x126   :  { %6700 = vmatprep.mubr.msk.bf16.mxu1 %vm7619_vm1, %v9729_v30  ;;  %6699 = vmatpush3.bf16.msra.mxu1 %v462_v9  ;;  %v463_v34 = vpack.c.bf16 %v7923_v28, %v7919_v11  ;;  %v7933_v35 = vadd.f32 %v6021_v36, %v414_v33  ;;  %v6639_v38 = vpop.f32.mrb[18].mxu0 }
 0x127   :  { %6693 = vmatpush3.bf16.msra.mxu0 %v461_v1  ;;  %6710 = vmatprep.subr.bf16.mxu1 %v9729_v30  ;;  %v7935_v40 = vadd.f32 %v6639_v38, %v6021_v36  ;;  %v417_v43 = vpop.f32.mrb[19].mxu0 }
 0x128   :  { %6704 = vmatprep.subr.bf16.mxu0 %v9729_v30  ;;  %v7937_v44 = vadd.f32 %v6021_v36, %v417_v43  ;;  %v6642_v47 = vpop.f32.mrb[20].mxu0  ;;  %v853_v43 = vld [vmem:[%s9725_s7 + $0x38] sm:$0xff] }
 0x129   :  { %v466_v49 = vpack.c.bf16 %v7935_v40, %v7928_v32  ;;  %v7941_v51 = vadd.f32 %v6642_v47, %v6021_v36  ;;  %v430_v53 = vpop.f32.mrb[21].mxu0 }
 0x12a   :  { %v465_v54 = vpack.c.bf16 %v7937_v44, %v7933_v35  ;;  %v7945_v55 = vadd.f32 %v6021_v36, %v430_v53  ;;  %v6643_v58 = vpop.f32.mrb[22].mxu0 }
 0x12b   :  { %v7947_v60 = vadd.f32 %v6643_v58, %v6021_v36  ;;  %v433_v63 = vpop.f32.mrb[23].mxu0 }
 0x12c   :  { %v7949_v0 = vadd.f32 %v6021_v36, %v433_v63  ;;  %v851_v63 = vld [vmem:[%s9725_s7 + $0x28] sm:$0xff] }
 0x12d   :  { %v468_v3 = vpack.c.bf16 %v7947_v60, %v7941_v51  ;;  %v7345_v60 = vld [vmem:[%s9720_s2 + $0x18] sm:$0xff]  }
 0x12e   :  { %v467_v52 = vpack.c.bf16 %v7949_v0, %v7945_v55  ;;  %v7347_v0 = vld [vmem:[%s9718_s1 + $0x18] sm:$0xff]  }
 0x1d0   :  { %v510_v8 = vpop.f32.mrb[24].mxu1 }
 0x1d1   :  { %v7963_v14 = vadd.f32 %v846_v6, %v510_v8  ;;  %v6648_v15 = vpop.f32.mrb[25].mxu1 }
 0x1d2   :  { %v513_v16 = vpop.f32.mrb[26].mxu1 }
 0x1d3   :  { %v7966_v18 = vadd.f32 %v7961_v13, %v513_v16  ;;  %v6649_v39 = vpop.f32.mrb[27].mxu1  ;;  %v871_v46 = vsel %vm870_vm3, %v7963_v14, -inf }
 0x1d4   :  { %872 = vmax.xlane.f32.xlu1 %v871_v46 }
 0x1d5   :  { %v874_v19 = vsel %vm870_vm3, %v7966_v18, -inf }
 0x1d8   :  { %875 = vmax.xlane.f32.xlu1 %v874_v19  ;;  %v557_v20 = vpop.f32.mrb[28].mxu1 }
 0x1d9   :  { %v7978_v42 = vadd.f32 %v848_v50, %v557_v20  ;;  %v6654_v48 = vpop.f32.mrb[29].mxu1 }
 0x1da   :  { %v560_v36 = vpop.f32.mrb[30].mxu1 }
 0x1db   :  { %v7980_v37 = vadd.f32 %v849_v41, %v560_v36  ;;  %v6655_v45 = vpop.f32.mrb[31].mxu1  ;;  %v877_v59 = vsel %vm870_vm3, %v7978_v42, -inf }
 0x1dc   :  { %878 = vmax.xlane.f32.xlu0 %v877_v59 }
 0x1dd   :  { %v880_v61 = vsel %vm870_vm3, %v7980_v37, -inf }
 0x1e0   :  { %v698_v62 = vpop.f32.mrb[24].mxu0  ;;  %881 = vmax.xlane.f32.xlu0 %v880_v61  ;;  %v604_v2 = vpop.f32.mrb[32].mxu1 }
 0x1e1   :  { %v6660_v5 = vpop.f32.mrb[33].mxu1  ;;  %v6672_v7 = vpop.f32.mrb[25].mxu0  ;;  %v8000_v16 = vadd.f32 %v850_v29, %v604_v2 }
 0x1e2   :  { %v607_v9 = vpop.f32.mrb[34].mxu1  ;;  %v701_v57 = vpop.f32.mrb[26].mxu0 }
 0x1e3   :  { %v6661_v1 = vpop.f32.mrb[35].mxu1  ;;  %v6673_v21 = vpop.f32.mrb[27].mxu0  ;;  %v8006_v48 = vadd.f32 %v851_v63, %v607_v9  ;;  %v883_v45 = vsel %vm870_vm3, %v8000_v16, -inf }
 0x1e4   :  { %v8016_v1 = vadd.f32 %v846_v6, %v698_v62 }
 0x1e5   :  { %v886_v5 = vsel %vm870_vm3, %v8006_v48, -inf }
 0x1e8   :  { %v651_v33 = vpop.f32.mrb[36].mxu1  ;;  %v792_v38 = vpop.f32.mrb[28].mxu0 }
 0x1e9   :  { %v7995_v47 = vadd.f32 %v852_v25, %v651_v33  ;;  %v6666_v53 = vpop.f32.mrb[37].mxu1  ;;  %v6684_v58 = vpop.f32.mrb[29].mxu0 }
 0x1ea   :  { %v654_v8 = vpop.f32.mrb[38].mxu1  ;;  %v795_v15 = vpop.f32.mrb[30].mxu0  ;;  %v8023_v53 = vadd.f32 %v7961_v13, %v701_v57  ;;  %v895_v58 = vsel %vm870_vm3, %v8016_v1, -inf }
 0x1eb   :  { %v8002_v39 = vadd.f32 %v853_v43, %v654_v8  ;;  %v6667_v46 = vpop.f32.mrb[39].mxu1  ;;  %v6685_v19 = vpop.f32.mrb[31].mxu0  ;;  %v889_v20 = vsel %vm870_vm3, %v7995_v47, -inf }
 0x1ec   :  { %890 = vmax.xlane.f32.xlu0 %v889_v20  ;;  %v898_v8 = vsel %vm870_vm3, %v8023_v53, -inf  ;;  %v8033_v19 = vadd.f32 %v850_v29, %v792_v38 }
 0x1ed   :  { %v892_v36 = vsel %vm870_vm3, %v8002_v39, -inf }
 0x1ee   :  { %893 = vmax.xlane.f32.xlu1 %v892_v36  ;;  %v8039_v36 = vadd.f32 %v851_v63, %v795_v15 }
 0x1f0   :  { %884 = vmax.xlane.f32.xlu0 %v883_v45  ;;  %v745_v59 = vpop.f32.mrb[40].mxu1  ;;  %v907_v45 = vsel %vm870_vm3, %v8033_v19, -inf  ;;  %v910_v29 = vsel %vm870_vm3, %v8039_v36, -inf }
 0x1f1   :  { %v8012_v61 = vadd.f32 %v848_v50, %v745_v59  ;;  %v6678_v2 = vpop.f32.mrb[41].mxu1 }
 0x1f2   :  { %887 = vmax.xlane.f32.xlu1 %v886_v5  ;;  %v748_v7 = vpop.f32.mrb[42].mxu1 }
 0x1f3   :  { %v8018_v9 = vadd.f32 %v849_v41, %v748_v7  ;;  %v6679_v21 = vpop.f32.mrb[43].mxu1  ;;  %v901_v33 = vsel %vm870_vm3, %v8012_v61, -inf }
 0x1f4   :  { %902 = vmax.xlane.f32.xlu0 %v901_v33 }
 0x1f5   :  { %v904_v50 = vsel %vm870_vm3, %v8018_v9, -inf }
 0x1f6   :  { %905 = vmax.xlane.f32.xlu1 %v904_v50 }
 0x1f8   :  { %896 = vmax.xlane.f32.xlu0 %v895_v58  ;;  %v839_v6 = vpop.f32.mrb[44].mxu1 }
 0x1f9   :  { %v8029_v62 = vadd.f32 %v852_v25, %v839_v6  ;;  %v6690_v41 = vpop.f32.mrb[45].mxu1 }
 0x1fa   :  { %899 = vmax.xlane.f32.xlu1 %v898_v8  ;;  %v842_v46 = vpop.f32.mrb[46].mxu1 }
 0x1fb   :  { %v8035_v13 = vadd.f32 %v853_v43, %v842_v46  ;;  %v6691_v57 = vpop.f32.mrb[47].mxu1  ;;  %v913_v20 = vsel %vm870_vm3, %v8029_v62, -inf }
 0x1fc   :  { %914 = vmax.xlane.f32.xlu0 %v913_v20 }
 0x1fd   :  { %v916_v25 = vsel %vm870_vm3, %v8035_v13, -inf }
 0x1fe   :  { %917 = vmax.xlane.f32.xlu1 %v916_v25 }
 0x200   :  { %908 = vmax.xlane.f32.xlu0 %v907_v45 }
 0x202   :  { %911 = vmax.xlane.f32.xlu1 %v910_v29 }
 0x261   :  { %v873_v38 = vpop.xlane.xlu1 %872 }
 0x262   :  { %v919_v43 = vsub.f32 %v7963_v14, %v873_v38 }
 0x264   :  { %v935_v59 = vmul.f32 1.442695, %v919_v43 }
 0x265   :  { %v876_v2 = vpop.xlane.xlu1 %875 }
 0x266   :  { %v920_v63 = vsub.f32 %v7966_v18, %v876_v2  ;;  %7362 = vpow2.f32 %v935_v59 }
 0x268   :  { %v937_v15 = vmul.f32 1.442695, %v920_v63 }
 0x269   :  { %v879_v5 = vpop.xlane.xlu0 %878 }
 0x26a   :  { %7364 = vpow2.f32 %v937_v15  ;;  %v921_v7 = vsub.f32 %v7978_v42, %v879_v5 }
 0x26c   :  { %v939_v21 = vmul.f32 1.442695, %v921_v7 }
 0x26d   :  { %v882_v33 = vpop.xlane.xlu0 %881 }
 0x26e   :  { %v922_v50 = vsub.f32 %v7980_v37, %v882_v33  ;;  %7366 = vpow2.f32 %v939_v21 }
 0x270   :  { %v941_v58 = vmul.f32 1.442695, %v922_v50  ;;  %v8051_v6 = vpop.eup %7362 }
 0x272   :  { %7368 = vpow2.f32 %v941_v58 }
 0x274   :  { %v8053_v14 = vpop.eup %7364 }
 0x275   :  { %v1015_v18 = vpack.c.bf16 %v8053_v14, %v8051_v6 }
 0x277   :  { %6695 = vmatmul.mubr.msk.bf16.vlgmr.msra.gmra.mrb[32].mxu0 %vm870_vm3, %v1015_v18 }
 0x278   :  { %6705 = vmatpush3.bf16.msra.mxu0 %v463_v34  ;;  %6706 = vmatprep.mubr.msk.bf16.mxu0 %vm7619_vm1, %v9729_v30  ;;  %v8065_v41 = vpop.eup %7366 }
 0x279   :  { %v891_v42 = vpop.xlane.xlu0 %890  ;;  %6716 = vmatprep.subr.bf16.mxu0 %v9729_v30 }
 0x27a   :  { %v925_v37 = vsub.f32 %v7995_v47, %v891_v42 }
 0x27b   :  { %v894_v8 = vpop.xlane.xlu1 %893 }
 0x27c   :  { %v8067_v46 = vpop.eup %7368  ;;  %v947_v57 = vmul.f32 1.442695, %v925_v37  ;;  %v926_v20 = vsub.f32 %v8002_v39, %v894_v8 }
 0x27d   :  { %v885_v25 = vpop.xlane.xlu0 %884  ;;  %v1016_v11 = vpack.c.bf16 %v8067_v46, %v8065_v41 }
 0x27e   :  { %v949_v28 = vmul.f32 1.442695, %v926_v20  ;;  %v923_v34 = vsub.f32 %v8000_v16, %v885_v25  ;;  %7370 = vpow2.f32 %v947_v57 }
 0x27f   :  { %6701 = vmatmul.mubr.msk.bf16.vlgmr.msra.gmra.mrb[48].mxu1 %vm870_vm3, %v1016_v11  ;;  %v888_v45 = vpop.xlane.xlu1 %887 }
 0x280   :  { %7372 = vpow2.f32 %v949_v28  ;;  %v943_v47 = vmul.f32 1.442695, %v923_v34  ;;  %6711 = vmatpush3.bf16.msra.mxu1 %v464_v31  ;;  %v924_v29 = vsub.f32 %v8006_v48, %v888_v45  ;;  %6712 = vmatprep.mubr.msk.bf16.mxu1 %vm7619_vm1, %v9729_v30  ;;  %v7349_v45 = vld [vmem:[%s9721_s3 + $0x18] sm:$0xff]  }
 0x281   :  { %v903_v39 = vpop.xlane.xlu0 %902  ;;  %6722 = vmatprep.subr.bf16.mxu1 %v9729_v30 }
 0x282   :  { %v945_v38 = vmul.f32 1.442695, %v924_v29  ;;  %v929_v16 = vsub.f32 %v8012_v61, %v903_v39  ;;  %7374 = vpow2.f32 %v943_v47 }
 0x283   :  { %v906_v43 = vpop.xlane.xlu1 %905 }
 0x284   :  { %7376 = vpow2.f32 %v945_v38  ;;  %v955_v59 = vmul.f32 1.442695, %v929_v16  ;;  %v930_v2 = vsub.f32 %v8018_v9, %v906_v43 }
 0x285   :  { %v897_v63 = vpop.xlane.xlu0 %896 }
 0x286   :  { %v957_v56 = vmul.f32 1.442695, %v930_v2  ;;  %v927_v24 = vsub.f32 %v8016_v1, %v897_v63  ;;  %7378 = vpow2.f32 %v955_v59 }
 0x287   :  { %v900_v31 = vpop.xlane.xlu1 %899 }
 0x288   :  { %7380 = vpow2.f32 %v957_v56  ;;  %v951_v48 = vmul.f32 1.442695, %v927_v24  ;;  %v928_v15 = vsub.f32 %v8023_v53, %v900_v31  ;;  %v8085_v5 = vpop.eup %7370 }
 0x289   :  { %v915_v7 = vpop.xlane.xlu0 %914 }
 0x28a   :  { %v8087_v61 = vpop.eup %7372  ;;  %v953_v21 = vmul.f32 1.442695, %v928_v15  ;;  %v933_v33 = vsub.f32 %v8029_v62, %v915_v7  ;;  %7382 = vpow2.f32 %v951_v48 }
 0x28b   :  { %v918_v9 = vpop.xlane.xlu1 %917  ;;  %v1018_v50 = vpack.c.bf16 %v8087_v61, %v8085_v5 }
 0x28c   :  { %7384 = vpow2.f32 %v953_v21  ;;  %v963_v1 = vmul.f32 1.442695, %v933_v33  ;;  %v934_v58 = vsub.f32 %v8035_v13, %v918_v9  ;;  %v8093_v18 = vpop.eup %7374 }
 0x28d   :  { %6713 = vmatmul.mubr.msk.bf16.vlgmr.msra.gmra.mrb[52].mxu1 %vm870_vm3, %v1018_v50  ;;  %v909_v53 = vpop.xlane.xlu0 %908 }
 0x28e   :  { %v8096_v42 = vpop.eup %7376  ;;  %v965_v37 = vmul.f32 1.442695, %v934_v58  ;;  %6723 = vmatpush3.bf16.msra.mxu1 %v466_v49  ;;  %v931_v62 = vsub.f32 %v8033_v19, %v909_v53  ;;  %6724 = vmatprep.mubr.msk.bf16.mxu1 %vm7619_vm1, %v9729_v30  ;;  %7386 = vpow2.f32 %v963_v1  ;;  %v7344_v19 = vld [vmem:[%s9720_s2 + $0x10] sm:$0xff]  }
 0x28f   :  { %v912_v8 = vpop.xlane.xlu1 %911  ;;  %v1017_v13 = vpack.c.bf16 %v8096_v42, %v8093_v18  ;;  %6734 = vmatprep.subr.bf16.mxu1 %v9729_v30 }
 0x290   :  { %7388 = vpow2.f32 %v965_v37  ;;  %v959_v57 = vmul.f32 1.442695, %v931_v62  ;;  %v932_v20 = vsub.f32 %v8039_v36, %v912_v8  ;;  %v8108_v25 = vpop.eup %7378 }
 0x291   :  { %6707 = vmatmul.mubr.msk.bf16.vlgmr.msra.gmra.mrb[36].mxu0 %vm870_vm3, %v1017_v13 }
 0x292   :  { %v8111_v32 = vpop.eup %7380  ;;  %v961_v40 = vmul.f32 1.442695, %v932_v20  ;;  %6717 = vmatpush3.bf16.msra.mxu0 %v465_v54  ;;  %6718 = vmatprep.mubr.msk.bf16.mxu0 %vm7619_vm1, %v9729_v30  ;;  %7390 = vpow2.f32 %v959_v57  ;;  %v7346_v54 = vld [vmem:[%s9718_s1 + $0x10] sm:$0xff]  }
 0x293   :  { %v1020_v49 = vpack.c.bf16 %v8111_v32, %v8108_v25  ;;  %6728 = vmatprep.subr.bf16.mxu0 %v9729_v30 }
 0x294   :  { %7392 = vpow2.f32 %v961_v40  ;;  %v8124_v36 = vpop.eup %7382 }
 0x295   :  { %6725 = vmatmul.mubr.msk.bf16.vlgmr.msra.gmra.mrb[56].mxu1 %vm870_vm3, %v1020_v49 }
 0x296   :  { %v8127_v35 = vpop.eup %7384  ;;  %6735 = vmatpush3.bf16.msra.mxu1 %v468_v3  ;;  %6736 = vmatprep.mubr.msk.bf16.mxu1 %vm7619_vm1, %v9729_v30 }
 0x297   :  { %v1019_v44 = vpack.c.bf16 %v8127_v35, %v8124_v36  ;;  %6760 = vmatprep.subr.bf16.mxu1 %v7344_v19 }
 0x298   :  { %v8139_v11 = vpop.eup %7386 }
 0x299   :  { %9735 = vst [vmem:[#allocation2_spill] sm:$0xff] %v8139_v11  ;;  %6719 = vmatmul.mubr.msk.bf16.vlgmr.msra.gmra.mrb[40].mxu0 %vm870_vm3, %v1019_v44 }
 0x29a   :  { %v8142_v28 = vpop.eup %7388  ;;  %6729 = vmatpush3.bf16.msra.mxu0 %v467_v52  ;;  %6730 = vmatprep.mubr.msk.bf16.mxu0 %vm7619_vm1, %v9729_v30  ;;  %v7348_v52 = vld [vmem:[%s9721_s3 + $0x10] sm:$0xff]  }
 0x29b   :  { %9736 = vst [vmem:[#allocation3_spill] sm:$0xff] %v8142_v28  ;;  %v1022_v51 = vpack.c.bf16 %v8142_v28, %v8139_v11  ;;  %6740 = vmatprep.subr.bf16.mxu0 %v7346_v54 }
 0x29c   :  { %v8154_v3 = vpop.eup %7390 }
 0x29d   :  { %9737 = vst [vmem:[#allocation4_spill] sm:$0xff] %v8154_v3  ;;  %6737 = vmatmul.mubr.msk.bf16.vlgmr.msra.gmra.mrb[60].mxu1 %vm870_vm3, %v1022_v51  ;;  %v8260_v51 = vld [vmem:[%s9723_s5 + $0x1] ss:$0 sm:$0xff] }
 0x29e   :  { %v8157_v34 = vpop.eup %7392  ;;  %6761 = vmatpush3.bf16.msra.mxu1 %v7344_v19  ;;  %6764 = vmatprep.mubr.msk.bf16.mxu1 %vm83_vm0, %v7725_v17 }
 0x29f   :  { %9738 = vst [vmem:[#allocation5_spill] sm:$0xff] %v8157_v34  ;;  %v1021_v55 = vpack.c.bf16 %v8157_v34, %v8154_v3  ;;  %6762 = vmatprep.subr.bf16.mxu1 %v7345_v60 }
 0x2a1   :  { %6731 = vmatmul.mubr.msk.bf16.vlgmr.msra.gmra.mrb[44].mxu0 %vm870_vm3, %v1021_v55 }
 0x2a2   :  { %6763 = vmatpush3.bf16.msra.mxu1 %v7345_v60  ;;  %6741 = vmatpush3.bf16.msra.mxu0 %v7346_v54 }
 0x2a3   :  { %6742 = vmatprep.subr.bf16.mxu0 %v7347_v0  ;;  %6744 = vmatprep.mubr.msk.bf16.mxu0 %vm83_vm0, %v7725_v17 }
 0x2a4   :  { %6800 = vmatprep.subr.bf16.mxu1 %v9729_v30 }
 0x2a5   :  { %6765 = vmatmul.mubr.msk.bf16.vlgmr.msra.gmra.mrb[64].mxu1 %vm83_vm0, %v7741_v22 }
 0x2a6   :  { %6743 = vmatpush3.bf16.msra.mxu0 %v7347_v0  ;;  %6768 = vmatprep.mubr.msk.bf16.mxu1 %vm83_vm0, %v7747_v23  ;;  %v8265_v0 = vld [vmem:[%s9722_s4 + $0x1] ss:$0 sm:$0xff] }
 0x2a7   :  { %6780 = vmatprep.subr.bf16.mxu0 %v7348_v52 }
 0x2a9   :  { %6745 = vmatmul.mubr.msk.bf16.vlgmr.msra.gmra.mrb[48].mxu0 %vm83_vm0, %v7741_v22 }
 0x2aa   :  { %6748 = vmatprep.mubr.msk.bf16.mxu0 %vm83_vm0, %v7747_v23  ;;  %6781 = vmatpush3.bf16.msra.mxu0 %v7348_v52 }
 0x2ab   :  { %6782 = vmatprep.subr.bf16.mxu0 %v7349_v45 }
 0x2ad   :  { %6769 = vmatmul.mubr.msk.bf16.gmra.mrb[68].mxu1 %vm83_vm0, %v7763_v27 }
 0x2ae   :  { %6772 = vmatprep.mubr.msk.bf16.mxu1 %vm83_vm0, %v7687_v4  ;;  %6783 = vmatpush3.bf16.msra.mxu0 %v7349_v45 }
 0x2af   :  { %6824 = vmatprep.subr.bf16.mxu0 %v9729_v30 }
 0x2b1   :  { %6749 = vmatmul.mubr.msk.bf16.gmra.mrb[52].mxu0 %vm83_vm0, %v7763_v27 }
 0x2b2   :  { %6752 = vmatprep.mubr.msk.bf16.mxu0 %vm83_vm0, %v7687_v4 }
 0x2b5   :  { %6773 = vmatmul.mubr.msk.bf16.gmra.mrb[72].mxu1 %vm83_vm0, %v7706_v10 }
 0x2b6   :  { %6776 = vmatprep.mubr.msk.bf16.mxu1 %vm83_vm0, %v7711_v12 }
 0x2b9   :  { %6753 = vmatmul.mubr.msk.bf16.gmra.mrb[56].mxu0 %vm83_vm0, %v7706_v10 }
 0x2ba   :  { %6756 = vmatprep.mubr.msk.bf16.mxu0 %vm83_vm0, %v7711_v12 }
 0x2bd   :  { %6777 = vmatmul.mubr.msk.bf16.gmra.mrb[76].mxu1 %vm83_vm0, %v7759_v26 }
 0x2be   :  { %6802 = vmatprep.mubr.msk.bf16.mxu1 %vm7619_vm1, %v9729_v30 }
 0x2c1   :  { %6757 = vmatmul.mubr.msk.bf16.gmra.mrb[60].mxu0 %vm83_vm0, %v7759_v26 }
 0x2c2   :  { %6784 = vmatprep.mubr.msk.bf16.mxu0 %vm83_vm0, %v7725_v17 }
 0x2c9   :  { %6785 = vmatmul.mubr.msk.bf16.vlgmr.msra.gmra.mrb[64].mxu0 %vm83_vm0, %v7741_v22 }
 0x2ca   :  { %6788 = vmatprep.mubr.msk.bf16.mxu0 %vm83_vm0, %v7747_v23 }
 0x2d1   :  { %6789 = vmatmul.mubr.msk.bf16.gmra.mrb[68].mxu0 %vm83_vm0, %v7763_v27 }
 0x2d2   :  { %6792 = vmatprep.mubr.msk.bf16.mxu0 %vm83_vm0, %v7687_v4 }
 0x2d9   :  { %6793 = vmatmul.mubr.msk.bf16.gmra.mrb[72].mxu0 %vm83_vm0, %v7706_v10 }
 0x2da   :  { %6796 = vmatprep.mubr.msk.bf16.mxu0 %vm83_vm0, %v7711_v12 }
 0x2e1   :  { %6797 = vmatmul.mubr.msk.bf16.gmra.mrb[76].mxu0 %vm83_vm0, %v7759_v26 }
 0x2e2   :  { %6826 = vmatprep.mubr.msk.bf16.mxu0 %vm7619_vm1, %v9729_v30 }
 0x34a   :  { %v8225_v47 = vpop.f32.mrb[32].mxu0 }
 0x34b   :  { %9739 = vst [vmem:[#allocation6_spill] sm:$0xff] %v8225_v47  ;;  %v6696_v29 = vpop.f32.mrb[33].mxu0 }
 0x34c   :  { %v8227_v39 = vpop.f32.mrb[34].mxu0 }
 0x34d   :  { %9740 = vst [vmem:[#allocation7_spill] sm:$0xff] %v8227_v39  ;;  %v6697_v38 = vpop.f32.mrb[35].mxu0 }
 0x352   :  { %v8229_v16 = vpop.f32.mrb[48].mxu1 }
 0x353   :  { %9741 = vst [vmem:[#allocation8_spill] sm:$0xff] %v8229_v16  ;;  %v6702_v43 = vpop.f32.mrb[49].mxu1 }
 0x354   :  { %v8231_v59 = vpop.f32.mrb[50].mxu1 }
 0x355   :  { %9742 = vst [vmem:[#allocation9_spill] sm:$0xff] %v8231_v59  ;;  %v6703_v2 = vpop.f32.mrb[51].mxu1 }
 0x360   :  { %v8233_v63 = vpop.f32.mrb[52].mxu1 }
 0x361   :  { %9743 = vst [vmem:[#allocation10_spill] sm:$0xff] %v8233_v63  ;;  %v6714_v56 = vpop.f32.mrb[53].mxu1 }
 0x362   :  { %v8235_v24 = vpop.f32.mrb[54].mxu1 }
 0x363   :  { %9744 = vst [vmem:[#allocation11_spill] sm:$0xff] %v8235_v24  ;;  %v6715_v31 = vpop.f32.mrb[55].mxu1 }
 0x364   :  { %v8237_v48 = vpop.f32.mrb[36].mxu0 }
 0x365   :  { %9745 = vst [vmem:[#allocation12_spill] sm:$0xff] %v8237_v48  ;;  %v6708_v15 = vpop.f32.mrb[37].mxu0 }
 0x366   :  { %v8239_v7 = vpop.f32.mrb[38].mxu0 }
 0x367   :  { %9746 = vst [vmem:[#allocation13_spill] sm:$0xff] %v8239_v7  ;;  %v6709_v21 = vpop.f32.mrb[39].mxu0 }
 0x368   :  { %v8241_v33 = vpop.f32.mrb[56].mxu1 }
 0x369   :  { %9747 = vst [vmem:[#allocation14_spill] sm:$0xff] %v8241_v33  ;;  %v6726_v9 = vpop.f32.mrb[57].mxu1 }
 0x36a   :  { %v8243_v50 = vpop.f32.mrb[58].mxu1 }
 0x36b   :  { %9748 = vst [vmem:[#allocation15_spill] sm:$0xff] %v8243_v50  ;;  %v6727_v1 = vpop.f32.mrb[59].mxu1 }
 0x36c   :  { %v8245_v58 = vpop.f32.mrb[40].mxu0 }
 0x36d   :  { %9749 = vst [vmem:[#allocation16_spill] sm:$0xff] %v8245_v58  ;;  %v6720_v53 = vpop.f32.mrb[41].mxu0 }
 0x36e   :  { %v8247_v37 = vpop.f32.mrb[42].mxu0 }
 0x36f   :  { %9750 = vst [vmem:[#allocation17_spill] sm:$0xff] %v8247_v37  ;;  %v6721_v62 = vpop.f32.mrb[43].mxu0 }
 0x370   :  { %v8249_v8 = vpop.f32.mrb[60].mxu1 }
 0x371   :  { %9751 = vst [vmem:[#allocation18_spill] sm:$0xff] %v8249_v8  ;;  %v6738_v13 = vpop.f32.mrb[61].mxu1 }
 0x372   :  { %v8251_v57 = vpop.f32.mrb[62].mxu1 }
 0x373   :  { %9752 = vst [vmem:[#allocation19_spill] sm:$0xff] %v8251_v57  ;;  %v6739_v20 = vpop.f32.mrb[63].mxu1 }
 0x374   :  { %v8253_v40 = vpop.f32.mrb[44].mxu0 }
 0x375   :  { %9753 = vst [vmem:[#allocation20_spill] sm:$0xff] %v8253_v40  ;;  %v6732_v49 = vpop.f32.mrb[45].mxu0 }
 0x376   :  { %v8255_v19 = vpop.f32.mrb[46].mxu0 }
 0x377   :  { %9754 = vst [vmem:[#allocation21_spill] sm:$0xff] %v8255_v19  ;;  %v6733_v44 = vpop.f32.mrb[47].mxu0 }
 0x378   :  { %v6766_v54 = vpop.f32.mrb[64].mxu1 }
 0x379   :  { %v1597_v60 = vpop.f32.mrb[65].mxu1  ;;  %v1606_v52 = vadd.f32 %v6766_v54, %v8260_v51 }
 0x37a   :  { %v6767_v55 = vpop.f32.mrb[66].mxu1  ;;  %v1598_v38 = vadd.f32 %v8260_v51, %v1597_v60 }
 0x37b   :  { %v1609_v45 = vadd.f32 %v6767_v55, %v8260_v51  ;;  %v1600_v29 = vpop.f32.mrb[67].mxu1 }
 0x37c   :  { %v1601_v43 = vadd.f32 %v8260_v51, %v1600_v29  ;;  %v6746_v2 = vpop.f32.mrb[48].mxu0 }
 0x37d   :  { %v1791_v56 = vpack.c.bf16 %v1609_v45, %v1606_v52  ;;  %v1484_v31 = vadd.f32 %v6746_v2, %v8265_v0  ;;  %v1475_v15 = vpop.f32.mrb[49].mxu0 }
 0x37e   :  { %v1790_v21 = vpack.c.bf16 %v1601_v43, %v1598_v38  ;;  %v1476_v9 = vadd.f32 %v8265_v0, %v1475_v15  ;;  %v6747_v1 = vpop.f32.mrb[50].mxu0 }
 0x37f   :  { %v1487_v53 = vadd.f32 %v6747_v1, %v8265_v0  ;;  %v1478_v62 = vpop.f32.mrb[51].mxu0 }
 0x380   :  { %v1479_v13 = vadd.f32 %v8265_v0, %v1478_v62  ;;  %v1810_v20 = vsel %vm469_vm2, %v1790_v21, 0  ;;  %v6770_v49 = vpop.f32.mrb[68].mxu1 }
 0x381   :  { %v1783_v44 = vpack.c.bf16 %v1487_v53, %v1484_v31  ;;  %6801 = vmatpush3.bf16.xpose.msra.mxu1 %v1810_v20  ;;  %v8277_v54 = vadd.f32 %v6770_v49, %v8260_v51  ;;  %v1613_v60 = vpop.f32.mrb[69].mxu1  ;;  %v1857_v20 = vsel %vm469_vm2, %v1791_v56, 0 }
 0x382   :  { %v1782_v55 = vpack.c.bf16 %v1479_v13, %v1476_v9  ;;  %v1614_v52 = vadd.f32 %v8260_v51, %v1613_v60  ;;  %v6771_v45 = vpop.f32.mrb[70].mxu1  ;;  %6806 = vmatprep.subr.bf16.mxu1 %v9729_v30 }
 0x383   :  { %v8282_v29 = vadd.f32 %v6771_v45, %v8260_v51  ;;  %v1616_v38 = vpop.f32.mrb[71].mxu1 }
 0x384   :  { %v1617_v43 = vadd.f32 %v8260_v51, %v1616_v38  ;;  %v6750_v2 = vpop.f32.mrb[52].mxu0 }
 0x385   :  { %v1793_v31 = vpack.c.bf16 %v8282_v29, %v8277_v54  ;;  %v8288_v15 = vadd.f32 %v6750_v2, %v8265_v0  ;;  %v1491_v21 = vpop.f32.mrb[53].mxu0 }
 0x386   :  { %v1792_v9 = vpack.c.bf16 %v1617_v43, %v1614_v52  ;;  %v1492_v1 = vadd.f32 %v8265_v0, %v1491_v21  ;;  %v6751_v53 = vpop.f32.mrb[54].mxu0 }
 0x387   :  { %v8292_v62 = vadd.f32 %v6751_v53, %v8265_v0  ;;  %v1494_v13 = vpop.f32.mrb[55].mxu0 }
 0x388   :  { %6803 = vmatmul.mubr.msk.bf16.vlgmr.msra.gmra.mrb[80].mxu1 %vm469_vm2, %v1782_v55  ;;  %v1495_v49 = vadd.f32 %v8265_v0, %v1494_v13  ;;  %v6774_v60 = vpop.f32.mrb[72].mxu1 }
 0x389   :  { %6807 = vmatpush3.bf16.xpose.msra.mxu1 %v1857_v20  ;;  %v1785_v54 = vpack.c.bf16 %v8292_v62, %v8288_v15  ;;  %6808 = vmatprep.mubr.msk.bf16.mxu1 %vm7619_vm1, %v9729_v30  ;;  %v1638_v52 = vadd.f32 %v6774_v60, %v8260_v51  ;;  %v1629_v45 = vpop.f32.mrb[73].mxu1 }
 0x38a   :  { %v1784_v29 = vpack.c.bf16 %v1495_v49, %v1492_v1  ;;  %6812 = vmatprep.subr.bf16.mxu1 %v9729_v30  ;;  %v1630_v55 = vadd.f32 %v8260_v51, %v1629_v45  ;;  %v6775_v38 = vpop.f32.mrb[74].mxu1  ;;  %v1904_v45 = vsel %vm469_vm2, %v1792_v9, 0 }
 0x38b   :  { %v1641_v56 = vadd.f32 %v6775_v38, %v8260_v51  ;;  %v1632_v43 = vpop.f32.mrb[75].mxu1 }
 0x38c   :  { %v1633_v2 = vadd.f32 %v8260_v51, %v1632_v43  ;;  %v6754_v21 = vpop.f32.mrb[56].mxu0 }
 0x38d   :  { %v1795_v53 = vpack.c.bf16 %v1641_v56, %v1638_v52  ;;  %v1516_v15 = vadd.f32 %v6754_v21, %v8265_v0  ;;  %v1507_v62 = vpop.f32.mrb[57].mxu0  ;;  %v9755_v52 = vmov 0.0  }
 0x38e   :  { %v1794_v13 = vpack.c.bf16 %v1633_v2, %v1630_v55  ;;  %v1508_v20 = vadd.f32 %v8265_v0, %v1507_v62  ;;  %v6755_v60 = vpop.f32.mrb[58].mxu0 }
 0x38f   :  { %v1519_v1 = vadd.f32 %v6755_v60, %v8265_v0  ;;  %v1510_v49 = vpop.f32.mrb[59].mxu0 }
 0x390   :  { %6809 = vmatmul.mubr.msk.bf16.vlgmr.msra.gmra.mrb[84].mxu1 %vm469_vm2, %v1783_v44  ;;  %v6778_v38 = vpop.f32.mrb[76].mxu1  ;;  %v1998_v30 = vsel %vm469_vm2, %v1794_v13, 0  ;;  %v1511_v43 = vadd.f32 %v8265_v0, %v1510_v49 }
 0x391   :  { %6813 = vmatpush3.bf16.xpose.msra.mxu1 %v1904_v45  ;;  %6814 = vmatprep.mubr.msk.bf16.mxu1 %vm7619_vm1, %v9755_v52  ;;  %v1654_v55 = vadd.f32 %v6778_v38, %v8260_v51  ;;  %v1645_v56 = vpop.f32.mrb[77].mxu1  ;;  %v1787_v2 = vpack.c.bf16 %v1519_v1, %v1516_v15 }
 0x392   :  { %6818 = vmatprep.subr.bf16.mxu1 %v9755_v52  ;;  %v1646_v21 = vadd.f32 %v8260_v51, %v1645_v56  ;;  %6825 = vmatpush3.bf16.xpose.msra.mxu0 %v1998_v30  ;;  %v6779_v44 = vpop.f32.mrb[78].mxu1  ;;  %v1786_v9 = vpack.c.bf16 %v1511_v43, %v1508_v20  ;;  %v1951_v20 = vsel %vm469_vm2, %v1793_v31, 0 }
 0x393   :  { %v1657_v62 = vadd.f32 %v6779_v44, %v8260_v51  ;;  %v1648_v13 = vpop.f32.mrb[79].mxu1  ;;  %6836 = vmatprep.subr.bf16.mxu0 %v9755_v52 }
 0x394   :  { %v1649_v60 = vadd.f32 %v8260_v51, %v1648_v13  ;;  %v6758_v49 = vpop.f32.mrb[60].mxu0 }
 0x395   :  { %v1797_v45 = vpack.c.bf16 %v1657_v62, %v1654_v55  ;;  %v1532_v38 = vadd.f32 %v6758_v49, %v8265_v0  ;;  %v1523_v57 = vpop.f32.mrb[61].mxu0 }
 0x396   :  { %v1796_v15 = vpack.c.bf16 %v1649_v60, %v1646_v21  ;;  %v1524_v1 = vadd.f32 %v8265_v0, %v1523_v57  ;;  %v6759_v8 = vpop.f32.mrb[62].mxu0 }
 0x397   :  { %v1535_v30 = vadd.f32 %v6759_v8, %v8265_v0  ;;  %v1526_v56 = vpop.f32.mrb[63].mxu0  ;;  %v2045_v8 = vsel %vm469_vm2, %v1795_v53, 0 }
 0x398   :  { %6815 = vmatmul.mubr.msk.bf16.vlgmr.msra.gmra.mrb[88].mxu1 %vm469_vm2, %v1784_v29  ;;  %v2092_v43 = vsel %vm469_vm2, %v1796_v15, 0  ;;  %v1527_v51 = vadd.f32 %v8265_v0, %v1526_v56  ;;  %v2139_v0 = vsel %vm469_vm2, %v1797_v45, 0 }
 0x399   :  { %6819 = vmatpush3.bf16.xpose.msra.mxu1 %v1951_v20  ;;  %6820 = vmatprep.mubr.msk.bf16.mxu1 %vm7619_vm1, %v9755_v52  ;;  %v1789_v55 = vpack.c.bf16 %v1535_v30, %v1532_v38 }
 0x39a   :  { %6830 = vmatprep.subr.bf16.mxu1 %v9755_v52  ;;  %6827 = vmatmul.mubr.msk.bf16.vlgmr.msra.gmra.mrb[80].mxu0 %vm469_vm2, %v1786_v9  ;;  %v1788_v57 = vpack.c.bf16 %v1527_v51, %v1524_v1 }
 0x39b   :  { %6837 = vmatpush3.bf16.xpose.msra.mxu0 %v2092_v43  ;;  %6838 = vmatprep.mubr.msk.bf16.mxu0 %vm7619_vm1, %v9755_v52 }
 0x39c   :  { %6848 = vmatprep.subr.bf16.mxu0 %v9755_v52  ;;  %v6786_v31 = vpop.f32.mrb[64].mxu0 }
 0x39d   :  { %v1719_v53 = vpop.f32.mrb[65].mxu0 }
 0x39e   :  { %v6787_v21 = vpop.f32.mrb[66].mxu0 }
 0x39f   :  { %v1722_v9 = vpop.f32.mrb[67].mxu0 }
 0x3a0   :  { %6821 = vmatmul.mubr.msk.bf16.vlgmr.msra.gmra.mrb[92].mxu1 %vm469_vm2, %v1785_v54  ;;  %v6085_v54 = vld [vmem:[%s9724_s6 + $0x1] ss:$0 sm:$0xff] }
 0x3a1   :  { %6831 = vmatpush3.bf16.xpose.msra.mxu1 %v2045_v8  ;;  %6832 = vmatprep.mubr.msk.bf16.mxu1 %vm7619_vm1, %v9755_v52  ;;  %v1728_v29 = vadd.f32 %v6786_v31, %v6085_v54  ;;  %v1731_v44 = vadd.f32 %v6787_v21, %v6085_v54  ;;  %v1723_v62 = vadd.f32 %v6085_v54, %v1722_v9 }
 0x3a2   :  { %6842 = vmatprep.subr.bf16.mxu1 %v9755_v52  ;;  %6839 = vmatmul.mubr.msk.bf16.vlgmr.msra.gmra.mrb[84].mxu0 %vm469_vm2, %v1788_v57 }
 0x3a3   :  { %6850 = vmatprep.mubr.msk.bf16.mxu0 %vm7619_vm1, %v9755_v52  ;;  %v1799_v13 = vpack.c.bf16 %v1731_v44, %v1728_v29 }
 0x3a4   :  { %v6790_v49 = vpop.f32.mrb[68].mxu0 }
 0x3a5   :  { %v8355_v45 = vadd.f32 %v6790_v49, %v6085_v54  ;;  %v1735_v38 = vpop.f32.mrb[69].mxu0 }
 0x3a6   :  { %v8358_v15 = vadd.f32 %v6085_v54, %v1735_v38  ;;  %v6791_v1 = vpop.f32.mrb[70].mxu0 }
 0x3a7   :  { %v8360_v30 = vadd.f32 %v6791_v1, %v6085_v54  ;;  %v1738_v56 = vpop.f32.mrb[71].mxu0 }
 0x3a8   :  { %6833 = vmatmul.mubr.msk.bf16.vlgmr.msra.gmra.mrb[96].mxu1 %vm469_vm2, %v1787_v2  ;;  %v1720_v2 = vadd.f32 %v6085_v54, %v1719_v53  ;;  %v8362_v20 = vadd.f32 %v6085_v54, %v1738_v56 }
 0x3a9   :  { %6843 = vmatpush3.bf16.xpose.msra.mxu1 %v2139_v0  ;;  %6844 = vmatprep.mubr.msk.bf16.mxu1 %vm7619_vm1, %v9755_v52 }
 0x3aa   :  { %6854 = vmatprep.subr.bf16.mxu1 %v9755_v52  ;;  %v1798_v60 = vpack.c.bf16 %v1723_v62, %v1720_v2 }
 0x3ac   :  { %6849 = vmatpush3.bf16.msra.mxu0 %v1798_v60 }
 0x3ad   :  { %6860 = vmatprep.subr.bf16.mxu0 %v9755_v52 }
 0x3b0   :  { %6845 = vmatmul.mubr.msk.bf16.vlgmr.msra.gmra.mrb[100].mxu1 %vm469_vm2, %v1789_v55  ;;  %v6794_v55 = vpop.f32.mrb[72].mxu0 }
 0x3b1   :  { %6856 = vmatprep.mubr.msk.bf16.mxu1 %vm7619_vm1, %v9755_v52  ;;  %6855 = vmatpush3.bf16.msra.mxu1 %v1799_v13  ;;  %v8368_v57 = vadd.f32 %v6794_v55, %v6085_v54  ;;  %v1751_v8 = vpop.f32.mrb[73].mxu0 }
 0x3b2   :  { %6866 = vmatprep.subr.bf16.mxu1 %v9755_v52  ;;  %v8370_v0 = vadd.f32 %v6085_v54, %v1751_v8  ;;  %v6795_v31 = vpop.f32.mrb[74].mxu0 }
 0x3b3   :  { %v8372_v29 = vadd.f32 %v6795_v31, %v6085_v54  ;;  %v1754_v53 = vpop.f32.mrb[75].mxu0 }
 0x3b4   :  { %v8374_v2 = vadd.f32 %v6085_v54, %v1754_v53  ;;  %v6798_v21 = vpop.f32.mrb[76].mxu0 }
 0x3b5   :  { %v8378_v9 = vadd.f32 %v6798_v21, %v6085_v54  ;;  %v1767_v62 = vpop.f32.mrb[77].mxu0 }
 0x3b6   :  { %v8382_v60 = vadd.f32 %v6085_v54, %v1767_v62  ;;  %v6799_v49 = vpop.f32.mrb[78].mxu0  ;;  %v6106_v62 = vld [vmem:[%s9725_s7 + $0x50] sm:$0xff] }
 0x3b7   :  { %v8384_v38 = vadd.f32 %v6799_v49, %v6085_v54  ;;  %v1770_v1 = vpop.f32.mrb[79].mxu0  ;;  %v6104_v49 = vld [vmem:[%s9725_s7 + $0x40] sm:$0xff] }
 0x3b8   :  { %v8386_v56 = vadd.f32 %v6085_v54, %v1770_v1  ;;  %v6107_v1 = vld [vmem:[%s9725_s7 + $0x58] sm:$0xff] }
 0x45b   :  { %v1846_v31 = vpop.f32.mrb[80].mxu1 }
 0x45c   :  { %v6804_v53 = vpop.f32.mrb[81].mxu1  ;;  %v8406_v13 = vadd.f32 %v6104_v49, %v1846_v31 }
 0x45d   :  { %v1849_v21 = vpop.f32.mrb[82].mxu1 }
 0x45e   :  { %v6805_v44 = vpop.f32.mrb[83].mxu1 }
 0x45f   :  { %v6105_v44 = vld [vmem:[%s9725_s7 + $0x48] sm:$0xff] }
 0x460   :  { %v8412_v40 = vadd.f32 %v6105_v44, %v1849_v21 }
 0x463   :  { %v1893_v54 = vpop.f32.mrb[84].mxu1 }
 0x464   :  { %v8401_v55 = vadd.f32 %v6106_v62, %v1893_v54  ;;  %v6810_v8 = vpop.f32.mrb[85].mxu1 }
 0x465   :  { %v1896_v53 = vpop.f32.mrb[86].mxu1  ;;  %v2207_v8 = vsel %vm870_vm3, %v8406_v13, -inf }
 0x466   :  { %v8408_v51 = vadd.f32 %v6107_v1, %v1896_v53  ;;  %v6811_v43 = vpop.f32.mrb[87].mxu1  ;;  %v2213_v19 = vsel %vm870_vm3, %v8401_v55, -inf  ;;  %v2210_v53 = vsel %vm870_vm3, %v8412_v40, -inf }
 0x467   :  { %2214 = vmax.xlane.f32.xlu0 %v2213_v19 }
 0x468   :  { %v2216_v54 = vsel %vm870_vm3, %v8408_v51, -inf }
 0x469   :  { %2217 = vmax.xlane.f32.xlu1 %v2216_v54  ;;  %v6110_v54 = vld [vmem:[%s9725_s7 + $0x70] sm:$0xff] }
 0x46b   :  { %2208 = vmax.xlane.f32.xlu0 %v2207_v8  ;;  %v1940_v50 = vpop.f32.mrb[88].mxu1  ;;  %v6108_v8 = vld [vmem:[%s9725_s7 + $0x60] sm:$0xff] }
 0x46c   :  { %v6816_v31 = vpop.f32.mrb[89].mxu1  ;;  %v8434_v7 = vadd.f32 %v6108_v8, %v1940_v50 }
 0x46d   :  { %2211 = vmax.xlane.f32.xlu1 %v2210_v53  ;;  %v1943_v43 = vpop.f32.mrb[90].mxu1  ;;  %v2034_v33 = vpop.f32.mrb[80].mxu0  ;;  %v6111_v31 = vld [vmem:[%s9725_s7 + $0x78] sm:$0xff] }
 0x46e   :  { %v6817_v37 = vpop.f32.mrb[91].mxu1  ;;  %v6828_v19 = vpop.f32.mrb[81].mxu0  ;;  %v2219_v50 = vsel %vm870_vm3, %v8434_v7, -inf }
 0x46f   :  { %v2037_v21 = vpop.f32.mrb[82].mxu0 }
 0x470   :  { %v6829_v58 = vpop.f32.mrb[83].mxu0 }
 0x471   :  { %v6109_v58 = vld [vmem:[%s9725_s7 + $0x68] sm:$0xff] }
 0x473   :  { %v1987_v24 = vpop.f32.mrb[92].mxu1 }
 0x474   :  { %v8429_v53 = vadd.f32 %v6110_v54, %v1987_v24  ;;  %v6822_v63 = vpop.f32.mrb[93].mxu1  ;;  %v8440_v24 = vadd.f32 %v6109_v58, %v1943_v43  ;;  %v8450_v43 = vadd.f32 %v6104_v49, %v2034_v33 }
 0x475   :  { %v1990_v37 = vpop.f32.mrb[94].mxu1  ;;  %v2128_v19 = vpop.f32.mrb[84].mxu0 }
 0x476   :  { %v8436_v48 = vadd.f32 %v6111_v31, %v1990_v37  ;;  %v6823_v59 = vpop.f32.mrb[95].mxu1  ;;  %v2225_v16 = vsel %vm870_vm3, %v8429_v53, -inf  ;;  %v6840_v39 = vpop.f32.mrb[85].mxu0 }
 0x477   :  { %2226 = vmax.xlane.f32.xlu0 %v2225_v16  ;;  %v2131_v47 = vpop.f32.mrb[86].mxu0  ;;  %v2222_v39 = vsel %vm870_vm3, %v8440_v24, -inf }
 0x478   :  { %v2228_v63 = vsel %vm870_vm3, %v8436_v48, -inf  ;;  %v6841_v28 = vpop.f32.mrb[87].mxu0 }
 0x479   :  { %2229 = vmax.xlane.f32.xlu1 %v2228_v63  ;;  %v8456_v63 = vadd.f32 %v6105_v44, %v2037_v21 }
 0x47b   :  { %2220 = vmax.xlane.f32.xlu0 %v2219_v50  ;;  %v2081_v37 = vpop.f32.mrb[96].mxu1  ;;  %v2231_v50 = vsel %vm870_vm3, %v8450_v43, -inf }
 0x47c   :  { %v8446_v11 = vadd.f32 %v6106_v62, %v2081_v37  ;;  %v6834_v59 = vpop.f32.mrb[97].mxu1 }
 0x47d   :  { %2223 = vmax.xlane.f32.xlu1 %v2222_v39  ;;  %v2084_v16 = vpop.f32.mrb[98].mxu1  ;;  %v8466_v59 = vadd.f32 %v6108_v8, %v2128_v19 }
 0x47e   :  { %v8452_v34 = vadd.f32 %v6107_v1, %v2084_v16  ;;  %v6835_v3 = vpop.f32.mrb[99].mxu1  ;;  %v2237_v28 = vsel %vm870_vm3, %v8446_v11, -inf  ;;  %v8472_v16 = vadd.f32 %v6109_v58, %v2131_v47 }
 0x47f   :  { %2238 = vmax.xlane.f32.xlu0 %v2237_v28  ;;  %v2234_v3 = vsel %vm870_vm3, %v8456_v63, -inf  ;;  %v2243_v28 = vsel %vm870_vm3, %v8466_v59, -inf }
 0x480   :  { %v2240_v62 = vsel %vm870_vm3, %v8452_v34, -inf  ;;  %v2246_v8 = vsel %vm870_vm3, %v8472_v16, -inf }
 0x481   :  { %2241 = vmax.xlane.f32.xlu1 %v2240_v62 }
 0x483   :  { %2232 = vmax.xlane.f32.xlu0 %v2231_v50  ;;  %v2175_v37 = vpop.f32.mrb[100].mxu1 }
 0x484   :  { %v8462_v33 = vadd.f32 %v6110_v54, %v2175_v37  ;;  %v6846_v49 = vpop.f32.mrb[101].mxu1 }
 0x485   :  { %2235 = vmax.xlane.f32.xlu1 %v2234_v3  ;;  %v2178_v1 = vpop.f32.mrb[102].mxu1 }
 0x486   :  { %v8468_v44 = vadd.f32 %v6111_v31, %v2178_v1  ;;  %v6847_v21 = vpop.f32.mrb[103].mxu1  ;;  %v2249_v39 = vsel %vm870_vm3, %v8462_v33, -inf }
 0x487   :  { %2250 = vmax.xlane.f32.xlu0 %v2249_v39 }
 0x488   :  { %v2252_v54 = vsel %vm870_vm3, %v8468_v44, -inf }
 0x489   :  { %2253 = vmax.xlane.f32.xlu1 %v2252_v54 }
 0x48b   :  { %2244 = vmax.xlane.f32.xlu0 %v2243_v28 }
 0x48d   :  { %2247 = vmax.xlane.f32.xlu1 %v2246_v8 }
 0x4f4   :  { %v2215_v31 = vpop.xlane.xlu0 %2214 }
 0x4f5   :  { %v2257_v19 = vsub.f32 %v8401_v55, %v2215_v31 }
 0x4f6   :  { %v2218_v62 = vpop.xlane.xlu1 %2217 }
 0x4f7   :  { %v2275_v50 = vmul.f32 1.442695, %v2257_v19  ;;  %v2258_v47 = vsub.f32 %v8408_v51, %v2218_v62 }
 0x4f8   :  { %v2209_v58 = vpop.xlane.xlu0 %2208 }
 0x4f9   :  { %v2277_v37 = vmul.f32 1.442695, %v2258_v47  ;;  %v2255_v49 = vsub.f32 %v8406_v13, %v2209_v58  ;;  %7394 = vpow2.f32 %v2275_v50 }
 0x4fa   :  { %v2212_v3 = vpop.xlane.xlu1 %2211 }
 0x4fb   :  { %7396 = vpow2.f32 %v2277_v37  ;;  %v2271_v1 = vmul.f32 1.442695, %v2255_v49  ;;  %v2256_v21 = vsub.f32 %v8412_v40, %v2212_v3  ;;  %v9756_v37 = vpack.c.bf16 %v8360_v30, %v8355_v45 }
 0x4fd   :  { %7398 = vpow2.f32 %v2271_v1  ;;  %v2273_v39 = vmul.f32 1.442695, %v2256_v21 }
 0x4ff   :  { %7400 = vpow2.f32 %v2273_v39  ;;  %v9757_v39 = vpack.c.bf16 %v8362_v20, %v8358_v15 }
 0x503   :  { %v7395_v54 = vpop.eup %7394 }
 0x504   :  { %v2227_v28 = vpop.xlane.xlu0 %2226 }
 0x505   :  { %v7397_v55 = vpop.eup %7396  ;;  %v2261_v8 = vsub.f32 %v8429_v53, %v2227_v28 }
 0x506   :  { %v2230_v31 = vpop.xlane.xlu1 %2229  ;;  %v2352_v51 = vpack.c.bf16 %v7397_v55, %v7395_v54 }
 0x507   :  { %v7399_v19 = vpop.eup %7398  ;;  %v2283_v62 = vmul.f32 1.442695, %v2261_v8  ;;  %v2262_v13 = vsub.f32 %v8436_v48, %v2230_v31  ;;  %v2312_v31 = vsel %vm870_vm3, %v7397_v55, 0.0 }
 0x508   :  { %6857 = vmatmul.mubr.msk.bf16.vlgmr.msra.gmra.mrb[104].mxu1 %vm870_vm3, %v2352_v51  ;;  %v2221_v50 = vpop.xlane.xlu0 %2220  ;;  %v2303_v47 = vsel %vm870_vm3, %v7399_v19, 0.0 }
 0x509   :  { %v7401_v40 = vpop.eup %7400  ;;  %v2285_v58 = vmul.f32 1.442695, %v2262_v13  ;;  %6867 = vmatpush3.bf16.msra.mxu1 %v9756_v37  ;;  %v2259_v49 = vsub.f32 %v8434_v7, %v2221_v50  ;;  %2304 = vadd.xlane.f32.xlu0 %v2303_v47  ;;  %7402 = vpow2.f32 %v2283_v62  ;;  %v2309_v7 = vsel %vm870_vm3, %v7395_v54, 0.0 }
 0x50a   :  { %v2224_v53 = vpop.xlane.xlu1 %2223  ;;  %v2306_v3 = vsel %vm870_vm3, %v7401_v40, 0.0  ;;  %v2351_v1 = vpack.c.bf16 %v7401_v40, %v7399_v19  ;;  %6868 = vmatprep.mubr.msk.bf16.mxu1 %vm7619_vm1, %v9755_v52  ;;  %6878 = vmatprep.subr.bf16.mxu1 %v9755_v52 }
 0x50b   :  { %7404 = vpow2.f32 %v2285_v58  ;;  %v2279_v48 = vmul.f32 1.442695, %v2259_v49  ;;  %v2260_v21 = vsub.f32 %v8440_v24, %v2224_v53  ;;  %2307 = vadd.xlane.f32.xlu1 %v2306_v3 }
 0x50c   :  { %6851 = vmatmul.mubr.msk.bf16.vlgmr.msra.gmra.mrb[88].mxu0 %vm870_vm3, %v2351_v1  ;;  %v2239_v45 = vpop.xlane.xlu0 %2238 }
 0x50d   :  { %7406 = vpow2.f32 %v2279_v48  ;;  %v2281_v30 = vmul.f32 1.442695, %v2260_v21  ;;  %6861 = vmatpush3.bf16.msra.mxu0 %v9757_v39  ;;  %v2265_v28 = vsub.f32 %v8446_v11, %v2239_v45  ;;  %2310 = vadd.xlane.f32.xlu0 %v2309_v7  ;;  %v9758_v48 = vpack.c.bf16 %v8372_v29, %v8368_v57 }
 0x50e   :  { %v2242_v8 = vpop.xlane.xlu1 %2241  ;;  %6862 = vmatprep.mubr.msk.bf16.mxu0 %vm7619_vm1, %v9755_v52  ;;  %6872 = vmatprep.subr.bf16.mxu0 %v9755_v52 }
 0x50f   :  { %7408 = vpow2.f32 %v2281_v30  ;;  %v2291_v24 = vmul.f32 1.442695, %v2265_v28  ;;  %v2266_v54 = vsub.f32 %v8452_v34, %v2242_v8  ;;  %2313 = vadd.xlane.f32.xlu1 %v2312_v31  ;;  %v9759_v28 = vpack.c.bf16 %v8374_v2, %v8370_v0 }
 0x510   :  { %v2233_v51 = vpop.xlane.xlu0 %2232 }
 0x511   :  { %v2293_v19 = vmul.f32 1.442695, %v2266_v54  ;;  %v2263_v15 = vsub.f32 %v8450_v43, %v2233_v51  ;;  %7410 = vpow2.f32 %v2291_v24  ;;  %v9760_v54 = vpack.c.bf16 %v8384_v38, %v8378_v9 }
 0x512   :  { %v2236_v11 = vpop.xlane.xlu1 %2235 }
 0x513   :  { %7412 = vpow2.f32 %v2293_v19  ;;  %v2287_v20 = vmul.f32 1.442695, %v2263_v15  ;;  %v2264_v55 = vsub.f32 %v8456_v63, %v2236_v11  ;;  %v7403_v62 = vpop.eup %7402 }
 0x514   :  { %v2251_v13 = vpop.xlane.xlu0 %2250  ;;  %v2321_v29 = vsel %vm870_vm3, %v7403_v62, 0.0 }
 0x515   :  { %v7405_v50 = vpop.eup %7404  ;;  %7414 = vpow2.f32 %v2287_v20  ;;  %v2289_v47 = vmul.f32 1.442695, %v2264_v55  ;;  %v2269_v40 = vsub.f32 %v8462_v33, %v2251_v13  ;;  %v9761_v55 = vpack.c.bf16 %v8386_v56, %v8382_v60 }
 0x516   :  { %v2254_v58 = vpop.xlane.xlu1 %2253  ;;  %v2354_v34 = vpack.c.bf16 %v7405_v50, %v7403_v62  ;;  %v2324_v8 = vsel %vm870_vm3, %v7405_v50, 0.0  ;;  %v7351_v62 = vld [vmem:[%s9718_s1 + $0x28] sm:$0xff]  }
 0x517   :  { %v7407_v37 = vpop.eup %7406  ;;  %7416 = vpow2.f32 %v2289_v47  ;;  %v2299_v49 = vmul.f32 1.442695, %v2269_v40  ;;  %v2270_v43 = vsub.f32 %v8468_v44, %v2254_v58  ;;  %v7352_v40 = vld [vmem:[%s9720_s2 + $0x20] sm:$0xff]  }
 0x518   :  { %6869 = vmatmul.mubr.msk.bf16.vlgmr.msra.gmra.mrb[108].mxu1 %vm870_vm3, %v2354_v34  ;;  %v2245_v53 = vpop.xlane.xlu0 %2244  ;;  %v2315_v3 = vsel %vm870_vm3, %v7407_v37, 0.0 }
 0x519   :  { %v7409_v63 = vpop.eup %7408  ;;  %v2301_v1 = vmul.f32 1.442695, %v2270_v43  ;;  %6879 = vmatpush3.bf16.msra.mxu1 %v9758_v48  ;;  %v2267_v33 = vsub.f32 %v8466_v59, %v2245_v53  ;;  %2316 = vadd.xlane.f32.xlu0 %v2315_v3  ;;  %7418 = vpow2.f32 %v2299_v49  ;;  %v967_v49 = vsel %vm870_vm3, %v8051_v6, 0.0 }
 0x51a   :  { %v2248_v21 = vpop.xlane.xlu1 %2247  ;;  %v2318_v45 = vsel %vm870_vm3, %v7409_v63, 0.0  ;;  %v2353_v7 = vpack.c.bf16 %v7409_v63, %v7407_v37  ;;  %6880 = vmatprep.mubr.msk.bf16.mxu1 %vm7619_vm1, %v9755_v52  ;;  %6890 = vmatprep.subr.bf16.mxu1 %v9755_v52  ;;  %v7353_v37 = vld [vmem:[%s9720_s2 + $0x28] sm:$0xff]   ;;  %v970_v43 = vsel %vm870_vm3, %v8053_v14, 0.0  ;;  %v973_v53 = vsel %vm870_vm3, %v8065_v41, 0.0 }
 0x51b   :  { %7420 = vpow2.f32 %v2301_v1  ;;  %v2295_v44 = vmul.f32 1.442695, %v2267_v33  ;;  %v2268_v30 = vsub.f32 %v8472_v16, %v2248_v21  ;;  %2319 = vadd.xlane.f32.xlu1 %v2318_v45  ;;  %v7411_v57 = vpop.eup %7410  ;;  %v7350_v16 = vld [vmem:[%s9718_s1 + $0x20] sm:$0xff]   ;;  %v976_v3 = vsel %vm870_vm3, %v8067_v46, 0.0 }
 0x51c   :  { %6863 = vmatmul.mubr.msk.bf16.vlgmr.msra.gmra.mrb[92].mxu0 %vm870_vm3, %v2353_v7  ;;  %v2333_v11 = vsel %vm870_vm3, %v7411_v57, 0.0  ;;  %v979_v6 = vsel %vm870_vm3, %v8093_v18, 0.0  ;;  %v982_v14 = vsel %vm870_vm3, %v8096_v42, 0.0  ;;  %v985_v41 = vsel %vm870_vm3, %v8085_v5, 0.0  ;;  %v6120_v21 = vld [vmem:[%s9726_s8 + $0x4] sm:$0xf] }
 0x51d   :  { %v7413_v59 = vpop.eup %7412  ;;  %7422 = vpow2.f32 %v2295_v44  ;;  %v2297_v39 = vmul.f32 1.442695, %v2268_v30  ;;  %6873 = vmatpush3.bf16.msra.mxu0 %v9759_v28  ;;  %2322 = vadd.xlane.f32.xlu0 %v2321_v29  ;;  %v988_v46 = vsel %vm870_vm3, %v8087_v61, 0.0  ;;  %v991_v18 = vsel %vm870_vm3, %v8124_v36, 0.0  ;;  %v9762_v36 = vld [vmem:[#allocation4_spill] sm:$0xff] }
 0x51e   :  { %v2356_v31 = vpack.c.bf16 %v7413_v59, %v7411_v57  ;;  %6874 = vmatprep.mubr.msk.bf16.mxu0 %vm7619_vm1, %v9755_v52  ;;  %6884 = vmatprep.subr.bf16.mxu0 %v9755_v52  ;;  %v2336_v9 = vsel %vm870_vm3, %v7413_v59, 0.0  ;;  %v994_v42 = vsel %vm870_vm3, %v8127_v35, 0.0  ;;  %v997_v5 = vsel %vm870_vm3, %v8108_v25, 0.0  ;;  %v9763_v35 = vld [vmem:[#allocation5_spill] sm:$0xff]  ;;  %v9764_v25 = vld [vmem:[#allocation2_spill] sm:$0xff] }
 0x51f   :  { %v7415_v24 = vpop.eup %7414  ;;  %7424 = vpow2.f32 %v2297_v39  ;;  %2325 = vadd.xlane.f32.xlu1 %v2324_v8  ;;  %v1000_v61 = vsel %vm870_vm3, %v8111_v32, 0.0  ;;  %v1003_v63 = vsel %vm870_vm3, %v9762_v36, 0.0  ;;  %v1006_v1 = vsel %vm870_vm3, %v9763_v35, 0.0  ;;  %v9765_v32 = vld [vmem:[#allocation3_spill] sm:$0xff]  ;;  %v8641_v7 = vld [vmem:[%s9726_s8] sm:$0xf] }
 0x520   :  { %6881 = vmatmul.mubr.msk.bf16.vlgmr.msra.gmra.mrb[112].mxu1 %vm870_vm3, %v2356_v31  ;;  %v2327_v0 = vsel %vm870_vm3, %v7415_v24, 0.0  ;;  %v1009_v48 = vsel %vm870_vm3, %v9764_v25, 0.0  ;;  %v1012_v33 = vsel %vm870_vm3, %v9765_v32, 0.0  ;;  %v2779_v45 = vsel %vm2777_vm4, %v6120_v21, 0  ;;  %v9770_v36 = vld [vmem:[#allocation12_spill] sm:$0xff]  ;;  %v9771_v35 = vld [vmem:[#allocation13_spill] sm:$0xff] }
 0x521   :  { %v7417_v2 = vpop.eup %7416  ;;  %6891 = vmatpush3.bf16.msra.mxu1 %v9760_v54  ;;  %2328 = vadd.xlane.f32.xlu0 %v2327_v0 }
 0x522   :  { %v2330_v51 = vsel %vm870_vm3, %v7417_v2, 0.0  ;;  %v2355_v19 = vpack.c.bf16 %v7417_v2, %v7415_v24  ;;  %6892 = vmatprep.mubr.msk.bf16.mxu1 %vm7619_vm1, %v9755_v52  ;;  %6932 = vmatprep.subr.bf16.mxu1 %v7350_v16 }
 0x523   :  { %2331 = vadd.xlane.f32.xlu1 %v2330_v51  ;;  %v7419_v15 = vpop.eup %7418 }
 0x524   :  { %6875 = vmatmul.mubr.msk.bf16.vlgmr.msra.gmra.mrb[96].mxu0 %vm870_vm3, %v2355_v19  ;;  %v2345_v58 = vsel %vm870_vm3, %v7419_v15, 0.0 }
 0x525   :  { %v7421_v20 = vpop.eup %7420  ;;  %6885 = vmatpush3.bf16.msra.mxu0 %v9761_v55  ;;  %2334 = vadd.xlane.f32.xlu0 %v2333_v11 }
 0x526   :  { %v2358_v38 = vpack.c.bf16 %v7421_v20, %v7419_v15  ;;  %6886 = vmatprep.mubr.msk.bf16.mxu0 %vm7619_vm1, %v9755_v52  ;;  %v2348_v34 = vsel %vm870_vm3, %v7421_v20, 0.0  ;;  %7332 = vmatprep.subr.msk.bf16.mxu0 %vm2777_vm4, %v6120_v21 }
 0x527   :  { %v7423_v13 = vpop.eup %7422  ;;  %2337 = vadd.xlane.f32.xlu1 %v2336_v9 }
 0x528   :  { %6893 = vmatmul.mubr.msk.bf16.vlgmr.msra.gmra.mrb[116].mxu1 %vm870_vm3, %v2358_v38  ;;  %v2339_v50 = vsel %vm870_vm3, %v7423_v13, 0.0 }
 0x529   :  { %v7425_v47 = vpop.eup %7424  ;;  %2340 = vadd.xlane.f32.xlu0 %v2339_v50  ;;  %6933 = vmatpush3.bf16.msra.mxu1 %v7350_v16 }
 0x52a   :  { %v2342_v60 = vsel %vm870_vm3, %v7425_v47, 0.0  ;;  %v2357_v56 = vpack.c.bf16 %v7425_v47, %v7423_v13  ;;  %6934 = vmatprep.subr.bf16.mxu1 %v7351_v62  ;;  %6936 = vmatprep.mubr.msk.bf16.mxu1 %vm83_vm0, %v7725_v17 }
 0x52b   :  { %2343 = vadd.xlane.f32.xlu1 %v2342_v60  ;;  %v9766_v60 = vld [vmem:[#allocation6_spill] sm:$0xff] }
 0x52c   :  { %6887 = vmatmul.mubr.msk.bf16.vlgmr.msra.gmra.mrb[100].mxu0 %vm870_vm3, %v2357_v56 }
 0x52d   :  { %2346 = vadd.xlane.f32.xlu0 %v2345_v58  ;;  %6935 = vmatpush3.bf16.msra.mxu1 %v7351_v62 }
 0x52e   :  { %6952 = vmatprep.subr.bf16.mxu1 %v7352_v40  ;;  %6897 = vmatpush3.bf16.msra.mxu0 %v2779_v45  ;;  %v9772_v45 = vld [vmem:[#allocation10_spill] sm:$0xff] }
 0x52f   :  { %2349 = vadd.xlane.f32.xlu1 %v2348_v34  ;;  %7333 = vmatprep.subr.msk.bf16.mxu0 %vm2777_vm4, %v8641_v7 }
 0x530   :  { %6937 = vmatmul.mubr.msk.bf16.vlgmr.msra.gmra.mrb[120].mxu1 %vm83_vm0, %v7741_v22 }
 0x531   :  { %968 = vadd.xlane.f32.xlu0 %v967_v49  ;;  %6940 = vmatprep.mubr.msk.bf16.mxu1 %vm83_vm0, %v7747_v23 }
 0x532   :  { %6953 = vmatpush3.bf16.msra.mxu1 %v7352_v40  ;;  %v9767_v40 = vld [vmem:[#allocation7_spill] sm:$0xff] }
 0x533   :  { %971 = vadd.xlane.f32.xlu1 %v970_v43  ;;  %6954 = vmatprep.subr.bf16.mxu1 %v7353_v37 }
 0x535   :  { %974 = vadd.xlane.f32.xlu0 %v973_v53  ;;  %v9768_v53 = vld [vmem:[#allocation8_spill] sm:$0xff] }
 0x536   :  { %6955 = vmatpush3.bf16.msra.mxu1 %v7353_v37 }
 0x537   :  { %977 = vadd.xlane.f32.xlu1 %v976_v3  ;;  %6992 = vmatprep.subr.bf16.mxu1 %v9755_v52 }
 0x538   :  { %6941 = vmatmul.mubr.msk.bf16.gmra.mrb[124].mxu1 %vm83_vm0, %v7763_v27 }
 0x539   :  { %980 = vadd.xlane.f32.xlu0 %v979_v6  ;;  %6944 = vmatprep.mubr.msk.bf16.mxu1 %vm83_vm0, %v7687_v4  ;;  %v9769_v6 = vld [vmem:[#allocation9_spill] sm:$0xff] }
 0x53b   :  { %983 = vadd.xlane.f32.xlu1 %v982_v14 }
 0x53d   :  { %986 = vadd.xlane.f32.xlu0 %v985_v41 }
 0x53f   :  { %989 = vadd.xlane.f32.xlu1 %v988_v46 }
 0x540   :  { %6945 = vmatmul.mubr.msk.bf16.gmra.mrb[128].mxu1 %vm83_vm0, %v7706_v10 }
 0x541   :  { %992 = vadd.xlane.f32.xlu0 %v991_v18  ;;  %6948 = vmatprep.mubr.msk.bf16.mxu1 %vm83_vm0, %v7711_v12 }
 0x543   :  { %995 = vadd.xlane.f32.xlu1 %v994_v42 }
 0x545   :  { %998 = vadd.xlane.f32.xlu0 %v997_v5 }
 0x547   :  { %1001 = vadd.xlane.f32.xlu1 %v1000_v61 }
 0x548   :  { %6949 = vmatmul.mubr.msk.bf16.gmra.mrb[132].mxu1 %vm83_vm0, %v7759_v26 }
 0x549   :  { %1004 = vadd.xlane.f32.xlu0 %v1003_v63  ;;  %6956 = vmatprep.mubr.msk.bf16.mxu1 %vm83_vm0, %v7725_v17 }
 0x54b   :  { %1007 = vadd.xlane.f32.xlu1 %v1006_v1 }
 0x54d   :  { %1010 = vadd.xlane.f32.xlu0 %v1009_v48 }
 0x54f   :  { %1013 = vadd.xlane.f32.xlu1 %v1012_v33 }
 0x550   :  { %6957 = vmatmul.mubr.msk.bf16.vlgmr.msra.gmra.mrb[136].mxu1 %vm83_vm0, %v7741_v22 }
 0x551   :  { %6960 = vmatprep.mubr.msk.bf16.mxu1 %vm83_vm0, %v7747_v23 }
 0x558   :  { %6961 = vmatmul.mubr.msk.bf16.gmra.mrb[140].mxu1 %vm83_vm0, %v7763_v27 }
 0x559   :  { %6964 = vmatprep.mubr.msk.bf16.mxu1 %vm83_vm0, %v7687_v4 }
 0x560   :  { %6965 = vmatmul.mubr.msk.bf16.gmra.mrb[144].mxu1 %vm83_vm0, %v7706_v10 }
 0x561   :  { %6968 = vmatprep.mubr.msk.bf16.mxu1 %vm83_vm0, %v7711_v12 }
 0x568   :  { %6969 = vmatmul.mubr.msk.bf16.gmra.mrb[148].mxu1 %vm83_vm0, %v7759_v26 }
 0x569   :  { %6994 = vmatprep.mubr.msk.bf16.mxu1 %vm7619_vm1, %v9755_v52 }
 0x596   :  { %v2305_v44 = vpop.xlane.xlu0 %2304 }
 0x598   :  { %v2308_v30 = vpop.xlane.xlu1 %2307 }
 0x59a   :  { %v2311_v57 = vpop.xlane.xlu0 %2310 }
 0x59c   :  { %v2314_v29 = vpop.xlane.xlu1 %2313 }
 0x5a6   :  { %v8645_v59 = vpop.xlane.xlu0 %2316 }
 0x5a8   :  { %v8647_v39 = vpop.xlane.xlu1 %2319 }
 0x5aa   :  { %v8649_v28 = vpop.xlane.xlu0 %2322 }
 0x5ac   :  { %v8651_v8 = vpop.xlane.xlu1 %2325 }
 0x5ae   :  { %v8653_v31 = vpop.xlane.xlu0 %2328 }
 0x5b0   :  { %v8655_v16 = vpop.xlane.xlu1 %2331 }
 0x5b2   :  { %v8657_v24 = vpop.xlane.xlu0 %2334 }
 0x5b4   :  { %v8659_v0 = vpop.xlane.xlu1 %2337 }
 0x5b6   :  { %v8661_v2 = vpop.xlane.xlu0 %2340 }
 0x5b8   :  { %v8663_v54 = vpop.xlane.xlu1 %2343 }
 0x5ba   :  { %v8665_v51 = vpop.xlane.xlu0 %2346 }
 0x5bc   :  { %v8667_v19 = vpop.xlane.xlu1 %2349 }
 0x5be   :  { %v969_v15 = vpop.xlane.xlu0 %968 }
 0x5bf   :  { %7426 = vrcp.f32 %v969_v15 }
 0x5c0   :  { %v972_v11 = vpop.xlane.xlu1 %971 }
 0x5c1   :  { %7428 = vrcp.f32 %v972_v11 }
 0x5c2   :  { %v975_v20 = vpop.xlane.xlu0 %974 }
 0x5c3   :  { %7430 = vrcp.f32 %v975_v20 }
 0x5c4   :  { %v978_v55 = vpop.xlane.xlu1 %977 }
 0x5c5   :  { %7432 = vrcp.f32 %v978_v55 }
 0x5c6   :  { %v981_v9 = vpop.xlane.xlu0 %980 }
 0x5c7   :  { %7434 = vrcp.f32 %v981_v9 }
 0x5c8   :  { %v984_v38 = vpop.xlane.xlu1 %983 }
 0x5c9   :  { %v7427_v62 = vpop.eup %7426  ;;  %7436 = vrcp.f32 %v984_v38 }
 0x5ca   :  { %v987_v13 = vpop.xlane.xlu0 %986  ;;  %v8670_v56 = vmul.f32 %v7427_v62, %v9766_v60  ;;  %v9775_v60 = vld [vmem:[#allocation17_spill] sm:$0xff] }
 0x5cb   :  { %v7429_v50 = vpop.eup %7428  ;;  %7438 = vrcp.f32 %v987_v13 }
 0x5cc   :  { %v990_v47 = vpop.xlane.xlu1 %989  ;;  %v8673_v58 = vmul.f32 %v7429_v50, %v9767_v40  ;;  %v9774_v50 = vld [vmem:[#allocation16_spill] sm:$0xff] }
 0x5cd   :  { %v7431_v34 = vpop.eup %7430  ;;  %7440 = vrcp.f32 %v990_v47 }
 0x5ce   :  { %v993_v37 = vpop.xlane.xlu0 %992  ;;  %v1407_v49 = vpack.c.bf16 %v8673_v58, %v8670_v56  ;;  %v8678_v3 = vmul.f32 %v7431_v34, %v9768_v53 }
 0x5cf   :  { %v7433_v43 = vpop.eup %7432  ;;  %7442 = vrcp.f32 %v993_v37 }
 0x5d0   :  { %7444 = vrcp.f32 %v2311_v57  ;;  %v8681_v14 = vmul.f32 %v7433_v43, %v9769_v6  ;;  %v996_v41 = vpop.xlane.xlu1 %995 }
 0x5d1   :  { %v7435_v46 = vpop.eup %7434  ;;  %7446 = vrcp.f32 %v996_v41 }
 0x5d2   :  { %7448 = vrcp.f32 %v2314_v29  ;;  %v1408_v18 = vpack.c.bf16 %v8681_v14, %v8678_v3  ;;  %v999_v42 = vpop.xlane.xlu0 %998  ;;  %v8686_v63 = vmul.f32 %v7435_v46, %v9770_v36 }
 0x5d3   :  { %v7437_v5 = vpop.eup %7436  ;;  %7450 = vrcp.f32 %v999_v42 }
 0x5d4   :  { %7452 = vrcp.f32 %v2305_v44  ;;  %v1002_v61 = vpop.xlane.xlu1 %1001  ;;  %v8689_v1 = vmul.f32 %v7437_v5, %v9771_v35  ;;  %v9773_v44 = vld [vmem:[#allocation11_spill] sm:$0xff] }
 0x5d5   :  { %v7439_v25 = vpop.eup %7438  ;;  %7454 = vrcp.f32 %v1002_v61 }
 0x5d6   :  { %7456 = vrcp.f32 %v2308_v30  ;;  %v1005_v48 = vpop.xlane.xlu0 %1004  ;;  %v1409_v32 = vpack.c.bf16 %v8689_v1, %v8686_v63  ;;  %v8694_v57 = vmul.f32 %v7439_v25, %v9772_v45  ;;  %v9776_v25 = vld [vmem:[#allocation14_spill] sm:$0xff] }
 0x5d7   :  { %v7441_v33 = vpop.eup %7440  ;;  %7458 = vrcp.f32 %v1005_v48 }
 0x5d8   :  { %v1008_v21 = vpop.xlane.xlu1 %1007  ;;  %v8697_v29 = vmul.f32 %v7441_v33, %v9773_v44  ;;  %v9777_v33 = vld [vmem:[#allocation15_spill] sm:$0xff] }
 0x5d9   :  { %v7443_v15 = vpop.eup %7442  ;;  %7460 = vrcp.f32 %v1008_v21 }
 0x5da   :  { %v7445_v11 = vpop.eup %7444  ;;  %v1011_v20 = vpop.xlane.xlu0 %1010  ;;  %v1410_v30 = vpack.c.bf16 %v8697_v29, %v8694_v57  ;;  %v8702_v47 = vmul.f32 %v7443_v15, %v9774_v50  ;;  %v9779_v50 = vld [vmem:[#allocation21_spill] sm:$0xff] }
 0x5db   :  { %v7447_v55 = vpop.eup %7446  ;;  %7462 = vrcp.f32 %v1011_v20  ;;  %v2440_v9 = vpop.f32.mrb[104].mxu1 }
 0x5dc   :  { %v7449_v38 = vpop.eup %7448  ;;  %v1014_v62 = vpop.xlane.xlu1 %1013  ;;  %v8705_v40 = vmul.f32 %v7447_v55, %v9775_v60  ;;  %v2729_v53 = vmul.f32 %v7445_v11, %v2440_v9 }
 0x5dd   :  { %v6858_v13 = vpop.f32.mrb[105].mxu1  ;;  %v7451_v34 = vpop.eup %7450  ;;  %7464 = vrcp.f32 %v1014_v62  ;;  %v9778_v62 = vld [vmem:[#allocation20_spill] sm:$0xff] }
 0x5de   :  { %v2443_v37 = vpop.f32.mrb[106].mxu1  ;;  %v7453_v43 = vpop.eup %7452  ;;  %v1411_v46 = vpack.c.bf16 %v8705_v40, %v8702_v47  ;;  %v8710_v48 = vmul.f32 %v7451_v34, %v9776_v25  ;;  %7466 = vrcp.f32 %v8649_v28  ;;  %v2903_v28 = vsel %vm2777_vm4, %v8641_v7, 0 }
 0x5df   :  { %v2730_v6 = vmul.f32 %v7449_v38, %v2443_v37  ;;  %v6859_v41 = vpop.f32.mrb[107].mxu1  ;;  %v7455_v42 = vpop.eup %7454  ;;  %7468 = vrcp.f32 %v8651_v8  ;;  %v8730_v37 = vld [vmem:[%s9721_s3 + $0x20] sm:$0xff]  }
 0x5e0   :  { %v2396_v5 = vpop.f32.mrb[88].mxu0  ;;  %v7457_v61 = vpop.eup %7456  ;;  %v8713_v21 = vmul.f32 %v7455_v42, %v9777_v33  ;;  %7470 = vrcp.f32 %v8645_v59 }
 0x5e1   :  { %v2744_v36 = vpack.c.bf16 %v2730_v6, %v2729_v53  ;;  %v6852_v35 = vpop.f32.mrb[89].mxu0  ;;  %v7459_v45 = vpop.eup %7458  ;;  %v2727_v15 = vmul.f32 %v7453_v43, %v2396_v5  ;;  %7472 = vrcp.f32 %v8647_v39  ;;  %v9780_v53 = vld [vmem:[#allocation18_spill] sm:$0xff]  ;;  %v9781_v6 = vld [vmem:[#allocation19_spill] sm:$0xff] }
 0x5e2   :  { %v2399_v44 = vpop.f32.mrb[90].mxu0  ;;  %v1412_v55 = vpack.c.bf16 %v8713_v21, %v8710_v48  ;;  %v8720_v13 = vmul.f32 %v7459_v45, %v9778_v62  ;;  %7474 = vrcp.f32 %v8657_v24 }
 0x5e3   :  { %v2728_v11 = vmul.f32 %v7457_v61, %v2399_v44  ;;  %v6853_v20 = vpop.f32.mrb[91].mxu0  ;;  %v7461_v9 = vpop.eup %7460  ;;  %7476 = vrcp.f32 %v8659_v0 }
 0x5e4   :  { %v8723_v60 = vmul.f32 %v7461_v9, %v9779_v50  ;;  %7478 = vrcp.f32 %v8653_v31 }
 0x5e5   :  { %v2743_v38 = vpack.c.bf16 %v2728_v11, %v2727_v15  ;;  %v7463_v34 = vpop.eup %7462  ;;  %7480 = vrcp.f32 %v8655_v16 }
 0x5e6   :  { %v1413_v8 = vpack.c.bf16 %v8723_v60, %v8720_v13  ;;  %v8739_v7 = vmul.f32 %v7463_v34, %v9780_v53  ;;  %7482 = vrcp.f32 %v8665_v51 }
 0x5e7   :  { %6898 = vmatprep.mubr.msk.bf16.mxu0 %vm469_vm2, %v2743_v38  ;;  %v7465_v43 = vpop.eup %7464  ;;  %7484 = vrcp.f32 %v8667_v19 }
 0x5e8   :  { %6899 = vmatmul.mubr.msk.bf16.vlgmr.msra.gmra.mrb[104].mxu0 %vm469_vm2, %v2744_v36  ;;  %v8742_v41 = vmul.f32 %v7465_v43, %v9781_v6  ;;  %v7467_v39 = vpop.eup %7466  ;;  %7486 = vrcp.f32 %v8661_v2 }
 0x5e9   :  { %6915 = vmatpush3.bf16.msra.mxu0 %v2903_v28  ;;  %v7469_v61 = vpop.eup %7468  ;;  %7488 = vrcp.f32 %v8663_v54 }
 0x5ea   :  { %6972 = vmatprep.subr.bf16.mxu0 %v8730_v37  ;;  %v1414_v59 = vpack.c.bf16 %v8742_v41, %v8739_v7  ;;  %v7471_v44 = vpop.eup %7470 }
 0x5eb   :  { %v2528_v42 = vpop.f32.mrb[108].mxu1  ;;  %v7473_v11 = vpop.eup %7472 }
 0x5ec   :  { %v6870_v5 = vpop.f32.mrb[109].mxu1  ;;  %v2733_v35 = vmul.f32 %v7467_v39, %v2528_v42  ;;  %v7475_v31 = vpop.eup %7474 }
 0x5ed   :  { %v2531_v36 = vpop.f32.mrb[110].mxu1  ;;  %v7477_v28 = vpop.eup %7476 }
 0x5ee   :  { %v2734_v25 = vmul.f32 %v7469_v61, %v2531_v36  ;;  %v6871_v33 = vpop.f32.mrb[111].mxu1  ;;  %v7479_v42 = vpop.eup %7478 }
 0x5ef   :  { %v2484_v45 = vpop.f32.mrb[92].mxu0  ;;  %v7481_v5 = vpop.eup %7480 }
 0x5f0   :  { %v2746_v24 = vpack.c.bf16 %v2734_v25, %v2733_v35  ;;  %v6864_v15 = vpop.f32.mrb[93].mxu0  ;;  %v2731_v0 = vmul.f32 %v7471_v44, %v2484_v45  ;;  %v7483_v2 = vpop.eup %7482 }
 0x5f1   :  { %v2487_v20 = vpop.f32.mrb[94].mxu0  ;;  %v7485_v15 = vpop.eup %7484 }
 0x5f2   :  { %v2732_v9 = vmul.f32 %v7473_v11, %v2487_v20  ;;  %v6865_v38 = vpop.f32.mrb[95].mxu0 }
 0x5f3   :  { %v2616_v62 = vpop.f32.mrb[112].mxu1 }
 0x5f4   :  { %v2745_v50 = vpack.c.bf16 %v2732_v9, %v2731_v0  ;;  %v6882_v34 = vpop.f32.mrb[113].mxu1  ;;  %v2737_v16 = vmul.f32 %v7475_v31, %v2616_v62  ;;  %v7487_v9 = vpop.eup %7486 }
 0x5f5   :  { %v2619_v43 = vpop.f32.mrb[114].mxu1  ;;  %v7489_v31 = vpop.eup %7488 }
 0x5f6   :  { %v2738_v53 = vmul.f32 %v7477_v28, %v2619_v43  ;;  %v6883_v6 = vpop.f32.mrb[115].mxu1  ;;  %6902 = vmatprep.mubr.msk.bf16.mxu0 %vm469_vm2, %v2745_v50 }
 0x5f7   :  { %v2572_v51 = vpop.f32.mrb[96].mxu0  ;;  %6903 = vmatmul.mubr.msk.bf16.gmra.mrb[108].mxu0 %vm469_vm2, %v2746_v24 }
 0x5f8   :  { %v2748_v19 = vpack.c.bf16 %v2738_v53, %v2737_v16  ;;  %v6876_v39 = vpop.f32.mrb[97].mxu0  ;;  %v2735_v36 = vmul.f32 %v7479_v42, %v2572_v51  ;;  %v6142_v53 = vld [vmem:[%s9722_s4 + $0x2] ss:$0 sm:$0xff] }
 0x5f9   :  { %v2575_v61 = vpop.f32.mrb[98].mxu0 }
 0x5fa   :  { %v2736_v35 = vmul.f32 %v7481_v5, %v2575_v61  ;;  %v6877_v25 = vpop.f32.mrb[99].mxu0 }
 0x5fb   :  { %v2704_v33 = vpop.f32.mrb[116].mxu1 }
 0x5fc   :  { %v2747_v45 = vpack.c.bf16 %v2736_v35, %v2735_v36  ;;  %v6894_v44 = vpop.f32.mrb[117].mxu1  ;;  %v2741_v20 = vmul.f32 %v7483_v2, %v2704_v33 }
 0x5fd   :  { %v2707_v11 = vpop.f32.mrb[118].mxu1  ;;  %v7355_v44 = vld [vmem:[%s9721_s3 + $0x28] sm:$0xff]  }
 0x5fe   :  { %v2742_v0 = vmul.f32 %v7485_v15, %v2707_v11  ;;  %v6895_v54 = vpop.f32.mrb[119].mxu1  ;;  %6906 = vmatprep.mubr.msk.bf16.mxu0 %vm469_vm2, %v2747_v45 }
 0x5ff   :  { %v2660_v24 = vpop.f32.mrb[100].mxu0  ;;  %6907 = vmatmul.mubr.msk.bf16.gmra.mrb[112].mxu0 %vm469_vm2, %v2748_v19 }
 0x600   :  { %v2750_v38 = vpack.c.bf16 %v2742_v0, %v2741_v20  ;;  %v6888_v62 = vpop.f32.mrb[101].mxu0  ;;  %v2739_v34 = vmul.f32 %v7487_v9, %v2660_v24 }
 0x601   :  { %v2663_v50 = vpop.f32.mrb[102].mxu0 }
 0x602   :  { %v2740_v28 = vmul.f32 %v7489_v31, %v2663_v50  ;;  %v6889_v43 = vpop.f32.mrb[103].mxu0 }
 0x603   :  { %v6938_v16 = vpop.f32.mrb[120].mxu1 }
 0x604   :  { %v2749_v6 = vpack.c.bf16 %v2740_v28, %v2739_v34  ;;  %v3061_v51 = vpop.f32.mrb[121].mxu1  ;;  %v8762_v39 = vadd.f32 %v6938_v16, %v6142_v53  ;;  %v6158_v28 = vld [vmem:[%s9723_s5 + $0x2] ss:$0 sm:$0xff] }
 0x605   :  { %v6939_v42 = vpop.f32.mrb[122].mxu1  ;;  %v8767_v61 = vadd.f32 %v6142_v53, %v3061_v51 }
 0x606   :  { %v8764_v5 = vadd.f32 %v6939_v42, %v6142_v53  ;;  %6910 = vmatprep.mubr.msk.bf16.mxu0 %vm469_vm2, %v2749_v6  ;;  %v3064_v19 = vpop.f32.mrb[123].mxu1 }
 0x607   :  { %v8769_v36 = vadd.f32 %v6142_v53, %v3064_v19  ;;  %6911 = vmatmul.mubr.msk.bf16.gmra.mrb[116].mxu0 %vm469_vm2, %v2750_v38 }
 0x608   :  { %v3369_v35 = vpack.c.bf16 %v8764_v5, %v8762_v39  ;;  %6916 = vmatprep.mubr.msk.bf16.mxu0 %vm469_vm2, %v1407_v49 }
 0x609   :  { %v3368_v25 = vpack.c.bf16 %v8769_v36, %v8767_v61 }
 0x60b   :  { %v6942_v33 = vpop.f32.mrb[124].mxu1 }
 0x60c   :  { %v3077_v2 = vpop.f32.mrb[125].mxu1  ;;  %v8783_v15 = vadd.f32 %v6942_v33, %v6142_v53 }
 0x60d   :  { %v6943_v45 = vpop.f32.mrb[126].mxu1  ;;  %v8787_v0 = vadd.f32 %v6142_v53, %v3077_v2 }
 0x60e   :  { %v8785_v11 = vadd.f32 %v6943_v45, %v6142_v53  ;;  %v3080_v20 = vpop.f32.mrb[127].mxu1 }
 0x60f   :  { %v8789_v56 = vadd.f32 %v6142_v53, %v3080_v20  ;;  %6917 = vmatmul.mubr.msk.bf16.vlgmr.msra.gmra.mrb[104].mxu0 %vm469_vm2, %v1408_v18 }
 0x610   :  { %v3371_v58 = vpack.c.bf16 %v8785_v11, %v8783_v15  ;;  %6920 = vmatprep.mubr.msk.bf16.mxu0 %vm469_vm2, %v1409_v32  ;;  %6973 = vmatpush3.bf16.msra.mxu0 %v8730_v37 }
 0x611   :  { %v3370_v49 = vpack.c.bf16 %v8789_v56, %v8787_v0  ;;  %6974 = vmatprep.subr.bf16.mxu0 %v7355_v44 }
 0x613   :  { %v6946_v54 = vpop.f32.mrb[128].mxu1 }
 0x614   :  { %v3093_v24 = vpop.f32.mrb[129].mxu1  ;;  %6975 = vmatpush3.bf16.msra.mxu0 %v7355_v44  ;;  %v8805_v14 = vadd.f32 %v6946_v54, %v6142_v53 }
 0x615   :  { %v6947_v3 = vpop.f32.mrb[130].mxu1  ;;  %7016 = vmatprep.subr.bf16.mxu0 %v9755_v52  ;;  %v8809_v63 = vadd.f32 %v6142_v53, %v3093_v24 }
 0x616   :  { %v8807_v18 = vadd.f32 %v6947_v3, %v6142_v53  ;;  %v3096_v9 = vpop.f32.mrb[131].mxu1 }
 0x617   :  { %v8811_v1 = vadd.f32 %v6142_v53, %v3096_v9  ;;  %6921 = vmatmul.mubr.msk.bf16.gmra.mrb[108].mxu0 %vm469_vm2, %v1410_v30 }
 0x618   :  { %v3373_v32 = vpack.c.bf16 %v8807_v18, %v8805_v14  ;;  %6924 = vmatprep.mubr.msk.bf16.mxu0 %vm469_vm2, %v1411_v46  ;;  %v8942_v18 = vld [vmem:[%s9725_s7 + $0x80] sm:$0xff] }
 0x619   :  { %v3372_v37 = vpack.c.bf16 %v8811_v1, %v8809_v63 }
 0x61b   :  { %v6950_v38 = vpop.f32.mrb[132].mxu1 }
 0x61c   :  { %v3109_v62 = vpop.f32.mrb[133].mxu1  ;;  %v8825_v50 = vadd.f32 %v6950_v38, %v6142_v53 }
 0x61d   :  { %v6951_v31 = vpop.f32.mrb[134].mxu1  ;;  %v8829_v29 = vadd.f32 %v6142_v53, %v3109_v62 }
 0x61e   :  { %v8827_v34 = vadd.f32 %v6951_v31, %v6142_v53  ;;  %v3112_v57 = vpop.f32.mrb[135].mxu1 }
 0x61f   :  { %v8831_v30 = vadd.f32 %v6142_v53, %v3112_v57  ;;  %6925 = vmatmul.mubr.msk.bf16.gmra.mrb[112].mxu0 %vm469_vm2, %v1412_v55 }
 0x620   :  { %v3375_v47 = vpack.c.bf16 %v8827_v34, %v8825_v50  ;;  %6928 = vmatprep.mubr.msk.bf16.mxu0 %vm469_vm2, %v1413_v8 }
 0x621   :  { %v3374_v40 = vpack.c.bf16 %v8831_v30, %v8829_v29  ;;  %v8951_v29 = vld [vmem:[%s9725_s7 + $0x88] sm:$0xff] }
 0x623   :  { %v6958_v46 = vpop.f32.mrb[136].mxu1 }
 0x624   :  { %v3183_v43 = vpop.f32.mrb[137].mxu1  ;;  %v3192_v21 = vadd.f32 %v6958_v46, %v6158_v28 }
 0x625   :  { %v6959_v48 = vpop.f32.mrb[138].mxu1  ;;  %v3184_v53 = vadd.f32 %v6158_v28, %v3183_v43 }
 0x626   :  { %v3195_v55 = vadd.f32 %v6959_v48, %v6158_v28  ;;  %v3186_v16 = vpop.f32.mrb[139].mxu1 }
 0x627   :  { %v3187_v6 = vadd.f32 %v6158_v28, %v3186_v16  ;;  %6929 = vmatmul.mubr.msk.bf16.gmra.mrb[116].mxu0 %vm469_vm2, %v1414_v59 }
 0x628   :  { %v3377_v13 = vpack.c.bf16 %v3195_v55, %v3192_v21  ;;  %6976 = vmatprep.mubr.msk.bf16.mxu0 %vm83_vm0, %v7725_v17 }
 0x629   :  { %v3376_v60 = vpack.c.bf16 %v3187_v6, %v3184_v53 }
 0x62a   :  { %v3443_v20 = vsel %vm469_vm2, %v3377_v13, 0 }
 0x62b   :  { %v3396_v8 = vsel %vm469_vm2, %v3376_v60, 0  ;;  %v6962_v51 = vpop.f32.mrb[140].mxu1 }
 0x62c   :  { %6993 = vmatpush3.bf16.xpose.msra.mxu1 %v3396_v8  ;;  %v3208_v42 = vadd.f32 %v6962_v51, %v6158_v28  ;;  %v3199_v19 = vpop.f32.mrb[141].mxu1 }
 0x62d   :  { %v3200_v33 = vadd.f32 %v6158_v28, %v3199_v19  ;;  %v6963_v2 = vpop.f32.mrb[142].mxu1  ;;  %6998 = vmatprep.subr.bf16.mxu1 %v9755_v52 }
 0x62e   :  { %v3211_v45 = vadd.f32 %v6963_v2, %v6158_v28  ;;  %v3202_v44 = vpop.f32.mrb[143].mxu1 }
 0x62f   :  { %6977 = vmatmul.mubr.msk.bf16.vlgmr.msra.gmra.mrb[120].mxu0 %vm83_vm0, %v7741_v22  ;;  %v3203_v7 = vadd.f32 %v6158_v28, %v3202_v44 }
 0x630   :  { %v3379_v41 = vpack.c.bf16 %v3211_v45, %v3208_v42  ;;  %6980 = vmatprep.mubr.msk.bf16.mxu0 %vm83_vm0, %v7747_v23 }
 0x631   :  { %v3378_v59 = vpack.c.bf16 %v3203_v7, %v3200_v33 }
 0x632   :  { %v3537_v13 = vsel %vm469_vm2, %v3379_v41, 0  ;;  %v8974_v41 = vld [vmem:[%s9725_s7 + $0x90] sm:$0xff] }
 0x633   :  { %6995 = vmatmul.mubr.msk.bf16.vlgmr.msra.gmra.mrb[152].mxu1 %vm469_vm2, %v3368_v25  ;;  %v6966_v54 = vpop.f32.mrb[144].mxu1  ;;  %v3490_v57 = vsel %vm469_vm2, %v3378_v59, 0 }
 0x634   :  { %6999 = vmatpush3.bf16.xpose.msra.mxu1 %v3443_v20  ;;  %7000 = vmatprep.mubr.msk.bf16.mxu1 %vm7619_vm1, %v9755_v52  ;;  %v3224_v24 = vadd.f32 %v6966_v54, %v6158_v28  ;;  %v3215_v3 = vpop.f32.mrb[145].mxu1 }
 0x635   :  { %7004 = vmatprep.subr.bf16.mxu1 %v9755_v52  ;;  %v3216_v9 = vadd.f32 %v6158_v28, %v3215_v3  ;;  %v6967_v38 = vpop.f32.mrb[146].mxu1  ;;  %v8985_v3 = vld [vmem:[%s9725_s7 + $0x98] sm:$0xff] }
 0x636   :  { %v3227_v62 = vadd.f32 %v6967_v38, %v6158_v28  ;;  %v3218_v31 = vpop.f32.mrb[147].mxu1 }
 0x637   :  { %6981 = vmatmul.mubr.msk.bf16.gmra.mrb[124].mxu0 %vm83_vm0, %v7763_v27  ;;  %v3219_v61 = vadd.f32 %v6158_v28, %v3218_v31 }
 0x638   :  { %v3381_v36 = vpack.c.bf16 %v3227_v62, %v3224_v24  ;;  %6984 = vmatprep.mubr.msk.bf16.mxu0 %vm83_vm0, %v7687_v4 }
 0x639   :  { %v3380_v25 = vpack.c.bf16 %v3219_v61, %v3216_v9 }
 0x63a   :  { %v3631_v0 = vsel %vm469_vm2, %v3381_v36, 0 }
 0x63b   :  { %7001 = vmatmul.mubr.msk.bf16.vlgmr.msra.gmra.mrb[156].mxu1 %vm469_vm2, %v3369_v35  ;;  %v6970_v46 = vpop.f32.mrb[148].mxu1  ;;  %v3584_v43 = vsel %vm469_vm2, %v3380_v25, 0 }
 0x63c   :  { %7005 = vmatpush3.bf16.xpose.msra.mxu1 %v3490_v57  ;;  %7006 = vmatprep.mubr.msk.bf16.mxu1 %vm7619_vm1, %v9755_v52  ;;  %v3240_v48 = vadd.f32 %v6970_v46, %v6158_v28  ;;  %v3231_v21 = vpop.f32.mrb[149].mxu1 }
 0x63d   :  { %7010 = vmatprep.subr.bf16.mxu1 %v9755_v52  ;;  %v3232_v55 = vadd.f32 %v6158_v28, %v3231_v21  ;;  %7017 = vmatpush3.bf16.xpose.msra.mxu0 %v3584_v43  ;;  %v6971_v16 = vpop.f32.mrb[150].mxu1 }
 0x63e   :  { %v3243_v53 = vadd.f32 %v6971_v16, %v6158_v28  ;;  %v3234_v39 = vpop.f32.mrb[151].mxu1  ;;  %7028 = vmatprep.subr.bf16.mxu0 %v9755_v52 }
 0x63f   :  { %6985 = vmatmul.mubr.msk.bf16.gmra.mrb[128].mxu0 %vm83_vm0, %v7706_v10  ;;  %v3235_v5 = vadd.f32 %v6158_v28, %v3234_v39 }
 0x640   :  { %v3383_v35 = vpack.c.bf16 %v3243_v53, %v3240_v48  ;;  %6988 = vmatprep.mubr.msk.bf16.mxu0 %vm83_vm0, %v7711_v12  ;;  %v6197_v53 = vld [vmem:[%s9725_s7 + $0xa0] sm:$0xff] }
 0x641   :  { %v3382_v6 = vpack.c.bf16 %v3235_v5, %v3232_v55 }
 0x642   :  { %v3725_v15 = vsel %vm469_vm2, %v3383_v35, 0 }
 0x643   :  { %7007 = vmatmul.mubr.msk.bf16.vlgmr.msra.gmra.mrb[160].mxu1 %vm469_vm2, %v3370_v49  ;;  %v3678_v56 = vsel %vm469_vm2, %v3382_v6, 0 }
 0x644   :  { %7011 = vmatpush3.bf16.xpose.msra.mxu1 %v3537_v13  ;;  %7012 = vmatprep.mubr.msk.bf16.mxu1 %vm7619_vm1, %v9755_v52  ;;  %v6198_v13 = vld [vmem:[%s9725_s7 + $0xa8] sm:$0xff] }
 0x645   :  { %7022 = vmatprep.subr.bf16.mxu1 %v9755_v52 }
 0x647   :  { %6989 = vmatmul.mubr.msk.bf16.gmra.mrb[132].mxu0 %vm83_vm0, %v7759_v26 }
 0x648   :  { %7018 = vmatprep.mubr.msk.bf16.mxu0 %vm7619_vm1, %v9755_v52 }
 0x64b   :  { %7013 = vmatmul.mubr.msk.bf16.vlgmr.msra.gmra.mrb[164].mxu1 %vm469_vm2, %v3371_v58  ;;  %v8937_v58 = vld [vmem:[%s9724_s6 + $0x2] ss:$0 sm:$0xff] }
 0x64c   :  { %7023 = vmatpush3.bf16.xpose.msra.mxu1 %v3631_v0  ;;  %7024 = vmatprep.mubr.msk.bf16.mxu1 %vm7619_vm1, %v9755_v52 }
 0x64d   :  { %7034 = vmatprep.subr.bf16.mxu1 %v9755_v52 }
 0x64f   :  { %7019 = vmatmul.mubr.msk.bf16.vlgmr.msra.gmra.mrb[136].mxu0 %vm469_vm2, %v3372_v37 }
 0x650   :  { %7029 = vmatpush3.bf16.xpose.msra.mxu0 %v3678_v56  ;;  %7030 = vmatprep.mubr.msk.bf16.mxu0 %vm7619_vm1, %v9755_v52 }
 0x651   :  { %7040 = vmatprep.subr.bf16.mxu0 %v9755_v52 }
 0x653   :  { %7025 = vmatmul.mubr.msk.bf16.vlgmr.msra.gmra.mrb[168].mxu1 %vm469_vm2, %v3373_v32 }
 0x654   :  { %7035 = vmatpush3.bf16.xpose.msra.mxu1 %v3725_v15  ;;  %7036 = vmatprep.mubr.msk.bf16.mxu1 %vm7619_vm1, %v9755_v52 }
 0x655   :  { %7046 = vmatprep.subr.bf16.mxu1 %v9755_v52 }
 0x657   :  { %7031 = vmatmul.mubr.msk.bf16.vlgmr.msra.gmra.mrb[140].mxu0 %vm469_vm2, %v3374_v40 }
 0x658   :  { %7042 = vmatprep.mubr.msk.bf16.mxu0 %vm7619_vm1, %v9755_v52 }
 0x65b   :  { %7037 = vmatmul.mubr.msk.bf16.vlgmr.msra.gmra.mrb[172].mxu1 %vm469_vm2, %v3375_v47 }
 0x65c   :  { %7048 = vmatprep.mubr.msk.bf16.mxu1 %vm7619_vm1, %v9755_v52 }
 0x702   :  { %v6978_v11 = vpop.f32.mrb[120].mxu0 }
 0x703   :  { %v3305_v49 = vpop.f32.mrb[121].mxu0  ;;  %v3314_v63 = vadd.f32 %v6978_v11, %v8937_v58 }
 0x704   :  { %v6979_v14 = vpop.f32.mrb[122].mxu0  ;;  %v3306_v37 = vadd.f32 %v8937_v58, %v3305_v49 }
 0x705   :  { %v3317_v1 = vadd.f32 %v6979_v14, %v8937_v58  ;;  %v3308_v32 = vpop.f32.mrb[123].mxu0 }
 0x706   :  { %v3309_v50 = vadd.f32 %v8937_v58, %v3308_v32  ;;  %v3432_v34 = vpop.f32.mrb[152].mxu1 }
 0x707   :  { %v3385_v30 = vpack.c.bf16 %v3317_v1, %v3314_v63  ;;  %v8954_v47 = vadd.f32 %v8942_v18, %v3432_v34  ;;  %v6996_v40 = vpop.f32.mrb[153].mxu1 }
 0x708   :  { %v3384_v28 = vpack.c.bf16 %v3309_v50, %v3306_v37  ;;  %v3435_v60 = vpop.f32.mrb[154].mxu1 }
 0x709   :  { %v8957_v8 = vadd.f32 %v8951_v29, %v3435_v60  ;;  %v6997_v51 = vpop.f32.mrb[155].mxu1  ;;  %7047 = vmatpush3.bf16.msra.mxu1 %v3385_v30  ;;  %v3793_v42 = vsel %vm870_vm3, %v8954_v47, -inf }
 0x70a   :  { %v6982_v19 = vpop.f32.mrb[124].mxu0  ;;  %7041 = vmatpush3.bf16.msra.mxu0 %v3384_v28  ;;  %3794 = vmax.xlane.f32.xlu0 %v3793_v42  ;;  %v6199_v28 = vld [vmem:[%s9725_s7 + $0xb0] sm:$0xff] }
 0x70b   :  { %v8962_v33 = vadd.f32 %v6982_v19, %v8937_v58  ;;  %v3321_v2 = vpop.f32.mrb[125].mxu0  ;;  %v3796_v45 = vsel %vm870_vm3, %v8957_v8, -inf  ;;  %7052 = vmatprep.subr.bf16.mxu0 %v9755_v52  ;;  %7058 = vmatprep.subr.bf16.mxu1 %v9755_v52 }
 0x70c   :  { %v8969_v44 = vadd.f32 %v8937_v58, %v3321_v2  ;;  %v6983_v7 = vpop.f32.mrb[126].mxu0  ;;  %3797 = vmax.xlane.f32.xlu1 %v3796_v45  ;;  %v6200_v2 = vld [vmem:[%s9725_s7 + $0xb8] sm:$0xff] }
 0x70d   :  { %v8977_v59 = vadd.f32 %v6983_v7, %v8937_v58  ;;  %v3324_v20 = vpop.f32.mrb[127].mxu0 }
 0x70e   :  { %v8980_v54 = vadd.f32 %v8937_v58, %v3324_v20  ;;  %v3479_v24 = vpop.f32.mrb[156].mxu1 }
 0x70f   :  { %v3387_v9 = vpack.c.bf16 %v8977_v59, %v8962_v33  ;;  %v8990_v38 = vadd.f32 %v8974_v41, %v3479_v24  ;;  %v7002_v62 = vpop.f32.mrb[157].mxu1 }
 0x710   :  { %v3386_v31 = vpack.c.bf16 %v8980_v54, %v8969_v44  ;;  %v3482_v61 = vpop.f32.mrb[158].mxu1 }
 0x711   :  { %v8995_v36 = vadd.f32 %v8985_v3, %v3482_v61  ;;  %v7003_v25 = vpop.f32.mrb[159].mxu1  ;;  %v3799_v57 = vsel %vm870_vm3, %v8990_v38, -inf }
 0x712   :  { %v6986_v46 = vpop.f32.mrb[128].mxu0  ;;  %3800 = vmax.xlane.f32.xlu0 %v3799_v57 }
 0x713   :  { %v9000_v43 = vadd.f32 %v6986_v46, %v8937_v58  ;;  %v3337_v48 = vpop.f32.mrb[129].mxu0  ;;  %v3802_v21 = vsel %vm870_vm3, %v8995_v36, -inf }
 0x714   :  { %v9005_v55 = vadd.f32 %v8937_v58, %v3337_v48  ;;  %v6987_v16 = vpop.f32.mrb[130].mxu0  ;;  %3803 = vmax.xlane.f32.xlu1 %v3802_v21 }
 0x715   :  { %v9011_v39 = vadd.f32 %v6987_v16, %v8937_v58  ;;  %v3340_v5 = vpop.f32.mrb[131].mxu0 }
 0x716   :  { %v9014_v35 = vadd.f32 %v8937_v58, %v3340_v5  ;;  %v3526_v6 = vpop.f32.mrb[160].mxu1 }
 0x717   :  { %v3389_v0 = vpack.c.bf16 %v9011_v39, %v9000_v43  ;;  %v9021_v56 = vadd.f32 %v6197_v53, %v3526_v6  ;;  %v7008_v15 = vpop.f32.mrb[161].mxu1 }
 0x718   :  { %v3388_v11 = vpack.c.bf16 %v9014_v35, %v9005_v55  ;;  %v3529_v49 = vpop.f32.mrb[162].mxu1 }
 0x719   :  { %v9025_v14 = vadd.f32 %v6198_v13, %v3529_v49  ;;  %v7009_v63 = vpop.f32.mrb[163].mxu1  ;;  %v3805_v1 = vsel %vm870_vm3, %v9021_v56, -inf }
 0x71a   :  { %v6990_v32 = vpop.f32.mrb[132].mxu0  ;;  %3806 = vmax.xlane.f32.xlu0 %v3805_v1 }
 0x71b   :  { %v9030_v37 = vadd.f32 %v6990_v32, %v8937_v58  ;;  %v3353_v50 = vpop.f32.mrb[133].mxu0  ;;  %v3808_v34 = vsel %vm870_vm3, %v9025_v14, -inf }
 0x71c   :  { %v9035_v30 = vadd.f32 %v8937_v58, %v3353_v50  ;;  %v6991_v40 = vpop.f32.mrb[134].mxu0  ;;  %3809 = vmax.xlane.f32.xlu1 %v3808_v34 }
 0x71d   :  { %v9041_v60 = vadd.f32 %v6991_v40, %v8937_v58  ;;  %v3356_v51 = vpop.f32.mrb[135].mxu0 }
 0x71e   :  { %v9044_v42 = vadd.f32 %v8937_v58, %v3356_v51  ;;  %v3573_v19 = vpop.f32.mrb[164].mxu1 }
 0x71f   :  { %v3391_v45 = vpack.c.bf16 %v9041_v60, %v9030_v37  ;;  %v9051_v7 = vadd.f32 %v6199_v28, %v3573_v19  ;;  %v7014_v20 = vpop.f32.mrb[165].mxu1  ;;  %v6209_v37 = vld [vmem:[%s9726_s8 + $0x8] sm:$0xf] }
 0x720   :  { %v3390_v24 = vpack.c.bf16 %v9044_v42, %v9035_v30  ;;  %v3576_v62 = vpop.f32.mrb[166].mxu1  ;;  %v4364_v60 = vsel %vm2777_vm4, %v6209_v37, 0 }
 0x721   :  { %v9055_v61 = vadd.f32 %v6200_v2, %v3576_v62  ;;  %v7015_v25 = vpop.f32.mrb[167].mxu1  ;;  %v3811_v58 = vsel %vm870_vm3, %v9051_v7, -inf }
 0x722   :  { %v3620_v57 = vpop.f32.mrb[136].mxu0  ;;  %3812 = vmax.xlane.f32.xlu0 %v3811_v58 }
 0x723   :  { %v9060_v46 = vadd.f32 %v8942_v18, %v3620_v57  ;;  %v7020_v48 = vpop.f32.mrb[137].mxu0  ;;  %v3814_v21 = vsel %vm870_vm3, %v9055_v61, -inf }
 0x724   :  { %v3623_v16 = vpop.f32.mrb[138].mxu0  ;;  %3815 = vmax.xlane.f32.xlu1 %v3814_v21 }
 0x725   :  { %v9065_v5 = vadd.f32 %v8951_v29, %v3623_v16  ;;  %v7021_v6 = vpop.f32.mrb[139].mxu0  ;;  %v3817_v15 = vsel %vm870_vm3, %v9060_v46, -inf }
 0x726   :  { %3818 = vmax.xlane.f32.xlu0 %v3817_v15  ;;  %v3667_v49 = vpop.f32.mrb[168].mxu1 }
 0x727   :  { %v9070_v63 = vadd.f32 %v8974_v41, %v3667_v49  ;;  %v7026_v18 = vpop.f32.mrb[169].mxu1  ;;  %v3820_v1 = vsel %vm870_vm3, %v9065_v5, -inf }
 0x728   :  { %3821 = vmax.xlane.f32.xlu1 %v3820_v1  ;;  %v3670_v32 = vpop.f32.mrb[170].mxu1 }
 0x729   :  { %v9075_v50 = vadd.f32 %v8985_v3, %v3670_v32  ;;  %v7027_v29 = vpop.f32.mrb[171].mxu1  ;;  %v3823_v34 = vsel %vm870_vm3, %v9070_v63, -inf }
 0x72a   :  { %v3714_v40 = vpop.f32.mrb[140].mxu0  ;;  %3824 = vmax.xlane.f32.xlu0 %v3823_v34 }
 0x72b   :  { %v9079_v51 = vadd.f32 %v6197_v53, %v3714_v40  ;;  %v7032_v19 = vpop.f32.mrb[141].mxu0  ;;  %v3826_v41 = vsel %vm870_vm3, %v9075_v50, -inf }
 0x72c   :  { %v3717_v20 = vpop.f32.mrb[142].mxu0  ;;  %3827 = vmax.xlane.f32.xlu1 %v3826_v41 }
 0x72d   :  { %v9083_v62 = vadd.f32 %v6198_v13, %v3717_v20  ;;  %v7033_v25 = vpop.f32.mrb[143].mxu0  ;;  %v3829_v3 = vsel %vm870_vm3, %v9079_v51, -inf }
 0x72e   :  { %3830 = vmax.xlane.f32.xlu0 %v3829_v3  ;;  %v3761_v58 = vpop.f32.mrb[172].mxu1 }
 0x72f   :  { %v9087_v57 = vadd.f32 %v6199_v28, %v3761_v58  ;;  %v7038_v48 = vpop.f32.mrb[173].mxu1  ;;  %v3832_v53 = vsel %vm870_vm3, %v9083_v62, -inf }
 0x730   :  { %3833 = vmax.xlane.f32.xlu1 %v3832_v53  ;;  %v3764_v21 = vpop.f32.mrb[174].mxu1 }
 0x731   :  { %v9091_v16 = vadd.f32 %v6200_v2, %v3764_v21  ;;  %v7039_v6 = vpop.f32.mrb[175].mxu1  ;;  %v3835_v13 = vsel %vm870_vm3, %v9087_v57, -inf }
 0x732   :  { %3836 = vmax.xlane.f32.xlu0 %v3835_v13 }
 0x733   :  { %v3838_v15 = vsel %vm870_vm3, %v9091_v16, -inf }
 0x734   :  { %3839 = vmax.xlane.f32.xlu1 %v3838_v15 }
 0x797   :  { %v3795_v49 = vpop.xlane.xlu0 %3794 }
 0x798   :  { %v3841_v28 = vsub.f32 %v8954_v47, %v3795_v49 }
 0x799   :  { %v3798_v18 = vpop.xlane.xlu1 %3797 }
 0x79a   :  { %v3857_v1 = vmul.f32 1.442695, %v3841_v28  ;;  %v3842_v32 = vsub.f32 %v8957_v8, %v3798_v18 }
 0x79c   :  { %7490 = vpow2.f32 %v3857_v1  ;;  %v3859_v29 = vmul.f32 1.442695, %v3842_v32 }
 0x79e   :  { %7492 = vpow2.f32 %v3859_v29 }
 0x79f   :  { %v3801_v2 = vpop.xlane.xlu0 %3800 }
 0x7a0   :  { %v3843_v34 = vsub.f32 %v8990_v38, %v3801_v2 }
 0x7a1   :  { %v3804_v40 = vpop.xlane.xlu1 %3803 }
 0x7a2   :  { %v3861_v19 = vmul.f32 1.442695, %v3843_v34  ;;  %v3844_v41 = vsub.f32 %v8995_v36, %v3804_v40 }
 0x7a4   :  { %7494 = vpow2.f32 %v3861_v19  ;;  %v3863_v20 = vmul.f32 1.442695, %v3844_v41 }
 0x7a6   :  { %v7491_v25 = vpop.eup %7490  ;;  %7496 = vpow2.f32 %v3863_v20 }
 0x7a7   :  { %v3807_v3 = vpop.xlane.xlu0 %3806  ;;  %v3889_v47 = vsel %vm870_vm3, %v7491_v25, 0.0 }
 0x7a8   :  { %v7493_v58 = vpop.eup %7492  ;;  %v3845_v8 = vsub.f32 %v9021_v56, %v3807_v3  ;;  %3890 = vadd.xlane.f32.xlu0 %v3889_v47 }
 0x7a9   :  { %v3810_v48 = vpop.xlane.xlu1 %3809  ;;  %v3892_v53 = vsel %vm870_vm3, %v7493_v58, 0.0  ;;  %v3937_v21 = vpack.c.bf16 %v7493_v58, %v7491_v25 }
 0x7aa   :  { %v3865_v38 = vmul.f32 1.442695, %v3845_v8  ;;  %v3846_v6 = vsub.f32 %v9025_v14, %v3810_v48  ;;  %3893 = vadd.xlane.f32.xlu1 %v3892_v53 }
 0x7ab   :  { %7043 = vmatmul.mubr.msk.bf16.vlgmr.msra.gmra.mrb[144].mxu0 %vm870_vm3, %v3937_v21 }
 0x7ac   :  { %7498 = vpow2.f32 %v3865_v38  ;;  %v3867_v36 = vmul.f32 1.442695, %v3846_v6  ;;  %7053 = vmatpush3.bf16.msra.mxu0 %v3386_v31  ;;  %7054 = vmatprep.mubr.msk.bf16.mxu0 %vm7619_vm1, %v9755_v52 }
 0x7ad   :  { %7064 = vmatprep.subr.bf16.mxu0 %v9755_v52 }
 0x7ae   :  { %v7495_v56 = vpop.eup %7494  ;;  %7500 = vpow2.f32 %v3867_v36 }
 0x7af   :  { %v3813_v13 = vpop.xlane.xlu0 %3812  ;;  %v3895_v15 = vsel %vm870_vm3, %v7495_v56, 0.0 }
 0x7b0   :  { %v7497_v14 = vpop.eup %7496  ;;  %v3847_v49 = vsub.f32 %v9051_v7, %v3813_v13  ;;  %3896 = vadd.xlane.f32.xlu0 %v3895_v15 }
 0x7b1   :  { %v3816_v28 = vpop.xlane.xlu1 %3815  ;;  %v3898_v18 = vsel %vm870_vm3, %v7497_v14, 0.0  ;;  %v3938_v1 = vpack.c.bf16 %v7497_v14, %v7495_v56 }
 0x7b2   :  { %v3869_v44 = vmul.f32 1.442695, %v3847_v49  ;;  %v3848_v54 = vsub.f32 %v9055_v61, %v3816_v28  ;;  %3899 = vadd.xlane.f32.xlu1 %v3898_v18 }
 0x7b3   :  { %7049 = vmatmul.mubr.msk.bf16.vlgmr.msra.gmra.mrb[176].mxu1 %vm870_vm3, %v3938_v1  ;;  %v3819_v31 = vpop.xlane.xlu0 %3818 }
 0x7b4   :  { %7502 = vpow2.f32 %v3869_v44  ;;  %v3871_v32 = vmul.f32 1.442695, %v3848_v54  ;;  %7059 = vmatpush3.bf16.msra.mxu1 %v3387_v9  ;;  %v3849_v7 = vsub.f32 %v9060_v46, %v3819_v31  ;;  %7060 = vmatprep.mubr.msk.bf16.mxu1 %vm7619_vm1, %v9755_v52 }
 0x7b5   :  { %v3822_v29 = vpop.xlane.xlu1 %3821  ;;  %7070 = vmatprep.subr.bf16.mxu1 %v9755_v52 }
 0x7b6   :  { %v7499_v2 = vpop.eup %7498  ;;  %7504 = vpow2.f32 %v3871_v32  ;;  %v3873_v61 = vmul.f32 1.442695, %v3849_v7  ;;  %v3850_v34 = vsub.f32 %v9065_v5, %v3822_v29  ;;  %v7358_v29 = vld [vmem:[%s9718_s1 + $0x30] sm:$0xff]  }
 0x7b7   :  { %v3825_v40 = vpop.xlane.xlu0 %3824  ;;  %v3901_v19 = vsel %vm870_vm3, %v7499_v2, 0.0 }
 0x7b8   :  { %v7501_v41 = vpop.eup %7500  ;;  %7506 = vpow2.f32 %v3873_v61  ;;  %v3875_v33 = vmul.f32 1.442695, %v3850_v34  ;;  %v3851_v59 = vsub.f32 %v9070_v63, %v3825_v40  ;;  %3902 = vadd.xlane.f32.xlu0 %v3901_v19  ;;  %v7360_v61 = vld [vmem:[%s9721_s3 + $0x30] sm:$0xff]   ;;  %v7361_v34 = vld [vmem:[%s9721_s3 + $0x38] sm:$0xff]  }
 0x7b9   :  { %v3828_v9 = vpop.xlane.xlu1 %3827  ;;  %v3904_v46 = vsel %vm870_vm3, %v7501_v41, 0.0  ;;  %v3939_v20 = vpack.c.bf16 %v7501_v41, %v7499_v2  ;;  %v7359_v2 = vld [vmem:[%s9718_s1 + $0x38] sm:$0xff]  }
 0x7ba   :  { %7508 = vpow2.f32 %v3875_v33  ;;  %v3877_v25 = vmul.f32 1.442695, %v3851_v59  ;;  %v3852_v3 = vsub.f32 %v9075_v50, %v3828_v9  ;;  %3905 = vadd.xlane.f32.xlu1 %v3904_v46 }
 0x7bb   :  { %7055 = vmatmul.mubr.msk.bf16.vlgmr.msra.gmra.mrb[148].mxu0 %vm870_vm3, %v3939_v20  ;;  %v3831_v5 = vpop.xlane.xlu0 %3830 }
 0x7bc   :  { %7510 = vpow2.f32 %v3877_v25  ;;  %v3879_v47 = vmul.f32 1.442695, %v3852_v3  ;;  %7065 = vmatpush3.bf16.msra.mxu0 %v3388_v11  ;;  %v3853_v63 = vsub.f32 %v9079_v51, %v3831_v5  ;;  %7066 = vmatprep.mubr.msk.bf16.mxu0 %vm7619_vm1, %v9755_v52 }
 0x7bd   :  { %v3834_v58 = vpop.xlane.xlu1 %3833  ;;  %7076 = vmatprep.subr.bf16.mxu0 %v9755_v52 }
 0x7be   :  { %v7503_v8 = vpop.eup %7502  ;;  %7512 = vpow2.f32 %v3879_v47  ;;  %v3881_v50 = vmul.f32 1.442695, %v3853_v63  ;;  %v3854_v48 = vsub.f32 %v9083_v62, %v3834_v58 }
 0x7bf   :  { %v3837_v53 = vpop.xlane.xlu0 %3836  ;;  %v3907_v21 = vsel %vm870_vm3, %v7503_v8, 0.0 }
 0x7c0   :  { %v7505_v38 = vpop.eup %7504  ;;  %7514 = vpow2.f32 %v3881_v50  ;;  %v3883_v55 = vmul.f32 1.442695, %v3854_v48  ;;  %v3855_v35 = vsub.f32 %v9087_v57, %v3837_v53  ;;  %3908 = vadd.xlane.f32.xlu0 %v3907_v21 }
 0x7c1   :  { %v3840_v11 = vpop.xlane.xlu1 %3839  ;;  %v3910_v51 = vsel %vm870_vm3, %v7505_v38, 0.0  ;;  %v3940_v6 = vpack.c.bf16 %v7505_v38, %v7503_v8 }
 0x7c2   :  { %v7507_v36 = vpop.eup %7506  ;;  %7516 = vpow2.f32 %v3883_v55  ;;  %v3885_v56 = vmul.f32 1.442695, %v3855_v35  ;;  %v3856_v13 = vsub.f32 %v9091_v16, %v3840_v11  ;;  %3911 = vadd.xlane.f32.xlu1 %v3910_v51 }
 0x7c3   :  { %7061 = vmatmul.mubr.msk.bf16.vlgmr.msra.gmra.mrb[180].mxu1 %vm870_vm3, %v3940_v6  ;;  %v3913_v62 = vsel %vm870_vm3, %v7507_v36, 0.0 }
 0x7c4   :  { %v7509_v15 = vpop.eup %7508  ;;  %7518 = vpow2.f32 %v3885_v56  ;;  %v3887_v14 = vmul.f32 1.442695, %v3856_v13  ;;  %7071 = vmatpush3.bf16.msra.mxu1 %v3389_v0  ;;  %3914 = vadd.xlane.f32.xlu0 %v3913_v62  ;;  %v7357_v62 = vld [vmem:[%s9720_s2 + $0x38] sm:$0xff]  }
 0x7c5   :  { %v3916_v57 = vsel %vm870_vm3, %v7509_v15, 0.0  ;;  %v3941_v49 = vpack.c.bf16 %v7509_v15, %v7507_v36  ;;  %7072 = vmatprep.mubr.msk.bf16.mxu1 %vm7619_vm1, %v9755_v52  ;;  %7082 = vmatprep.subr.bf16.mxu1 %v9755_v52 }
 0x7c6   :  { %v7511_v16 = vpop.eup %7510  ;;  %7520 = vpow2.f32 %v3887_v14  ;;  %3917 = vadd.xlane.f32.xlu1 %v3916_v57 }
 0x7c7   :  { %7067 = vmatmul.mubr.msk.bf16.vlgmr.msra.gmra.mrb[152].mxu0 %vm870_vm3, %v3941_v49  ;;  %v3919_v28 = vsel %vm870_vm3, %v7511_v16, 0.0 }
 0x7c8   :  { %v7513_v18 = vpop.eup %7512  ;;  %7077 = vmatpush3.bf16.msra.mxu0 %v3390_v24  ;;  %3920 = vadd.xlane.f32.xlu0 %v3919_v28 }
 0x7c9   :  { %v3922_v43 = vsel %vm870_vm3, %v7513_v18, 0.0  ;;  %v3942_v39 = vpack.c.bf16 %v7513_v18, %v7511_v16  ;;  %7078 = vmatprep.mubr.msk.bf16.mxu0 %vm7619_vm1, %v9755_v52  ;;  %7334 = vmatprep.subr.msk.bf16.mxu0 %vm2777_vm4, %v6209_v37 }
 0x7ca   :  { %v7515_v0 = vpop.eup %7514  ;;  %3923 = vadd.xlane.f32.xlu1 %v3922_v43 }
 0x7cb   :  { %7073 = vmatmul.mubr.msk.bf16.vlgmr.msra.gmra.mrb[184].mxu1 %vm870_vm3, %v3942_v39  ;;  %v3925_v1 = vsel %vm870_vm3, %v7515_v0, 0.0 }
 0x7cc   :  { %v7517_v44 = vpop.eup %7516  ;;  %7083 = vmatpush3.bf16.msra.mxu1 %v3391_v45  ;;  %3926 = vadd.xlane.f32.xlu0 %v3925_v1  ;;  %v9181_v45 = vld [vmem:[%s9720_s2 + $0x30] sm:$0xff]  }
 0x7cd   :  { %v3928_v30 = vsel %vm870_vm3, %v7517_v44, 0.0  ;;  %v3943_v42 = vpack.c.bf16 %v7517_v44, %v7515_v0  ;;  %7084 = vmatprep.mubr.msk.bf16.mxu1 %vm7619_vm1, %v9755_v52  ;;  %7106 = vmatprep.subr.bf16.mxu1 %v7358_v29 }
 0x7ce   :  { %v7519_v24 = vpop.eup %7518  ;;  %3929 = vadd.xlane.f32.xlu1 %v3928_v30 }
 0x7cf   :  { %7079 = vmatmul.mubr.msk.bf16.vlgmr.msra.gmra.mrb[156].mxu0 %vm870_vm3, %v3943_v42  ;;  %v3931_v54 = vsel %vm870_vm3, %v7519_v24, 0.0 }
 0x7d0   :  { %v7521_v31 = vpop.eup %7520  ;;  %3932 = vadd.xlane.f32.xlu0 %v3931_v54  ;;  %7089 = vmatpush3.bf16.msra.mxu0 %v4364_v60 }
 0x7d1   :  { %v3934_v32 = vsel %vm870_vm3, %v7521_v31, 0.0  ;;  %v3944_v7 = vpack.c.bf16 %v7521_v31, %v7519_v24  ;;  %7126 = vmatprep.subr.bf16.mxu0 %v9181_v45 }
 0x7d2   :  { %3935 = vadd.xlane.f32.xlu1 %v3934_v32 }
 0x7d3   :  { %7085 = vmatmul.mubr.msk.bf16.vlgmr.msra.gmra.mrb[188].mxu1 %vm870_vm3, %v3944_v7 }
 0x7d4   :  { %7110 = vmatprep.mubr.msk.bf16.mxu1 %vm83_vm0, %v7725_v17  ;;  %7107 = vmatpush3.bf16.msra.mxu1 %v7358_v29 }
 0x7d5   :  { %7108 = vmatprep.subr.bf16.mxu1 %v7359_v2 }
 0x7d8   :  { %7109 = vmatpush3.bf16.msra.mxu1 %v7359_v2 }
 0x7d9   :  { %7146 = vmatprep.subr.bf16.mxu1 %v7360_v61 }
 0x7db   :  { %7111 = vmatmul.mubr.msk.bf16.vlgmr.msra.gmra.mrb[192].mxu1 %vm83_vm0, %v7741_v22 }
 0x7dc   :  { %7114 = vmatprep.mubr.msk.bf16.mxu1 %vm83_vm0, %v7747_v23  ;;  %7147 = vmatpush3.bf16.msra.mxu1 %v7360_v61 }
 0x7dd   :  { %7148 = vmatprep.subr.bf16.mxu1 %v7361_v34 }
 0x7e0   :  { %7149 = vmatpush3.bf16.msra.mxu1 %v7361_v34 }
 0x7e1   :  { %7172 = vmatprep.subr.bf16.mxu1 %v9755_v52 }
 0x7e3   :  { %7115 = vmatmul.mubr.msk.bf16.gmra.mrb[196].mxu1 %vm83_vm0, %v7763_v27 }
 0x7e4   :  { %7118 = vmatprep.mubr.msk.bf16.mxu1 %vm83_vm0, %v7687_v4 }
 0x7eb   :  { %7119 = vmatmul.mubr.msk.bf16.gmra.mrb[200].mxu1 %vm83_vm0, %v7706_v10 }
 0x7ec   :  { %7122 = vmatprep.mubr.msk.bf16.mxu1 %vm83_vm0, %v7711_v12 }
 0x7f3   :  { %7123 = vmatmul.mubr.msk.bf16.gmra.mrb[204].mxu1 %vm83_vm0, %v7759_v26 }
 0x7f4   :  { %7150 = vmatprep.mubr.msk.bf16.mxu1 %vm83_vm0, %v7725_v17 }
 0x7fb   :  { %7151 = vmatmul.mubr.msk.bf16.vlgmr.msra.gmra.mrb[208].mxu1 %vm83_vm0, %v7741_v22 }
 0x7fc   :  { %7154 = vmatprep.mubr.msk.bf16.mxu1 %vm83_vm0, %v7747_v23 }
 0x803   :  { %7155 = vmatmul.mubr.msk.bf16.gmra.mrb[212].mxu1 %vm83_vm0, %v7763_v27 }
 0x804   :  { %7158 = vmatprep.mubr.msk.bf16.mxu1 %vm83_vm0, %v7687_v4 }
 0x80b   :  { %7159 = vmatmul.mubr.msk.bf16.gmra.mrb[216].mxu1 %vm83_vm0, %v7706_v10 }
 0x80c   :  { %7162 = vmatprep.mubr.msk.bf16.mxu1 %vm83_vm0, %v7711_v12 }
 0x813   :  { %7163 = vmatmul.mubr.msk.bf16.gmra.mrb[220].mxu1 %vm83_vm0, %v7759_v26 }
 0x814   :  { %7174 = vmatprep.mubr.msk.bf16.mxu1 %vm7619_vm1, %v9755_v52 }
 0x835   :  { %v3891_v40 = vpop.xlane.xlu0 %3890 }
 0x836   :  { %7522 = vrcp.f32 %v3891_v40 }
 0x837   :  { %v3894_v19 = vpop.xlane.xlu1 %3893 }
 0x838   :  { %7524 = vrcp.f32 %v3894_v19 }
 0x83d   :  { %v3897_v41 = vpop.xlane.xlu0 %3896 }
 0x83e   :  { %7526 = vrcp.f32 %v3897_v41 }
 0x83f   :  { %v3900_v33 = vpop.xlane.xlu1 %3899 }
 0x840   :  { %7528 = vrcp.f32 %v3900_v33  ;;  %v7523_v46 = vpop.eup %7522 }
 0x842   :  { %v7525_v3 = vpop.eup %7524 }
 0x845   :  { %v3903_v59 = vpop.xlane.xlu0 %3902 }
 0x846   :  { %7530 = vrcp.f32 %v3903_v59 }
 0x847   :  { %v3906_v20 = vpop.xlane.xlu1 %3905 }
 0x848   :  { %7532 = vrcp.f32 %v3906_v20  ;;  %v7527_v21 = vpop.eup %7526 }
 0x84a   :  { %v7529_v55 = vpop.eup %7528 }
 0x84d   :  { %v3909_v8 = vpop.xlane.xlu0 %3908 }
 0x84e   :  { %7534 = vrcp.f32 %v3909_v8 }
 0x84f   :  { %v3912_v50 = vpop.xlane.xlu1 %3911 }
 0x850   :  { %7536 = vrcp.f32 %v3912_v50  ;;  %v7531_v57 = vpop.eup %7530 }
 0x851   :  { %v3915_v35 = vpop.xlane.xlu0 %3914 }
 0x852   :  { %v7533_v28 = vpop.eup %7532  ;;  %7538 = vrcp.f32 %v3915_v35 }
 0x853   :  { %v3918_v51 = vpop.xlane.xlu1 %3917 }
 0x854   :  { %7540 = vrcp.f32 %v3918_v51 }
 0x855   :  { %v3921_v15 = vpop.xlane.xlu0 %3920 }
 0x856   :  { %7542 = vrcp.f32 %v3921_v15 }
 0x857   :  { %v3924_v49 = vpop.xlane.xlu1 %3923 }
 0x858   :  { %7544 = vrcp.f32 %v3924_v49  ;;  %v7535_v24 = vpop.eup %7534 }
 0x859   :  { %v3927_v44 = vpop.xlane.xlu0 %3926 }
 0x85a   :  { %v7537_v31 = vpop.eup %7536  ;;  %7546 = vrcp.f32 %v3927_v44 }
 0x85b   :  { %v3930_v30 = vpop.xlane.xlu1 %3929 }
 0x85c   :  { %7548 = vrcp.f32 %v3930_v30  ;;  %v7539_v2 = vpop.eup %7538 }
 0x85e   :  { %v7541_v19 = vpop.eup %7540 }
 0x85f   :  { %v3936_v61 = vpop.xlane.xlu1 %3935 }
 0x860   :  { %v7543_v20 = vpop.eup %7542 }
 0x87e   :  { %v3982_v9 = vpop.f32.mrb[144].mxu0 }
 0x87f   :  { %v7044_v25 = vpop.f32.mrb[145].mxu0  ;;  %v4313_v47 = vmul.f32 %v7523_v46, %v3982_v9 }
 0x880   :  { %v3985_v5 = vpop.f32.mrb[146].mxu0 }
 0x881   :  { %v4314_v63 = vmul.f32 %v7525_v3, %v3985_v5  ;;  %v7045_v58 = vpop.f32.mrb[147].mxu0  ;;  %v7545_v5 = vpop.eup %7544 }
 0x883   :  { %v4329_v48 = vpack.c.bf16 %v4314_v63, %v4313_v47 }
 0x885   :  { %7090 = vmatprep.mubr.msk.bf16.mxu0 %vm469_vm2, %v4329_v48  ;;  %v7547_v48 = vpop.eup %7546 }
 0x886   :  { %v4026_v53 = vpop.f32.mrb[176].mxu1 }
 0x887   :  { %v7050_v38 = vpop.f32.mrb[177].mxu1  ;;  %v4315_v6 = vmul.f32 %v7527_v21, %v4026_v53 }
 0x888   :  { %v4029_v11 = vpop.f32.mrb[178].mxu1  ;;  %v7549_v38 = vpop.eup %7548 }
 0x889   :  { %v4316_v36 = vmul.f32 %v7529_v55, %v4029_v11  ;;  %v7051_v56 = vpop.f32.mrb[179].mxu1 }
 0x88b   :  { %v4330_v13 = vpack.c.bf16 %v4316_v36, %v4315_v6 }
 0x88d   :  { %7091 = vmatmul.mubr.msk.bf16.vlgmr.msra.gmra.mrb[104].mxu0 %vm469_vm2, %v4330_v13 }
 0x88e   :  { %v4070_v14 = vpop.f32.mrb[148].mxu0  ;;  %7127 = vmatpush3.bf16.msra.mxu0 %v9181_v45  ;;  %v3933_v45 = vpop.xlane.xlu0 %3932 }
 0x88f   :  { %v7056_v16 = vpop.f32.mrb[149].mxu0  ;;  %7128 = vmatprep.subr.bf16.mxu0 %v7357_v62  ;;  %v4317_v43 = vmul.f32 %v7531_v57, %v4070_v14  ;;  %7550 = vrcp.f32 %v3933_v45 }
 0x890   :  { %v4073_v18 = vpop.f32.mrb[150].mxu0  ;;  %7552 = vrcp.f32 %v3936_v61 }
 0x891   :  { %v4318_v39 = vmul.f32 %v7533_v28, %v4073_v18  ;;  %v7057_v0 = vpop.f32.mrb[151].mxu0 }
 0x892   :  { %7129 = vmatpush3.bf16.msra.mxu0 %v7357_v62 }
 0x893   :  { %v4331_v1 = vpack.c.bf16 %v4318_v39, %v4317_v43  ;;  %7166 = vmatprep.subr.bf16.mxu0 %v9755_v52 }
 0x895   :  { %7094 = vmatprep.mubr.msk.bf16.mxu0 %vm469_vm2, %v4331_v1 }
 0x896   :  { %v4114_v42 = vpop.f32.mrb[180].mxu1 }
 0x897   :  { %v7062_v54 = vpop.f32.mrb[181].mxu1  ;;  %v4319_v7 = vmul.f32 %v7535_v24, %v4114_v42 }
 0x898   :  { %v4117_v32 = vpop.f32.mrb[182].mxu1 }
 0x899   :  { %v4320_v37 = vmul.f32 %v7537_v31, %v4117_v32  ;;  %v7063_v60 = vpop.f32.mrb[183].mxu1  ;;  %v7551_v36 = vpop.eup %7550 }
 0x89a   :  { %v4158_v29 = vpop.f32.mrb[152].mxu0  ;;  %v7553_v62 = vpop.eup %7552 }
 0x89b   :  { %v4332_v34 = vpack.c.bf16 %v4320_v37, %v4319_v7  ;;  %v7068_v40 = vpop.f32.mrb[153].mxu0  ;;  %v4321_v33 = vmul.f32 %v7539_v2, %v4158_v29 }
 0x89c   :  { %v4161_v41 = vpop.f32.mrb[154].mxu0 }
 0x89d   :  { %v4322_v59 = vmul.f32 %v7541_v19, %v4161_v41  ;;  %v7069_v9 = vpop.f32.mrb[155].mxu0  ;;  %7095 = vmatmul.mubr.msk.bf16.gmra.mrb[108].mxu0 %vm469_vm2, %v4332_v34 }
 0x89e   :  { %v4202_v46 = vpop.f32.mrb[184].mxu1 }
 0x89f   :  { %v4333_v25 = vpack.c.bf16 %v4322_v59, %v4321_v33  ;;  %v7074_v3 = vpop.f32.mrb[185].mxu1  ;;  %v4323_v63 = vmul.f32 %v7543_v20, %v4202_v46 }
 0x8a0   :  { %v4205_v47 = vpop.f32.mrb[186].mxu1 }
 0x8a1   :  { %v4324_v58 = vmul.f32 %v7545_v5, %v4205_v47  ;;  %v7075_v8 = vpop.f32.mrb[187].mxu1  ;;  %7098 = vmatprep.mubr.msk.bf16.mxu0 %vm469_vm2, %v4333_v25 }
 0x8a2   :  { %v4246_v50 = vpop.f32.mrb[156].mxu0 }
 0x8a3   :  { %v4334_v53 = vpack.c.bf16 %v4324_v58, %v4323_v63  ;;  %v7080_v21 = vpop.f32.mrb[157].mxu0  ;;  %v4325_v35 = vmul.f32 %v7547_v48, %v4246_v50  ;;  %v9314_v58 = vld [vmem:[%s9724_s6 + $0x3] ss:$0 sm:$0xff] }
 0x8a4   :  { %v4249_v55 = vpop.f32.mrb[158].mxu0 }
 0x8a5   :  { %v4326_v11 = vmul.f32 %v7549_v38, %v4249_v55  ;;  %v7081_v51 = vpop.f32.mrb[159].mxu0  ;;  %7099 = vmatmul.mubr.msk.bf16.gmra.mrb[112].mxu0 %vm469_vm2, %v4334_v53 }
 0x8a6   :  { %v4290_v6 = vpop.f32.mrb[188].mxu1 }
 0x8a7   :  { %v4335_v56 = vpack.c.bf16 %v4326_v11, %v4325_v35  ;;  %v7086_v13 = vpop.f32.mrb[189].mxu1  ;;  %v4327_v14 = vmul.f32 %v7551_v36, %v4290_v6 }
 0x8a8   :  { %v4293_v15 = vpop.f32.mrb[190].mxu1 }
 0x8a9   :  { %v4328_v57 = vmul.f32 %v7553_v62, %v4293_v15  ;;  %v7087_v49 = vpop.f32.mrb[191].mxu1  ;;  %7102 = vmatprep.mubr.msk.bf16.mxu0 %vm469_vm2, %v4335_v56 }
 0x8ab   :  { %v4336_v16 = vpack.c.bf16 %v4328_v57, %v4327_v14 }
 0x8ad   :  { %7103 = vmatmul.mubr.msk.bf16.gmra.mrb[116].mxu0 %vm469_vm2, %v4336_v16 }
 0x8ae   :  { %7130 = vmatprep.mubr.msk.bf16.mxu0 %vm83_vm0, %v7725_v17  ;;  %v7112_v17 = vpop.f32.mrb[192].mxu1 }
 0x8b5   :  { %7131 = vmatmul.mubr.msk.bf16.vlgmr.msra.gmra.mrb[160].mxu0 %vm83_vm0, %v7741_v22  ;;  %v6223_v22 = vld [vmem:[%s9722_s4 + $0x3] ss:$0 sm:$0xff] }
 0x8b6   :  { %7134 = vmatprep.mubr.msk.bf16.mxu0 %vm83_vm0, %v7747_v23  ;;  %v4538_v23 = vpop.f32.mrb[193].mxu1 }
 0x8b7   :  { %v9265_v28 = vadd.f32 %v6223_v22, %v4538_v23 }
 0x8bd   :  { %7135 = vmatmul.mubr.msk.bf16.gmra.mrb[164].mxu0 %vm83_vm0, %v7763_v27  ;;  %v9263_v27 = vadd.f32 %v7112_v17, %v6223_v22 }
 0x8be   :  { %7138 = vmatprep.mubr.msk.bf16.mxu0 %vm83_vm0, %v7687_v4  ;;  %v7113_v4 = vpop.f32.mrb[194].mxu1 }
 0x8bf   :  { %v9267_v18 = vadd.f32 %v7113_v4, %v6223_v22 }
 0x8c5   :  { %7139 = vmatmul.mubr.msk.bf16.gmra.mrb[168].mxu0 %vm83_vm0, %v7706_v10  ;;  %v4541_v10 = vpop.f32.mrb[195].mxu1 }
 0x8c6   :  { %7142 = vmatprep.mubr.msk.bf16.mxu0 %vm83_vm0, %v7711_v12  ;;  %v9269_v12 = vadd.f32 %v6223_v22, %v4541_v10  ;;  %v7116_v39 = vpop.f32.mrb[196].mxu1 }
 0x8c7   :  { %v4554_v0 = vpop.f32.mrb[197].mxu1  ;;  %v9275_v1 = vadd.f32 %v7116_v39, %v6223_v22 }
 0x8c8   :  { %v4845_v43 = vpack.c.bf16 %v9269_v12, %v9265_v28  ;;  %v7117_v44 = vpop.f32.mrb[198].mxu1  ;;  %v9277_v30 = vadd.f32 %v6223_v22, %v4554_v0 }
 0x8c9   :  { %v4557_v42 = vpop.f32.mrb[199].mxu1  ;;  %v9279_v24 = vadd.f32 %v7117_v44, %v6223_v22 }
 0x8ca   :  { %v9281_v54 = vadd.f32 %v6223_v22, %v4557_v42  ;;  %v7120_v7 = vpop.f32.mrb[200].mxu1 }
 0x8cb   :  { %v4848_v31 = vpack.c.bf16 %v9279_v24, %v9275_v1  ;;  %v4570_v37 = vpop.f32.mrb[201].mxu1  ;;  %v9287_v60 = vadd.f32 %v7120_v7, %v6223_v22 }
 0x8cc   :  { %v4847_v32 = vpack.c.bf16 %v9281_v54, %v9277_v30  ;;  %v7121_v45 = vpop.f32.mrb[202].mxu1  ;;  %v9289_v29 = vadd.f32 %v6223_v22, %v4570_v37 }
 0x8cd   :  { %7143 = vmatmul.mubr.msk.bf16.gmra.mrb[172].mxu0 %vm83_vm0, %v7759_v26  ;;  %v4846_v26 = vpack.c.bf16 %v9267_v18, %v9263_v27  ;;  %v4573_v2 = vpop.f32.mrb[203].mxu1  ;;  %v9291_v61 = vadd.f32 %v7121_v45, %v6223_v22  ;;  %v9369_v45 = vld [vmem:[%s9723_s5 + $0x3] ss:$0 sm:$0xff] }
 0x8ce   :  { %7168 = vmatprep.mubr.msk.bf16.mxu0 %vm7619_vm1, %v9755_v52  ;;  %v9293_v34 = vadd.f32 %v6223_v22, %v4573_v2  ;;  %v7124_v41 = vpop.f32.mrb[204].mxu1 }
 0x8cf   :  { %v4850_v40 = vpack.c.bf16 %v9291_v61, %v9287_v60  ;;  %v9299_v33 = vadd.f32 %v7124_v41, %v6223_v22  ;;  %v4586_v59 = vpop.f32.mrb[205].mxu1 }
 0x8d0   :  { %v4849_v19 = vpack.c.bf16 %v9293_v34, %v9289_v29  ;;  %v9301_v9 = vadd.f32 %v6223_v22, %v4586_v59  ;;  %v7125_v46 = vpop.f32.mrb[206].mxu1 }
 0x8d1   :  { %v9303_v20 = vadd.f32 %v7125_v46, %v6223_v22  ;;  %v4589_v25 = vpop.f32.mrb[207].mxu1 }
 0x8d2   :  { %v9305_v3 = vadd.f32 %v6223_v22, %v4589_v25  ;;  %v7152_v63 = vpop.f32.mrb[208].mxu1 }
 0x8d3   :  { %v4852_v5 = vpack.c.bf16 %v9303_v20, %v9299_v33  ;;  %v9317_v8 = vadd.f32 %v7152_v63, %v9314_v58  ;;  %v4782_v50 = vpop.f32.mrb[209].mxu1 }
 0x8d4   :  { %v4851_v47 = vpack.c.bf16 %v9305_v3, %v9301_v9  ;;  %v9320_v48 = vadd.f32 %v9314_v58, %v4782_v50  ;;  %v7153_v53 = vpop.f32.mrb[210].mxu1  ;;  %v6274_v3 = vld [vmem:[%s9725_s7 + $0xc0] sm:$0xff] }
 0x8d5   :  { %v9323_v21 = vadd.f32 %v7153_v53, %v9314_v58  ;;  %v4785_v38 = vpop.f32.mrb[211].mxu1 }
 0x8d6   :  { %v9326_v55 = vadd.f32 %v9314_v58, %v4785_v38  ;;  %v7156_v51 = vpop.f32.mrb[212].mxu1 }
 0x8d7   :  { %v4862_v35 = vpack.c.bf16 %v9323_v21, %v9317_v8  ;;  %v9333_v6 = vadd.f32 %v7156_v51, %v9314_v58  ;;  %v4798_v36 = vpop.f32.mrb[213].mxu1  ;;  %v6275_v8 = vld [vmem:[%s9725_s7 + $0xc8] sm:$0xff] }
 0x8d8   :  { %v4861_v11 = vpack.c.bf16 %v9326_v55, %v9320_v48  ;;  %v9336_v56 = vadd.f32 %v9314_v58, %v4798_v36  ;;  %v7157_v13 = vpop.f32.mrb[214].mxu1 }
 0x8d9   :  { %v9339_v62 = vadd.f32 %v7157_v13, %v9314_v58  ;;  %v4801_v15 = vpop.f32.mrb[215].mxu1 }
 0x8da   :  { %v9342_v14 = vadd.f32 %v9314_v58, %v4801_v15 }
 0x8db   :  { %v4864_v57 = vpack.c.bf16 %v9339_v62, %v9333_v6 }
 0x8dc   :  { %v4863_v49 = vpack.c.bf16 %v9342_v14, %v9336_v56 }
 0x8de   :  { %v7160_v16 = vpop.f32.mrb[216].mxu1 }
 0x8df   :  { %v9349_v17 = vadd.f32 %v7160_v16, %v9314_v58  ;;  %v4814_v22 = vpop.f32.mrb[217].mxu1 }
 0x8e0   :  { %v9352_v23 = vadd.f32 %v9314_v58, %v4814_v22  ;;  %v7161_v4 = vpop.f32.mrb[218].mxu1 }
 0x8e1   :  { %v9355_v10 = vadd.f32 %v7161_v4, %v9314_v58  ;;  %v4817_v39 = vpop.f32.mrb[219].mxu1 }
 0x8e2   :  { %v9358_v0 = vadd.f32 %v9314_v58, %v4817_v39 }
 0x8e3   :  { %v4866_v44 = vpack.c.bf16 %v9355_v10, %v9349_v17 }
 0x8e4   :  { %v4865_v42 = vpack.c.bf16 %v9358_v0, %v9352_v23 }
 0x8e6   :  { %v9364_v7 = vpop.f32.mrb[220].mxu1 }
 0x8e7   :  { %v4830_v60 = vpop.f32.mrb[221].mxu1  ;;  %v9461_v29 = vadd.f32 %v9364_v7, %v9314_v58  ;;  %v6277_v7 = vld [vmem:[%s9725_s7 + $0xd8] sm:$0xff] }
 0x8e8   :  { %v7165_v61 = vpop.f32.mrb[222].mxu1 }
 0x8e9   :  { %v4833_v34 = vpop.f32.mrb[223].mxu1 }
 0x8ea   :  { %v9470_v33 = vadd.f32 %v9314_v58, %v4833_v34 }
 0x988   :  { %v7132_v37 = vpop.f32.mrb[160].mxu0 }
 0x989   :  { %v4660_v2 = vpop.f32.mrb[161].mxu0  ;;  %v4669_v59 = vadd.f32 %v7132_v37, %v9369_v45 }
 0x98a   :  { %v7133_v41 = vpop.f32.mrb[162].mxu0  ;;  %v4661_v63 = vadd.f32 %v9369_v45, %v4660_v2 }
 0x98b   :  { %v4672_v46 = vadd.f32 %v7133_v41, %v9369_v45  ;;  %v4663_v25 = vpop.f32.mrb[163].mxu0 }
 0x98c   :  { %v4664_v50 = vadd.f32 %v9369_v45, %v4663_v25 }
 0x98d   :  { %v4854_v53 = vpack.c.bf16 %v4672_v46, %v4669_v59 }
 0x98e   :  { %v4853_v38 = vpack.c.bf16 %v4664_v50, %v4661_v63 }
 0x98f   :  { %v4920_v51 = vsel %vm469_vm2, %v4854_v53, 0 }
 0x990   :  { %v7136_v36 = vpop.f32.mrb[164].mxu0  ;;  %7173 = vmatpush3.bf16.xpose.msra.mxu1 %v4920_v51  ;;  %v4873_v13 = vsel %vm469_vm2, %v4853_v38, 0 }
 0x991   :  { %v4676_v15 = vpop.f32.mrb[165].mxu0  ;;  %7167 = vmatpush3.bf16.xpose.msra.mxu0 %v4873_v13  ;;  %7184 = vmatprep.subr.bf16.mxu1 %v9755_v52  ;;  %v4685_v22 = vadd.f32 %v7136_v36, %v9369_v45 }
 0x992   :  { %v7137_v16 = vpop.f32.mrb[166].mxu0  ;;  %7178 = vmatprep.subr.bf16.mxu0 %v9755_v52  ;;  %v4677_v37 = vadd.f32 %v9369_v45, %v4676_v15 }
 0x993   :  { %v4688_v4 = vadd.f32 %v7137_v16, %v9369_v45  ;;  %v4679_v39 = vpop.f32.mrb[167].mxu0 }
 0x994   :  { %v4680_v2 = vadd.f32 %v9369_v45, %v4679_v39 }
 0x995   :  { %v4856_v41 = vpack.c.bf16 %v4688_v4, %v4685_v22 }
 0x996   :  { %v4855_v59 = vpack.c.bf16 %v4680_v2, %v4677_v37 }
 0x997   :  { %7175 = vmatmul.mubr.msk.bf16.vlgmr.msra.gmra.mrb[224].mxu1 %vm469_vm2, %v4846_v26  ;;  %v5014_v46 = vsel %vm469_vm2, %v4856_v41, 0 }
 0x998   :  { %v7140_v25 = vpop.f32.mrb[168].mxu0  ;;  %7169 = vmatmul.mubr.msk.bf16.vlgmr.msra.gmra.mrb[176].mxu0 %vm469_vm2, %v4845_v43  ;;  %v4967_v63 = vsel %vm469_vm2, %v4855_v59, 0  ;;  %7185 = vmatpush3.bf16.xpose.msra.mxu1 %v5014_v46 }
 0x999   :  { %v4692_v50 = vpop.f32.mrb[169].mxu0  ;;  %7179 = vmatpush3.bf16.xpose.msra.mxu0 %v4967_v63  ;;  %7180 = vmatprep.mubr.msk.bf16.mxu0 %vm7619_vm1, %v9755_v52  ;;  %v4701_v27 = vadd.f32 %v7140_v25, %v9369_v45  ;;  %v6278_v63 = vld [vmem:[%s9725_s7 + $0xe0] sm:$0xff] }
 0x99a   :  { %v7141_v53 = vpop.f32.mrb[170].mxu0  ;;  %7190 = vmatprep.subr.bf16.mxu0 %v9755_v52  ;;  %7186 = vmatprep.mubr.msk.bf16.mxu1 %vm7619_vm1, %v9755_v52  ;;  %v4693_v12 = vadd.f32 %v9369_v45, %v4692_v50 }
 0x99b   :  { %v4704_v28 = vadd.f32 %v7141_v53, %v9369_v45  ;;  %v4695_v18 = vpop.f32.mrb[171].mxu0  ;;  %7196 = vmatprep.subr.bf16.mxu1 %v9755_v52 }
 0x99c   :  { %v4696_v26 = vadd.f32 %v9369_v45, %v4695_v18  ;;  %v6280_v18 = vld [vmem:[%s9725_s7 + $0xf0] sm:$0xff] }
 0x99d   :  { %v4858_v43 = vpack.c.bf16 %v4704_v28, %v4701_v27  ;;  %v6279_v28 = vld [vmem:[%s9725_s7 + $0xe8] sm:$0xff] }
 0x99e   :  { %v4857_v38 = vpack.c.bf16 %v4696_v26, %v4693_v12 }
 0x99f   :  { %7187 = vmatmul.mubr.msk.bf16.vlgmr.msra.gmra.mrb[228].mxu1 %vm469_vm2, %v4848_v31  ;;  %v5108_v51 = vsel %vm469_vm2, %v4858_v43, 0 }
 0x9a0   :  { %v7144_v36 = vpop.f32.mrb[172].mxu0  ;;  %7181 = vmatmul.mubr.msk.bf16.vlgmr.msra.gmra.mrb[180].mxu0 %vm469_vm2, %v4847_v32  ;;  %v5061_v13 = vsel %vm469_vm2, %v4857_v38, 0  ;;  %7197 = vmatpush3.bf16.xpose.msra.mxu1 %v5108_v51 }
 0x9a1   :  { %v4708_v15 = vpop.f32.mrb[173].mxu0  ;;  %7191 = vmatpush3.bf16.xpose.msra.mxu0 %v5061_v13  ;;  %7192 = vmatprep.mubr.msk.bf16.mxu0 %vm7619_vm1, %v9755_v52  ;;  %v4717_v1 = vadd.f32 %v7144_v36, %v9369_v45  ;;  %v6281_v13 = vld [vmem:[%s9725_s7 + $0xf8] sm:$0xff] }
 0x9a2   :  { %v7145_v16 = vpop.f32.mrb[174].mxu0  ;;  %7202 = vmatprep.subr.bf16.mxu0 %v9755_v52  ;;  %7198 = vmatprep.mubr.msk.bf16.mxu1 %vm7619_vm1, %v9755_v52  ;;  %v4709_v54 = vadd.f32 %v9369_v45, %v4708_v15 }
 0x9a3   :  { %v4720_v30 = vadd.f32 %v7145_v16, %v9369_v45  ;;  %v4711_v24 = vpop.f32.mrb[175].mxu0  ;;  %7208 = vmatprep.subr.bf16.mxu1 %v9755_v52 }
 0x9a4   :  { %v4712_v31 = vadd.f32 %v9369_v45, %v4711_v24 }
 0x9a5   :  { %v4860_v32 = vpack.c.bf16 %v4720_v30, %v4717_v1 }
 0x9a6   :  { %v4859_v22 = vpack.c.bf16 %v4712_v31, %v4709_v54 }
 0x9a7   :  { %7199 = vmatmul.mubr.msk.bf16.vlgmr.msra.gmra.mrb[232].mxu1 %vm469_vm2, %v4850_v40  ;;  %v5202_v4 = vsel %vm469_vm2, %v4860_v32, 0  ;;  %v9464_v40 = vadd.f32 %v9314_v58, %v4830_v60 }
 0x9a8   :  { %7193 = vmatmul.mubr.msk.bf16.vlgmr.msra.gmra.mrb[184].mxu0 %vm469_vm2, %v4849_v19  ;;  %v5155_v39 = vsel %vm469_vm2, %v4859_v22, 0  ;;  %7209 = vmatpush3.bf16.xpose.msra.mxu1 %v5202_v4  ;;  %v9467_v19 = vadd.f32 %v7165_v61, %v9314_v58  ;;  %v6276_v58 = vld [vmem:[%s9725_s7 + $0xd0] sm:$0xff] }
 0x9a9   :  { %7203 = vmatpush3.bf16.xpose.msra.mxu0 %v5155_v39  ;;  %7204 = vmatprep.mubr.msk.bf16.mxu0 %vm7619_vm1, %v9755_v52  ;;  %v4867_v20 = vpack.c.bf16 %v9470_v33, %v9464_v40 }
 0x9aa   :  { %7210 = vmatprep.mubr.msk.bf16.mxu1 %vm7619_vm1, %v9755_v52  ;;  %7214 = vmatprep.subr.bf16.mxu0 %v9755_v52  ;;  %v4868_v9 = vpack.c.bf16 %v9467_v19, %v9461_v29  ;;  %v6290_v29 = vld [vmem:[%s9726_s8 + $0xc] sm:$0xf] }
 0x9ab   :  { %7220 = vmatprep.subr.bf16.mxu1 %v9755_v52 }
 0x9af   :  { %7211 = vmatmul.mubr.msk.bf16.vlgmr.msra.gmra.mrb[236].mxu1 %vm469_vm2, %v4852_v5 }
 0x9b0   :  { %7205 = vmatmul.mubr.msk.bf16.vlgmr.msra.gmra.mrb[188].mxu0 %vm469_vm2, %v4851_v47  ;;  %7221 = vmatpush3.bf16.msra.mxu1 %v4862_v35 }
 0x9b1   :  { %7215 = vmatpush3.bf16.msra.mxu0 %v4861_v11  ;;  %7216 = vmatprep.mubr.msk.bf16.mxu0 %vm7619_vm1, %v9755_v52 }
 0x9b2   :  { %7226 = vmatprep.subr.bf16.mxu0 %v9755_v52  ;;  %7222 = vmatprep.mubr.msk.bf16.mxu1 %vm7619_vm1, %v9755_v52 }
 0x9b3   :  { %7232 = vmatprep.subr.bf16.mxu1 %v9755_v52 }
 0xa6a   :  { %v4956_v5 = vpop.f32.mrb[224].mxu1 }
 0xa6b   :  { %v4909_v47 = vpop.f32.mrb[176].mxu0  ;;  %v7176_v48 = vpop.f32.mrb[225].mxu1  ;;  %v9492_v2 = vadd.f32 %v6276_v58, %v4956_v5 }
 0xa6c   :  { %v9485_v21 = vadd.f32 %v6274_v3, %v4909_v47  ;;  %v7170_v55 = vpop.f32.mrb[177].mxu0  ;;  %v4959_v35 = vpop.f32.mrb[226].mxu1 }
 0xa6d   :  { %v4912_v11 = vpop.f32.mrb[178].mxu0  ;;  %v7177_v45 = vpop.f32.mrb[227].mxu1  ;;  %v9496_v46 = vadd.f32 %v6277_v7, %v4959_v35  ;;  %v5276_v50 = vsel %vm870_vm3, %v9492_v2, -inf }
 0xa6e   :  { %v9490_v37 = vadd.f32 %v6275_v8, %v4912_v11  ;;  %v5270_v41 = vsel %vm870_vm3, %v9485_v21, -inf  ;;  %v7171_v59 = vpop.f32.mrb[179].mxu0 }
 0xa6f   :  { %5271 = vmax.xlane.f32.xlu0 %v5270_v41  ;;  %v5279_v38 = vsel %vm870_vm3, %v9496_v46, -inf }
 0xa70   :  { %v5273_v25 = vsel %vm870_vm3, %v9490_v37, -inf }
 0xa71   :  { %5274 = vmax.xlane.f32.xlu1 %v5273_v25 }
 0xa72   :  { %v5050_v53 = vpop.f32.mrb[228].mxu1 }
 0xa73   :  { %5277 = vmax.xlane.f32.xlu0 %v5276_v50  ;;  %v5003_v27 = vpop.f32.mrb[180].mxu0  ;;  %v7188_v12 = vpop.f32.mrb[229].mxu1  ;;  %v9520_v1 = vadd.f32 %v6280_v18, %v5050_v53 }
 0xa74   :  { %v9511_v26 = vadd.f32 %v6278_v63, %v5003_v27  ;;  %v7182_v43 = vpop.f32.mrb[181].mxu0  ;;  %v5053_v51 = vpop.f32.mrb[230].mxu1 }
 0xa75   :  { %5280 = vmax.xlane.f32.xlu1 %v5279_v38  ;;  %v5006_v36 = vpop.f32.mrb[182].mxu0  ;;  %v7189_v15 = vpop.f32.mrb[231].mxu1  ;;  %v9524_v54 = vadd.f32 %v6281_v13, %v5053_v51  ;;  %v5288_v32 = vsel %vm870_vm3, %v9520_v1, -inf }
 0xa76   :  { %v9518_v16 = vadd.f32 %v6279_v28, %v5006_v36  ;;  %v5282_v30 = vsel %vm870_vm3, %v9511_v26, -inf  ;;  %v7183_v24 = vpop.f32.mrb[183].mxu0 }
 0xa77   :  { %5283 = vmax.xlane.f32.xlu0 %v5282_v30  ;;  %v5291_v34 = vsel %vm870_vm3, %v9524_v54, -inf }
 0xa78   :  { %v5285_v31 = vsel %vm870_vm3, %v9518_v16, -inf }
 0xa79   :  { %5286 = vmax.xlane.f32.xlu1 %v5285_v31 }
 0xa7a   :  { %v5144_v22 = vpop.f32.mrb[232].mxu1 }
 0xa7b   :  { %5289 = vmax.xlane.f32.xlu0 %v5288_v32  ;;  %v5097_v4 = vpop.f32.mrb[184].mxu0  ;;  %v7200_v39 = vpop.f32.mrb[233].mxu1  ;;  %v9536_v35 = vadd.f32 %v6276_v58, %v5144_v22 }
 0xa7c   :  { %v9530_v60 = vadd.f32 %v6274_v3, %v5097_v4  ;;  %v7194_v61 = vpop.f32.mrb[185].mxu0  ;;  %v5147_v5 = vpop.f32.mrb[234].mxu1 }
 0xa7d   :  { %5292 = vmax.xlane.f32.xlu1 %v5291_v34  ;;  %v5100_v47 = vpop.f32.mrb[186].mxu0  ;;  %v7201_v48 = vpop.f32.mrb[235].mxu1  ;;  %v9540_v41 = vadd.f32 %v6277_v7, %v5147_v5  ;;  %v5300_v59 = vsel %vm870_vm3, %v9536_v35, -inf }
 0xa7e   :  { %v9534_v55 = vadd.f32 %v6275_v8, %v5100_v47  ;;  %v5294_v11 = vsel %vm870_vm3, %v9530_v60, -inf  ;;  %v7195_v45 = vpop.f32.mrb[187].mxu0 }
 0xa7f   :  { %5295 = vmax.xlane.f32.xlu0 %v5294_v11  ;;  %v5303_v27 = vsel %vm870_vm3, %v9540_v41, -inf }
 0xa80   :  { %v5297_v3 = vsel %vm870_vm3, %v9534_v55, -inf }
 0xa81   :  { %5298 = vmax.xlane.f32.xlu1 %v5297_v3 }
 0xa82   :  { %v5238_v25 = vpop.f32.mrb[236].mxu1 }
 0xa83   :  { %5301 = vmax.xlane.f32.xlu0 %v5300_v59  ;;  %v5191_v8 = vpop.f32.mrb[188].mxu0  ;;  %v7212_v50 = vpop.f32.mrb[237].mxu1  ;;  %v9552_v51 = vadd.f32 %v6280_v18, %v5238_v25 }
 0xa84   :  { %v9546_v58 = vadd.f32 %v6278_v63, %v5191_v8  ;;  %v7206_v53 = vpop.f32.mrb[189].mxu0  ;;  %v5241_v12 = vpop.f32.mrb[238].mxu1 }
 0xa85   :  { %5304 = vmax.xlane.f32.xlu1 %v5303_v27  ;;  %v5194_v7 = vpop.f32.mrb[190].mxu0  ;;  %v7213_v43 = vpop.f32.mrb[239].mxu1  ;;  %v9556_v30 = vadd.f32 %v6281_v13, %v5241_v12  ;;  %v5312_v24 = vsel %vm870_vm3, %v9552_v51, -inf }
 0xa86   :  { %v9550_v38 = vadd.f32 %v6279_v28, %v5194_v7  ;;  %v5306_v36 = vsel %vm870_vm3, %v9546_v58, -inf  ;;  %v7207_v15 = vpop.f32.mrb[191].mxu0 }
 0xa87   :  { %5307 = vmax.xlane.f32.xlu0 %v5306_v36  ;;  %v5315_v28 = vsel %vm870_vm3, %v9556_v30, -inf }
 0xa88   :  { %v5309_v63 = vsel %vm870_vm3, %v9550_v38, -inf }
 0xa89   :  { %5310 = vmax.xlane.f32.xlu1 %v5309_v63 }
 0xa8b   :  { %5313 = vmax.xlane.f32.xlu0 %v5312_v24 }
 0xa8d   :  { %5316 = vmax.xlane.f32.xlu1 %v5315_v28 }
 0xafc   :  { %v5272_v18 = vpop.xlane.xlu0 %5271 }
 0xafd   :  { %v5318_v31 = vsub.f32 %v9485_v21, %v5272_v18 }
 0xafe   :  { %v5275_v32 = vpop.xlane.xlu1 %5274 }
 0xaff   :  { %v5334_v22 = vmul.f32 1.442695, %v5318_v31  ;;  %v5319_v13 = vsub.f32 %v9490_v37, %v5275_v32 }
 0xb00   :  { %v5278_v4 = vpop.xlane.xlu0 %5277 }
 0xb01   :  { %7554 = vpow2.f32 %v5334_v22  ;;  %v5336_v39 = vmul.f32 1.442695, %v5319_v13  ;;  %v5320_v61 = vsub.f32 %v9492_v2, %v5278_v4 }
 0xb02   :  { %v5281_v34 = vpop.xlane.xlu1 %5280 }
 0xb03   :  { %7556 = vpow2.f32 %v5336_v39  ;;  %v5338_v5 = vmul.f32 1.442695, %v5320_v61  ;;  %v5321_v47 = vsub.f32 %v9496_v46, %v5281_v34 }
 0xb04   :  { %v5284_v48 = vpop.xlane.xlu0 %5283 }
 0xb05   :  { %7558 = vpow2.f32 %v5338_v5  ;;  %v5340_v11 = vmul.f32 1.442695, %v5321_v47  ;;  %v5322_v45 = vsub.f32 %v9511_v26, %v5284_v48 }
 0xb06   :  { %v5287_v21 = vpop.xlane.xlu1 %5286 }
 0xb07   :  { %7560 = vpow2.f32 %v5340_v11  ;;  %v5342_v3 = vmul.f32 1.442695, %v5322_v45  ;;  %v5323_v37 = vsub.f32 %v9518_v16, %v5287_v21 }
 0xb08   :  { %v5290_v59 = vpop.xlane.xlu0 %5289 }
 0xb09   :  { %7562 = vpow2.f32 %v5342_v3  ;;  %v5344_v25 = vmul.f32 1.442695, %v5323_v37  ;;  %v5324_v2 = vsub.f32 %v9520_v1, %v5290_v59 }
 0xb0a   :  { %v5293_v8 = vpop.xlane.xlu1 %5292 }
 0xb0b   :  { %v7555_v50 = vpop.eup %7554  ;;  %7564 = vpow2.f32 %v5344_v25  ;;  %v5346_v53 = vmul.f32 1.442695, %v5324_v2  ;;  %v5325_v46 = vsub.f32 %v9524_v54, %v5293_v8 }
 0xb0c   :  { %v5296_v27 = vpop.xlane.xlu0 %5295  ;;  %v5366_v12 = vsel %vm870_vm3, %v7555_v50, 0.0 }
 0xb0d   :  { %v7557_v26 = vpop.eup %7556  ;;  %7566 = vpow2.f32 %v5346_v53  ;;  %v5348_v7 = vmul.f32 1.442695, %v5325_v46  ;;  %v5326_v43 = vsub.f32 %v9530_v60, %v5296_v27  ;;  %5367 = vadd.xlane.f32.xlu0 %v5366_v12 }
 0xb0e   :  { %v5299_v16 = vpop.xlane.xlu1 %5298  ;;  %v5369_v36 = vsel %vm870_vm3, %v7557_v26, 0.0  ;;  %v5414_v15 = vpack.c.bf16 %v7557_v26, %v7555_v50 }
 0xb0f   :  { %v7559_v1 = vpop.eup %7558  ;;  %7568 = vpow2.f32 %v5348_v7  ;;  %v5350_v63 = vmul.f32 1.442695, %v5326_v43  ;;  %v5327_v24 = vsub.f32 %v9534_v55, %v5299_v16  ;;  %5370 = vadd.xlane.f32.xlu1 %v5369_v36 }
 0xb10   :  { %7217 = vmatmul.mubr.msk.bf16.vlgmr.msra.gmra.mrb[192].mxu0 %vm870_vm3, %v5414_v15  ;;  %v5302_v54 = vpop.xlane.xlu0 %5301  ;;  %v5372_v28 = vsel %vm870_vm3, %v7559_v1, 0.0 }
 0xb11   :  { %v7561_v18 = vpop.eup %7560  ;;  %7570 = vpow2.f32 %v5350_v63  ;;  %v5352_v31 = vmul.f32 1.442695, %v5327_v24  ;;  %7227 = vmatpush3.bf16.msra.mxu0 %v4863_v49  ;;  %v5328_v60 = vsub.f32 %v9536_v35, %v5302_v54  ;;  %5373 = vadd.xlane.f32.xlu0 %v5372_v28 }
 0xb12   :  { %v5305_v32 = vpop.xlane.xlu1 %5304  ;;  %v5375_v22 = vsel %vm870_vm3, %v7561_v18, 0.0  ;;  %v5415_v55 = vpack.c.bf16 %v7561_v18, %v7559_v1  ;;  %7228 = vmatprep.mubr.msk.bf16.mxu0 %vm7619_vm1, %v9755_v52  ;;  %7238 = vmatprep.subr.bf16.mxu0 %v9755_v52 }
 0xb13   :  { %v7563_v13 = vpop.eup %7562  ;;  %7572 = vpow2.f32 %v5352_v31  ;;  %v5354_v4 = vmul.f32 1.442695, %v5328_v60  ;;  %v5329_v39 = vsub.f32 %v9540_v41, %v5305_v32  ;;  %5376 = vadd.xlane.f32.xlu1 %v5375_v22 }
 0xb14   :  { %7223 = vmatmul.mubr.msk.bf16.vlgmr.msra.gmra.mrb[240].mxu1 %vm870_vm3, %v5415_v55  ;;  %v5308_v56 = vpop.xlane.xlu0 %5307  ;;  %v5378_v14 = vsel %vm870_vm3, %v7563_v13, 0.0 }
 0xb15   :  { %v7565_v49 = vpop.eup %7564  ;;  %7574 = vpow2.f32 %v5354_v4  ;;  %v5356_v35 = vmul.f32 1.442695, %v5329_v39  ;;  %7233 = vmatpush3.bf16.msra.mxu1 %v4864_v57  ;;  %v5330_v61 = vsub.f32 %v9546_v58, %v5308_v56  ;;  %5379 = vadd.xlane.f32.xlu0 %v5378_v14 }
 0xb16   :  { %v5311_v34 = vpop.xlane.xlu1 %5310  ;;  %v5381_v5 = vsel %vm870_vm3, %v7565_v49, 0.0  ;;  %v5416_v41 = vpack.c.bf16 %v7565_v49, %v7563_v13  ;;  %7234 = vmatprep.mubr.msk.bf16.mxu1 %vm7619_vm1, %v9755_v52  ;;  %7244 = vmatprep.subr.bf16.mxu1 %v9755_v52 }
 0xb17   :  { %v7567_v47 = vpop.eup %7566  ;;  %7576 = vpow2.f32 %v5356_v35  ;;  %v5358_v48 = vmul.f32 1.442695, %v5330_v61  ;;  %v5331_v11 = vsub.f32 %v9550_v38, %v5311_v34  ;;  %5382 = vadd.xlane.f32.xlu1 %v5381_v5 }
 0xb18   :  { %7229 = vmatmul.mubr.msk.bf16.vlgmr.msra.gmra.mrb[196].mxu0 %vm870_vm3, %v5416_v41  ;;  %v5314_v6 = vpop.xlane.xlu0 %5313  ;;  %v5384_v62 = vsel %vm870_vm3, %v7567_v47, 0.0 }
 0xb19   :  { %v7569_v57 = vpop.eup %7568  ;;  %7578 = vpow2.f32 %v5358_v48  ;;  %v5360_v58 = vmul.f32 1.442695, %v5331_v11  ;;  %7239 = vmatpush3.bf16.msra.mxu0 %v4865_v42  ;;  %v5332_v45 = vsub.f32 %v9552_v51, %v5314_v6  ;;  %5385 = vadd.xlane.f32.xlu0 %v5384_v62 }
 0xb1a   :  { %v5317_v21 = vpop.xlane.xlu1 %5316  ;;  %v5387_v3 = vsel %vm870_vm3, %v7569_v57, 0.0  ;;  %v5417_v38 = vpack.c.bf16 %v7569_v57, %v7567_v47  ;;  %7240 = vmatprep.mubr.msk.bf16.mxu0 %vm7619_vm1, %v9755_v52  ;;  %7250 = vmatprep.subr.bf16.mxu0 %v9755_v52 }
 0xb1b   :  { %v7571_v37 = vpop.eup %7570  ;;  %7580 = vpow2.f32 %v5360_v58  ;;  %v5362_v59 = vmul.f32 1.442695, %v5332_v45  ;;  %v5333_v25 = vsub.f32 %v9556_v30, %v5317_v21  ;;  %5388 = vadd.xlane.f32.xlu1 %v5387_v3 }
 0xb1c   :  { %7235 = vmatmul.mubr.msk.bf16.vlgmr.msra.gmra.mrb[244].mxu1 %vm870_vm3, %v5417_v38  ;;  %v5390_v23 = vsel %vm870_vm3, %v7571_v37, 0.0 }
 0xb1d   :  { %v7573_v0 = vpop.eup %7572  ;;  %7582 = vpow2.f32 %v5362_v59  ;;  %v5364_v42 = vmul.f32 1.442695, %v5333_v25  ;;  %7245 = vmatpush3.bf16.msra.mxu1 %v4866_v44  ;;  %5391 = vadd.xlane.f32.xlu0 %v5390_v23 }
 0xb1e   :  { %v5393_v51 = vsel %vm870_vm3, %v7573_v0, 0.0  ;;  %v5418_v2 = vpack.c.bf16 %v7573_v0, %v7571_v37  ;;  %7246 = vmatprep.mubr.msk.bf16.mxu1 %vm7619_vm1, %v9755_v52  ;;  %7256 = vmatprep.subr.bf16.mxu1 %v9755_v52 }
 0xb1f   :  { %v7575_v30 = vpop.eup %7574  ;;  %7584 = vpow2.f32 %v5364_v42  ;;  %5394 = vadd.xlane.f32.xlu1 %v5393_v51 }
 0xb20   :  { %7241 = vmatmul.mubr.msk.bf16.vlgmr.msra.gmra.mrb[200].mxu0 %vm870_vm3, %v5418_v2  ;;  %v5396_v8 = vsel %vm870_vm3, %v7575_v30, 0.0 }
 0xb21   :  { %v7577_v50 = vpop.eup %7576  ;;  %7251 = vmatpush3.bf16.msra.mxu0 %v4867_v20  ;;  %5397 = vadd.xlane.f32.xlu0 %v5396_v8 }
 0xb22   :  { %v5399_v17 = vsel %vm870_vm3, %v7577_v50, 0.0  ;;  %v5419_v10 = vpack.c.bf16 %v7577_v50, %v7575_v30  ;;  %7252 = vmatprep.mubr.msk.bf16.mxu0 %vm7619_vm1, %v9755_v52  ;;  %7335 = vmatprep.subr.msk.bf16.mxu0 %vm2777_vm4, %v6290_v29 }
 0xb23   :  { %v7579_v44 = vpop.eup %7578  ;;  %5400 = vadd.xlane.f32.xlu1 %v5399_v17 }
 0xb24   :  { %7247 = vmatmul.mubr.msk.bf16.vlgmr.msra.gmra.mrb[248].mxu1 %vm870_vm3, %v5419_v10  ;;  %v5402_v53 = vsel %vm870_vm3, %v7579_v44, 0.0 }
 0xb25   :  { %v7581_v46 = vpop.eup %7580  ;;  %7257 = vmatpush3.bf16.msra.mxu1 %v4868_v9  ;;  %5403 = vadd.xlane.f32.xlu0 %v5402_v53 }
 0xb26   :  { %v5405_v40 = vsel %vm870_vm3, %v7581_v46, 0.0  ;;  %v5420_v33 = vpack.c.bf16 %v7581_v46, %v7579_v44  ;;  %7258 = vmatprep.mubr.msk.bf16.mxu1 %vm7619_vm1, %v9755_v52  ;;  %v5841_v52 = vsel %vm2777_vm4, %v6290_v29, 0 }
 0xb27   :  { %v7583_v20 = vpop.eup %7582  ;;  %5406 = vadd.xlane.f32.xlu1 %v5405_v40 }
 0xb28   :  { %7253 = vmatmul.mubr.msk.bf16.vlgmr.msra.gmra.mrb[204].mxu0 %vm870_vm3, %v5420_v33  ;;  %v5408_v27 = vsel %vm870_vm3, %v7583_v20, 0.0 }
 0xb29   :  { %v7585_v12 = vpop.eup %7584  ;;  %5409 = vadd.xlane.f32.xlu0 %v5408_v27  ;;  %7263 = vmatpush3.bf16.msra.mxu0 %v5841_v52 }
 0xb2a   :  { %v5411_v26 = vsel %vm870_vm3, %v7585_v12, 0.0  ;;  %v5421_v7 = vpack.c.bf16 %v7585_v12, %v7583_v20 }
 0xb2b   :  { %5412 = vadd.xlane.f32.xlu1 %v5411_v26 }
 0xb2c   :  { %7259 = vmatmul.mubr.msk.bf16.vlgmr.msra.gmra.mrb[252].mxu1 %vm870_vm3, %v5421_v7 }
 0xb9a   :  { %v5368_v19 = vpop.xlane.xlu0 %5367 }
 0xb9b   :  { %7586 = vrcp.f32 %v5368_v19 }
 0xb9c   :  { %v5371_v9 = vpop.xlane.xlu1 %5370 }
 0xb9d   :  { %7588 = vrcp.f32 %v5371_v9 }
 0xb9e   :  { %v5374_v43 = vpop.xlane.xlu0 %5373 }
 0xb9f   :  { %7590 = vrcp.f32 %v5374_v43 }
 0xba0   :  { %v5377_v16 = vpop.xlane.xlu1 %5376 }
 0xba1   :  { %7592 = vrcp.f32 %v5377_v16 }
 0xba2   :  { %v5380_v36 = vpop.xlane.xlu0 %5379 }
 0xba3   :  { %7594 = vrcp.f32 %v5380_v36 }
 0xba4   :  { %v5383_v15 = vpop.xlane.xlu1 %5382 }
 0xba5   :  { %7596 = vrcp.f32 %v5383_v15  ;;  %v7587_v18 = vpop.eup %7586 }
 0xba6   :  { %v5386_v1 = vpop.xlane.xlu0 %5385 }
 0xba7   :  { %v7589_v60 = vpop.eup %7588  ;;  %7598 = vrcp.f32 %v5386_v1 }
 0xba8   :  { %v5389_v63 = vpop.xlane.xlu1 %5388 }
 0xba9   :  { %7600 = vrcp.f32 %v5389_v63  ;;  %v7591_v56 = vpop.eup %7590 }
 0xbaa   :  { %v5392_v24 = vpop.xlane.xlu0 %5391 }
 0xbab   :  { %v7593_v61 = vpop.eup %7592  ;;  %7602 = vrcp.f32 %v5392_v24 }
 0xbac   :  { %v5395_v54 = vpop.xlane.xlu1 %5394 }
 0xbad   :  { %7604 = vrcp.f32 %v5395_v54  ;;  %v7595_v11 = vpop.eup %7594 }
 0xbae   :  { %v5398_v4 = vpop.xlane.xlu0 %5397 }
 0xbaf   :  { %v7597_v57 = vpop.eup %7596  ;;  %7606 = vrcp.f32 %v5398_v4 }
 0xbb0   :  { %v5401_v14 = vpop.xlane.xlu1 %5400 }
 0xbb1   :  { %7608 = vrcp.f32 %v5401_v14  ;;  %v7599_v25 = vpop.eup %7598 }
 0xbb2   :  { %v5404_v58 = vpop.xlane.xlu0 %5403 }
 0xbb3   :  { %v7601_v42 = vpop.eup %7600  ;;  %7610 = vrcp.f32 %v5404_v58 }
 0xbb4   :  { %v5407_v21 = vpop.xlane.xlu1 %5406 }
 0xbb5   :  { %7612 = vrcp.f32 %v5407_v21  ;;  %v7603_v10 = vpop.eup %7602 }
 0xbb6   :  { %v5410_v50 = vpop.xlane.xlu0 %5409 }
 0xbb7   :  { %v7605_v40 = vpop.eup %7604  ;;  %7614 = vrcp.f32 %v5410_v50 }
 0xbb8   :  { %v5413_v44 = vpop.xlane.xlu1 %5412 }
 0xbb9   :  { %7616 = vrcp.f32 %v5413_v44  ;;  %v7607_v7 = vpop.eup %7606 }
 0xbbb   :  { %v7609_v19 = vpop.eup %7608 }
 0xbbd   :  { %v7611_v1 = vpop.eup %7610 }
 0xbbf   :  { %v7613_v54 = vpop.eup %7612 }
 0xbe3   :  { %v5459_v28 = vpop.f32.mrb[192].mxu0 }
 0xbe4   :  { %v7218_v31 = vpop.f32.mrb[193].mxu0  ;;  %v5790_v22 = vmul.f32 %v7587_v18, %v5459_v28 }
 0xbe5   :  { %v5462_v32 = vpop.f32.mrb[194].mxu0 }
 0xbe6   :  { %v5791_v55 = vmul.f32 %v7589_v60, %v5462_v32  ;;  %v7219_v13 = vpop.f32.mrb[195].mxu0 }
 0xbe7   :  { %v5503_v39 = vpop.f32.mrb[240].mxu1 }
 0xbe8   :  { %v5806_v49 = vpack.c.bf16 %v5791_v55, %v5790_v22  ;;  %v7224_v35 = vpop.f32.mrb[241].mxu1  ;;  %v5792_v5 = vmul.f32 %v7591_v56, %v5503_v39  ;;  %v7615_v22 = vpop.eup %7614 }
 0xbe9   :  { %v5506_v34 = vpop.f32.mrb[242].mxu1  ;;  %v7617_v4 = vpop.eup %7616 }
 0xbea   :  { %v5793_v41 = vmul.f32 %v7593_v61, %v5506_v34  ;;  %v7225_v47 = vpop.f32.mrb[243].mxu1  ;;  %7264 = vmatprep.mubr.msk.bf16.mxu0 %vm469_vm2, %v5806_v49  ;;  %v6299_v61 = vld [vmem:[%s9727_s9] ss:$0 sm:$0xff] }
 0xbeb   :  { %v5547_v48 = vpop.f32.mrb[196].mxu0 }
 0xbec   :  { %v5807_v6 = vpack.c.bf16 %v5793_v41, %v5792_v5  ;;  %v7230_v62 = vpop.f32.mrb[197].mxu0  ;;  %v5794_v3 = vmul.f32 %v7595_v11, %v5547_v48 }
 0xbed   :  { %v5550_v45 = vpop.f32.mrb[198].mxu0 }
 0xbee   :  { %v5795_v38 = vmul.f32 %v7597_v57, %v5550_v45  ;;  %v7231_v37 = vpop.f32.mrb[199].mxu0  ;;  %7265 = vmatmul.mubr.msk.bf16.vlgmr.msra.gmra.mrb[104].mxu0 %vm469_vm2, %v5807_v6 }
 0xbef   :  { %v5591_v59 = vpop.f32.mrb[244].mxu1 }
 0xbf0   :  { %v5808_v23 = vpack.c.bf16 %v5795_v38, %v5794_v3  ;;  %v7236_v0 = vpop.f32.mrb[245].mxu1  ;;  %v5796_v2 = vmul.f32 %v7599_v25, %v5591_v59 }
 0xbf1   :  { %v5594_v51 = vpop.f32.mrb[246].mxu1 }
 0xbf2   :  { %v5797_v30 = vmul.f32 %v7601_v42, %v5594_v51  ;;  %v7237_v8 = vpop.f32.mrb[247].mxu1  ;;  %7268 = vmatprep.mubr.msk.bf16.mxu0 %vm469_vm2, %v5808_v23 }
 0xbf3   :  { %v5635_v17 = vpop.f32.mrb[200].mxu0 }
 0xbf4   :  { %v5809_v53 = vpack.c.bf16 %v5797_v30, %v5796_v2  ;;  %v7242_v46 = vpop.f32.mrb[201].mxu0  ;;  %v5798_v20 = vmul.f32 %v7603_v10, %v5635_v17 }
 0xbf5   :  { %v5638_v33 = vpop.f32.mrb[202].mxu0 }
 0xbf6   :  { %v5799_v27 = vmul.f32 %v7605_v40, %v5638_v33  ;;  %v7243_v12 = vpop.f32.mrb[203].mxu0  ;;  %7269 = vmatmul.mubr.msk.bf16.gmra.mrb[108].mxu0 %vm469_vm2, %v5809_v53 }
 0xbf7   :  { %v5679_v26 = vpop.f32.mrb[248].mxu1 }
 0xbf8   :  { %v5810_v29 = vpack.c.bf16 %v5799_v27, %v5798_v20  ;;  %v7248_v52 = vpop.f32.mrb[249].mxu1  ;;  %v5800_v43 = vmul.f32 %v7607_v7, %v5679_v26 }
 0xbf9   :  { %v5682_v9 = vpop.f32.mrb[250].mxu1 }
 0xbfa   :  { %v5801_v16 = vmul.f32 %v7609_v19, %v5682_v9  ;;  %v7249_v36 = vpop.f32.mrb[251].mxu1  ;;  %7272 = vmatprep.mubr.msk.bf16.mxu0 %vm469_vm2, %v5810_v29 }
 0xbfb   :  { %v5723_v15 = vpop.f32.mrb[204].mxu0 }
 0xbfc   :  { %v5811_v63 = vpack.c.bf16 %v5801_v16, %v5800_v43  ;;  %v7254_v24 = vpop.f32.mrb[205].mxu0  ;;  %v5802_v18 = vmul.f32 %v7611_v1, %v5723_v15 }
 0xbfd   :  { %v5726_v28 = vpop.f32.mrb[206].mxu0 }
 0xbfe   :  { %v5803_v31 = vmul.f32 %v7613_v54, %v5726_v28  ;;  %v7255_v60 = vpop.f32.mrb[207].mxu0  ;;  %7273 = vmatmul.mubr.msk.bf16.gmra.mrb[112].mxu0 %vm469_vm2, %v5811_v63 }
 0xbff   :  { %v5767_v32 = vpop.f32.mrb[252].mxu1 }
 0xc00   :  { %v5812_v55 = vpack.c.bf16 %v5803_v31, %v5802_v18  ;;  %v7260_v13 = vpop.f32.mrb[253].mxu1  ;;  %v5804_v56 = vmul.f32 %v7615_v22, %v5767_v32 }
 0xc01   :  { %v5770_v39 = vpop.f32.mrb[254].mxu1 }
 0xc02   :  { %v5805_v14 = vmul.f32 %v7617_v4, %v5770_v39  ;;  %v7261_v49 = vpop.f32.mrb[255].mxu1  ;;  %7276 = vmatprep.mubr.msk.bf16.mxu0 %vm469_vm2, %v5812_v55 }
 0xc04   :  { %v5813_v35 = vpack.c.bf16 %v5805_v14, %v5804_v56 }
 0xc06   :  { %7277 = vmatmul.mubr.msk.bf16.gmra.mrb[116].mxu0 %vm469_vm2, %v5813_v35 }
 0xcc1   :  { %v7266_v34 = vpop.f32.mrb[104].mxu0 }
 0xcc2   :  { %v5965_v5 = vadd.f32 %v7266_v34, %v6299_v61  ;;  %v5877_v41 = vpop.f32.mrb[105].mxu0 }
 0xcc3   :  { %v5963_v47 = vadd.f32 %v6299_v61, %v5877_v41  ;;  %v7267_v48 = vpop.f32.mrb[106].mxu0 }
 0xcc4   :  { %5981 = vst.msk [vmem:[%s9728_s10 + $0x10] sm:$0xff] %vm83_vm0, %v5965_v5  ;;  %v5966_v11 = vadd.f32 %v7267_v48, %v6299_v61  ;;  %v5880_v6 = vpop.f32.mrb[107].mxu0 }
 0xcc5   :  { %5979 = vst.msk [vmem:[%s9728_s10] sm:$0xff] %vm83_vm0, %v5963_v47  ;;  %v5964_v62 = vadd.f32 %v6299_v61, %v5880_v6 }
 0xcc6   :  { %5982 = vst.msk [vmem:[%s9728_s10 + $0x18] sm:$0xff] %vm83_vm0, %v5966_v11 }
 0xcc7   :  { %5980 = vst.msk [vmem:[%s9728_s10 + $0x8] sm:$0xff] %vm83_vm0, %v5964_v62 }
 0xcc9   :  { %v7270_v57 = vpop.f32.mrb[108].mxu0 }
 0xcca   :  { %v5969_v58 = vadd.f32 %v7270_v57, %v6299_v61  ;;  %v5893_v45 = vpop.f32.mrb[109].mxu0 }
 0xccb   :  { %v5967_v21 = vadd.f32 %v6299_v61, %v5893_v45  ;;  %v7271_v3 = vpop.f32.mrb[110].mxu0 }
 0xccc   :  { %5985 = vst.msk [vmem:[%s9728_s10 + $0x30] sm:$0xff] %vm83_vm0, %v5969_v58  ;;  %v5970_v38 = vadd.f32 %v7271_v3, %v6299_v61  ;;  %v5896_v37 = vpop.f32.mrb[111].mxu0 }
 0xccd   :  { %5983 = vst.msk [vmem:[%s9728_s10 + $0x20] sm:$0xff] %vm83_vm0, %v5967_v21  ;;  %v5968_v59 = vadd.f32 %v6299_v61, %v5896_v37 }
 0xcce   :  { %5986 = vst.msk [vmem:[%s9728_s10 + $0x38] sm:$0xff] %vm83_vm0, %v5970_v38 }
 0xccf   :  { %5984 = vst.msk [vmem:[%s9728_s10 + $0x28] sm:$0xff] %vm83_vm0, %v5968_v59 }
 0xcd1   :  { %v7274_v25 = vpop.f32.mrb[112].mxu0 }
 0xcd2   :  { %v5973_v23 = vadd.f32 %v7274_v25, %v6299_v61  ;;  %v5909_v0 = vpop.f32.mrb[113].mxu0 }
 0xcd3   :  { %v5971_v42 = vadd.f32 %v6299_v61, %v5909_v0  ;;  %v7275_v51 = vpop.f32.mrb[114].mxu0 }
 0xcd4   :  { %5989 = vst.msk [vmem:[%s9728_s10 + $0x50] sm:$0xff] %vm83_vm0, %v5973_v23  ;;  %v5974_v2 = vadd.f32 %v7275_v51, %v6299_v61  ;;  %v5912_v30 = vpop.f32.mrb[115].mxu0 }
 0xcd5   :  { %5987 = vst.msk [vmem:[%s9728_s10 + $0x40] sm:$0xff] %vm83_vm0, %v5971_v42  ;;  %v5972_v8 = vadd.f32 %v6299_v61, %v5912_v30 }
 0xcd6   :  { %5990 = vst.msk [vmem:[%s9728_s10 + $0x58] sm:$0xff] %vm83_vm0, %v5974_v2 }
 0xcd7   :  { %5988 = vst.msk [vmem:[%s9728_s10 + $0x48] sm:$0xff] %vm83_vm0, %v5972_v8 }
 0xcd9   :  { %v7278_v50 = vpop.f32.mrb[116].mxu0 }
 0xcda   :  { %v5977_v17 = vadd.f32 %v7278_v50, %v6299_v61  ;;  %v5925_v10 = vpop.f32.mrb[117].mxu0 }
 0xcdb   :  { %v5975_v44 = vadd.f32 %v6299_v61, %v5925_v10  ;;  %v7279_v53 = vpop.f32.mrb[118].mxu0 }
 0xcdc   :  { %5993 = vst.msk [vmem:[%s9728_s10 + $0x70] sm:$0xff] %vm83_vm0, %v5977_v17  ;;  %v5978_v46 = vadd.f32 %v7279_v53, %v6299_v61  ;;  %v5928_v40 = vpop.f32.mrb[119].mxu0 }
 0xcdd   :  { %5991 = vst.msk [vmem:[%s9728_s10 + $0x60] sm:$0xff] %vm83_vm0, %v5975_v44  ;;  %v5976_v33 = vadd.f32 %v6299_v61, %v5928_v40 }
 0xcde   :  { %5994 = vst.msk [vmem:[%s9728_s10 + $0x78] sm:$0xff] %vm83_vm0, %v5978_v46 }
 0xcdf   :  { %5992 = vst.msk [vmem:[%s9728_s10 + $0x68] sm:$0xff] %vm83_vm0, %v5976_v33 }

</bundles_post_ra>
